<compile_context>
chip_gen: v7x
topology: tpu7x:2x2x1
jax: 0.10.0
libtpu: 0.0.40
codegen_flags: <defaults>
</compile_context>

<pallas_src>
import functools

import jax
import jax.numpy as jnp
from jax.experimental import pallas as pl
from jax.experimental.pallas import tpu as pltpu

# Model / problem dimensions (small, consistent with the module's __init__).
VOCAB = 50      # input_dim  (embedding vocabulary)
EMB = 16        # emb_dim
HID = 32        # hid_dim
NLAYERS = 2     # n_layers
BATCH = 8
SEQ = 20        # matches the hard-coded `for i in range(20)` in LSTMmodel


def _encoder_kernel(n_layers, hid, batch, seq,
                    len_ref, x_ref, wx0_ref, b0_ref, wh0_ref, *rest):
    """Entire stacked-LSTM recurrence in one kernel invocation.

    rest = (W_1, b_1, ..., W_{L-1}, b_{L-1}, out_ref, hid_ref, cell_ref, xproj_ref)
    where W_l = [Wx_l ; Wh_l] stacked, gate lane order (i, f, o, g).
    """
    n_extra = 2 * (n_layers - 1)
    lw_refs = rest[:n_extra]
    out_ref, hid_ref, cell_ref, xproj_ref = rest[n_extra:]

    # Hoisted layer-0 input projection for all time steps (bias folded in):
    # one [T*B, E] @ [E, 4H] matmul instead of 20 tiny matmuls in the chain.
    xproj_ref[...] = (
        jnp.dot(x_ref[...], wx0_ref[...], preferred_element_type=jnp.float32)
        + b0_ref[...])

    lengths = len_ref[...]                          # [B, 1] int32
    wh0 = wh0_ref[...]                              # [H, 4H]
    lws = [(lw_refs[2 * i][...], lw_refs[2 * i + 1][...])
           for i in range(n_layers - 1)]            # fused [(H+H), 4H] weights

    h = [jnp.zeros((batch, hid), jnp.float32) for _ in range(n_layers)]
    c = [jnp.zeros((batch, hid), jnp.float32) for _ in range(n_layers)]

    def cell_update(gates, c_prev):
        # Gate lane order (i, f, o, g): one full-vreg sigmoid + one full-vreg
        # tanh, then cheap lane slices (instead of 4 sub-vreg EUP pushes).
        sg = jax.nn.sigmoid(gates)
        th = jnp.tanh(gates)
        i_g = sg[:, 0 * hid:1 * hid]
        f_g = sg[:, 1 * hid:2 * hid]
        o_g = sg[:, 2 * hid:3 * hid]
        g_g = th[:, 3 * hid:4 * hid]
        c_new = f_g * c_prev + i_g * g_g
        h_new = o_g * jnp.tanh(c_new)
        return h_new, c_new

    # Unrolled time loop (seq = 20): replaces the old grid=(T,), removing the
    # ~0.35 us/step grid overhead and the 40 tiny per-step input DMAs.
    for t in range(seq):
        active = lengths > t                        # [B, 1] bool, packed-seq mask

        # Layer 0: input projection already hoisted -> only the recurrent dot.
        gates = xproj_ref[t * batch:(t + 1) * batch, :] + jnp.dot(
            h[0], wh0, preferred_element_type=jnp.float32)
        h_new, c_new = cell_update(gates, c[0])
        h[0] = jnp.where(active, h_new, h[0])       # freeze finished sequences
        c[0] = jnp.where(active, c_new, c[0])
        layer_in = h_new

        for l in range(1, n_layers):
            w_l, b_l = lws[l - 1]
            # Fused [inp | h] @ [Wx ; Wh]: a single matmul per layer per step.
            gates = jnp.dot(jnp.concatenate([layer_in, h[l]], axis=-1), w_l,
                            preferred_element_type=jnp.float32) + b_l
            h_new, c_new = cell_update(gates, c[l])
            h[l] = jnp.where(active, h_new, h[l])
            c[l] = jnp.where(active, c_new, c[l])
            layer_in = h_new

        # Lane-dense output [B, T*H]: column block t; padded steps -> 0,
        # matching pad_packed_sequence's zero padding.
        out_ref[:, t * hid:(t + 1) * hid] = jnp.where(active, layer_in, 0.0)

    for l in range(n_layers):
        hid_ref[l] = h[l]
        cell_ref[l] = c[l]


def init_params(key):
    """Torch-default-style parameters (embedding + per-layer LSTMCell weights)."""
    keys = jax.random.split(key, 1 + NLAYERS)
    params = {"embedding": jax.random.normal(keys[0], (VOCAB, EMB), jnp.float32)}
    bound = 1.0 / (HID ** 0.5)
    for layer in range(NLAYERS):
        in_dim = EMB if layer == 0 else HID
        k1, k2, k3, k4 = jax.random.split(keys[1 + layer], 4)
        # nn.LSTMCell default: U(-1/sqrt(H), 1/sqrt(H)), gate order (i, f, g, o)
        params[f"w_ih_{layer}"] = jax.random.uniform(
            k1, (4 * HID, in_dim), jnp.float32, -bound, bound)
        params[f"w_hh_{layer}"] = jax.random.uniform(
            k2, (4 * HID, HID), jnp.float32, -bound, bound)
        params[f"b_ih_{layer}"] = jax.random.uniform(
            k3, (4 * HID,), jnp.float32, -bound, bound)
        params[f"b_hh_{layer}"] = jax.random.uniform(
            k4, (4 * HID,), jnp.float32, -bound, bound)
    return params


def _reorder_gates(a):
    """torch gate order (i, f, g, o) -> kernel lane order (i, f, o, g)."""
    h = HID
    return jnp.concatenate(
        [a[..., 0:h], a[..., h:2 * h], a[..., 3 * h:4 * h], a[..., 2 * h:3 * h]],
        axis=-1)


def prepare_kernel_params(params):
    """Transpose, reorder gate columns, sum biases, and stack Wx/Wh for l>=1."""
    kp = {}
    for layer in range(NLAYERS):
        wx = _reorder_gates(params[f"w_ih_{layer}"].T)                 # [in, 4H]
        wh = _reorder_gates(params[f"w_hh_{layer}"].T)                 # [H, 4H]
        b = _reorder_gates(
            params[f"b_ih_{layer}"] + params[f"b_hh_{layer}"])[None, :]  # [1, 4H]
        if layer == 0:
            kp["wx0"], kp["wh0"], kp["b0"] = wx, wh, b
        else:
            kp[f"w_{layer}"] = jnp.concatenate([wx, wh], axis=0)       # [2H, 4H]
            kp[f"b_{layer}"] = b
    return kp


def encoder_forward(src, params):
    """Encoder.forward: embedding -> pack -> stacked LSTM -> unpack."""
    B, T = src.shape
    kp = prepare_kernel_params(params)

    # TODO(synk): length reduction + embedding gather kept in plain JAX glue
    # (data-dependent gather); the LSTM recurrence runs in the Pallas kernel.
    lengths = jnp.sum(src > 0, axis=1).astype(jnp.int32)[:, None]      # [B, 1]
    emb = params["embedding"][src].astype(jnp.float32)                 # [B, T, E]
    x_tm = jnp.transpose(emb, (1, 0, 2)).reshape(T * B, EMB)           # [T*B, E]

    args = [lengths, x_tm, kp["wx0"], kp["b0"], kp["wh0"]]
    in_specs = [
        pl.BlockSpec((B, 1), lambda i: (0, 0)),             # lengths (int32)
        pl.BlockSpec((T * B, EMB), lambda i: (0, 0)),       # all embedded inputs
        pl.BlockSpec((EMB, 4 * HID), lambda i: (0, 0)),     # Wx_0
        pl.BlockSpec((1, 4 * HID), lambda i: (0, 0)),       # b_0
        pl.BlockSpec((HID, 4 * HID), lambda i: (0, 0)),     # Wh_0
    ]
    for layer in range(1, NLAYERS):
        args += [kp[f"w_{layer}"], kp[f"b_{layer}"]]
        in_specs += [
            pl.BlockSpec((2 * HID, 4 * HID), lambda i: (0, 0)),   # [Wx;Wh] fused
            pl.BlockSpec((1, 4 * HID), lambda i: (0, 0)),
        ]

    out_shape = (
        jax.ShapeDtypeStruct((B, T * HID), jnp.float32),            # lane-dense out
        jax.ShapeDtypeStruct((NLAYERS, B, HID), jnp.float32),       # hidden
        jax.ShapeDtypeStruct((NLAYERS, B, HID), jnp.float32),       # cell
    )
    out_specs = (
        pl.BlockSpec((B, T * HID), lambda i: (0, 0)),
        pl.BlockSpec((NLAYERS, B, HID), lambda i: (0, 0, 0)),
        pl.BlockSpec((NLAYERS, B, HID), lambda i: (0, 0, 0)),
    )

    kernel = functools.partial(_encoder_kernel, NLAYERS, HID, B, T)
    out_flat, hx, cx = pl.pallas_call(
        kernel,
        out_shape=out_shape,
        grid=(1,),                                # whole recurrence in one step
        in_specs=in_specs,
        out_specs=out_specs,
        scratch_shapes=[pltpu.VMEM((T * B, 4 * HID), jnp.float32)],  # x_proj
        compiler_params=pltpu.CompilerParams(
            dimension_semantics=("arbitrary",)),
    )(*args)

    # [B, T*H] row-major == [B, T, H]: batch_first output, no transpose needed.
    output = out_flat.reshape(B, T, HID)
    return output, hx, cx


def encoder_reference(src, params):
    """Pure-JAX reference with torch layout / gate order (correctness check)."""
    B, T = src.shape
    lengths = jnp.sum(src > 0, axis=1)
    emb = params["embedding"][src].astype(jnp.float32)
    h = [jnp.zeros((B, HID), jnp.float32) for _ in range(NLAYERS)]
    c = [jnp.zeros((B, HID), jnp.float32) for _ in range(NLAYERS)]
    outs = []
    for t in range(T):
        active = (t < lengths)[:, None]
        inp = emb[:, t, :]
        for layer in range(NLAYERS):
            gates = (inp @ params[f"w_ih_{layer}"].T
                     + h[layer] @ params[f"w_hh_{layer}"].T
                     + params[f"b_ih_{layer}"] + params[f"b_hh_{layer}"])
            i_g = jax.nn.sigmoid(gates[:, :HID])
            f_g = jax.nn.sigmoid(gates[:, HID:2 * HID])
            g_g = jnp.tanh(gates[:, 2 * HID:3 * HID])
            o_g = jax.nn.sigmoid(gates[:, 3 * HID:])
            c_new = f_g * c[layer] + i_g * g_g
            h_new = o_g * jnp.tanh(c_new)
            h[layer] = jnp.where(active, h_new, h[layer])
            c[layer] = jnp.where(active, c_new, c[layer])
            inp = h_new
        outs.append(jnp.where(active, inp, 0.0))
    return (jnp.stack(outs, axis=1), jnp.stack(h, axis=0), jnp.stack(c, axis=0))


if __name__ == "__main__":
    key = jax.random.PRNGKey(0)
    k_len, k_tok, k_par = jax.random.split(key, 3)

    params = init_params(k_par)

    # src: trailing-zero padded token ids, lengths >= 1, max(length) == 20
    # (matches the hard-coded 20-step loop in LSTMmodel).
    lengths = jax.random.randint(k_len, (BATCH,), 1, SEQ + 1)
    lengths = lengths.at[0].set(SEQ)
    toks = jax.random.randint(k_tok, (BATCH, SEQ), 1, VOCAB)
    pos = jnp.arange(SEQ)[None, :]
    src = jnp.where(pos < lengths[:, None], toks, 0).astype(jnp.int32)  # [B, T]

    out, hidden, cell = encoder_forward(src, params)
    jax.block_until_ready((out, hidden, cell))

    ref_out, ref_h, ref_c = encoder_reference(src, params)
    assert out.shape == (BATCH, SEQ, HID)
    assert hidden.shape == (NLAYERS, BATCH, HID)
    assert cell.shape == (NLAYERS, BATCH, HID)
    assert jnp.allclose(out, ref_out, atol=1e-4), "output mismatch"
    assert jnp.allclose(hidden, ref_h, atol=1e-4), "hidden mismatch"
    assert jnp.allclose(cell, ref_c, atol=1e-4), "cell mismatch"

    print("KERNEL_OK")
</pallas_src>

<mosaic_0001>
module attributes {stable_mosaic.version = 11 : i64} {
  func.func @_encoder_kernel(%arg0: i32, %arg1: memref<8x1xi32, #tpu.memory_space<vmem>>, %arg2: memref<160x16xf32, #tpu.memory_space<vmem>>, %arg3: memref<16x128xf32, #tpu.memory_space<vmem>>, %arg4: memref<1x128xf32, #tpu.memory_space<vmem>>, %arg5: memref<32x128xf32, #tpu.memory_space<vmem>>, %arg6: memref<64x128xf32, #tpu.memory_space<vmem>>, %arg7: memref<1x128xf32, #tpu.memory_space<vmem>>, %arg8: memref<8x640xf32, #tpu.memory_space<vmem>>, %arg9: memref<2x8x32xf32, #tpu.memory_space<vmem>>, %arg10: memref<2x8x32xf32, #tpu.memory_space<vmem>>, %arg11: memref<160x128xf32, #tpu.memory_space<vmem>>) attributes {dimension_semantics = [#tpu.dimension_semantics<arbitrary>], iteration_bounds = array<i64: 1>, scalar_prefetch = 0 : i64, scratch_operands = 1 : i64, tpu.core_type = #tpu.core_type<tc>, window_params = [{pipeline_mode = #tpu.pipeline_mode<synchronous>, transform_indices = @transform_0, window_bounds = array<i64: 8, 1>}, {pipeline_mode = #tpu.pipeline_mode<synchronous>, transform_indices = @transform_1, window_bounds = array<i64: 160, 16>}, {pipeline_mode = #tpu.pipeline_mode<synchronous>, transform_indices = @transform_2, window_bounds = array<i64: 16, 128>}, {pipeline_mode = #tpu.pipeline_mode<synchronous>, transform_indices = @transform_3, window_bounds = array<i64: 1, 128>}, {pipeline_mode = #tpu.pipeline_mode<synchronous>, transform_indices = @transform_4, window_bounds = array<i64: 32, 128>}, {pipeline_mode = #tpu.pipeline_mode<synchronous>, transform_indices = @transform_5, window_bounds = array<i64: 64, 128>}, {pipeline_mode = #tpu.pipeline_mode<synchronous>, transform_indices = @transform_6, window_bounds = array<i64: 1, 128>}, {pipeline_mode = #tpu.pipeline_mode<synchronous>, transform_indices = @transform_7, window_bounds = array<i64: 8, 640>}, {pipeline_mode = #tpu.pipeline_mode<synchronous>, transform_indices = @transform_8, window_bounds = array<i64: 2, 8, 32>}, {pipeline_mode = #tpu.pipeline_mode<synchronous>, transform_indices = @transform_9, window_bounds = array<i64: 2, 8, 32>}]} {
    %c0 = arith.constant 0 : index
    %c0_0 = arith.constant 0 : index
    %0 = vector.load %arg2[%c0, %c0_0] : memref<160x16xf32, #tpu.memory_space<vmem>>, vector<160x16xf32>
    %c0_1 = arith.constant 0 : index
    %c0_2 = arith.constant 0 : index
    %1 = vector.load %arg3[%c0_1, %c0_2] : memref<16x128xf32, #tpu.memory_space<vmem>>, vector<16x128xf32>
    %cst = arith.constant dense<0.000000e+00> : vector<160x128xf32>
    %2 = tpu.matmul %0, %1, %cst {dimension_numbers = #tpu.dot_dimension_numbers<[1], [0], [0], [1], [0, 0, 1, 1], [], []>} : vector<160x16xf32>, vector<16x128xf32>, vector<160x128xf32> -> vector<160x128xf32>
    %c0_3 = arith.constant 0 : index
    %c0_4 = arith.constant 0 : index
    %3 = vector.load %arg4[%c0_3, %c0_4] : memref<1x128xf32, #tpu.memory_space<vmem>>, vector<1x128xf32>
    %4 = vector.broadcast %3 : vector<1x128xf32> to vector<160x128xf32>
    %5 = arith.addf %2, %4 : vector<160x128xf32>
    %c0_5 = arith.constant 0 : index
    %c0_6 = arith.constant 0 : index
    %6 = vector.load %arg11[%c0_5, %c0_6] : memref<160x128xf32, #tpu.memory_space<vmem>>, vector<160x128xf32>
    tpu.vector_store %arg11[%c0_5, %c0_6], %5 {strides = array<i32>} : memref<160x128xf32, #tpu.memory_space<vmem>>, vector<160x128xf32>,
    %c0_7 = arith.constant 0 : index
    %c0_8 = arith.constant 0 : index
    %7 = vector.load %arg1[%c0_7, %c0_8] : memref<8x1xi32, #tpu.memory_space<vmem>>, vector<8x1xi32>
    %c0_9 = arith.constant 0 : index
    %c0_10 = arith.constant 0 : index
    %8 = vector.load %arg5[%c0_9, %c0_10] : memref<32x128xf32, #tpu.memory_space<vmem>>, vector<32x128xf32>
    %c0_11 = arith.constant 0 : index
    %c0_12 = arith.constant 0 : index
    %9 = vector.load %arg6[%c0_11, %c0_12] : memref<64x128xf32, #tpu.memory_space<vmem>>, vector<64x128xf32>
    %c0_13 = arith.constant 0 : index
    %c0_14 = arith.constant 0 : index
    %10 = vector.load %arg7[%c0_13, %c0_14] : memref<1x128xf32, #tpu.memory_space<vmem>>, vector<1x128xf32>
    %cst_15 = arith.constant 0.000000e+00 : f32
    %11 = vector.broadcast %cst_15 : f32 to vector<8x32xf32>
    %cst_16 = arith.constant 0.000000e+00 : f32
    %12 = vector.broadcast %cst_16 : f32 to vector<8x32xf32>
    %cst_17 = arith.constant 0.000000e+00 : f32
    %13 = vector.broadcast %cst_17 : f32 to vector<8x32xf32>
    %cst_18 = arith.constant 0.000000e+00 : f32
    %14 = vector.broadcast %cst_18 : f32 to vector<8x32xf32>
    %c0_i32 = arith.constant 0 : i32
    %15 = vector.broadcast %c0_i32 : i32 to vector<8x1xi32>
    %16 = arith.cmpi sgt, %7, %15 : vector<8x1xi32>
    %c0_19 = arith.constant 0 : index
    %c0_20 = arith.constant 0 : index
    %17 = vector.load %arg11[%c0_19, %c0_20] : memref<160x128xf32, #tpu.memory_space<vmem>>, vector<8x128xf32>
    %cst_21 = arith.constant dense<0.000000e+00> : vector<8x128xf32>
    %18 = tpu.matmul %11, %8, %cst_21 {dimension_numbers = #tpu.dot_dimension_numbers<[1], [0], [0], [1], [0, 0, 1, 1], [], []>} : vector<8x32xf32>, vector<32x128xf32>, vector<8x128xf32> -> vector<8x128xf32>
    %19 = arith.addf %17, %18 : vector<8x128xf32>
    %20 = arith.negf %19 : vector<8x128xf32>
    %21 = math.exp %20 : vector<8x128xf32>
    %cst_22 = arith.constant 1.000000e+00 : f32
    %22 = vector.broadcast %cst_22 : f32 to vector<8x128xf32>
    %23 = arith.addf %22, %21 : vector<8x128xf32>
    %24 = arith.divf %22, %23 : vector<8x128xf32>
    %25 = math.tanh %19 : vector<8x128xf32>
    %26 = vector.extract_strided_slice %24 {offsets = [0, 0], sizes = [8, 32], strides = [1, 1]} : vector<8x128xf32> to vector<8x32xf32>
    %27 = vector.extract_strided_slice %24 {offsets = [0, 32], sizes = [8, 32], strides = [1, 1]} : vector<8x128xf32> to vector<8x32xf32>
    %28 = vector.extract_strided_slice %24 {offsets = [0, 64], sizes = [8, 32], strides = [1, 1]} : vector<8x128xf32> to vector<8x32xf32>
    %29 = vector.extract_strided_slice %25 {offsets = [0, 96], sizes = [8, 32], strides = [1, 1]} : vector<8x128xf32> to vector<8x32xf32>
    %30 = arith.mulf %27, %13 : vector<8x32xf32>
    %31 = arith.mulf %26, %29 : vector<8x32xf32>
    %32 = arith.addf %30, %31 : vector<8x32xf32>
    %33 = math.tanh %32 : vector<8x32xf32>
    %34 = arith.mulf %28, %33 : vector<8x32xf32>
    %35 = vector.shape_cast %16 : vector<8x1xi1> to vector<8x1xi1>
    %36 = vector.broadcast %35 : vector<8x1xi1> to vector<8x32xi1>
    %37 = arith.select %36, %34, %11 : vector<8x32xi1>, vector<8x32xf32>
    %38 = vector.shape_cast %16 : vector<8x1xi1> to vector<8x1xi1>
    %39 = vector.broadcast %38 : vector<8x1xi1> to vector<8x32xi1>
    %40 = arith.select %39, %32, %13 : vector<8x32xi1>, vector<8x32xf32>
    %41 = tpu.concatenate %34, %12 in 1 : vector<8x32xf32>, vector<8x32xf32> -> vector<8x64xf32>
    %cst_23 = arith.constant dense<0.000000e+00> : vector<8x128xf32>
    %42 = tpu.matmul %41, %9, %cst_23 {dimension_numbers = #tpu.dot_dimension_numbers<[1], [0], [0], [1], [0, 0, 1, 1], [], []>} : vector<8x64xf32>, vector<64x128xf32>, vector<8x128xf32> -> vector<8x128xf32>
    %43 = vector.broadcast %10 : vector<1x128xf32> to vector<8x128xf32>
    %44 = arith.addf %42, %43 : vector<8x128xf32>
    %45 = arith.negf %44 : vector<8x128xf32>
    %46 = math.exp %45 : vector<8x128xf32>
    %cst_24 = arith.constant 1.000000e+00 : f32
    %47 = vector.broadcast %cst_24 : f32 to vector<8x128xf32>
    %48 = arith.addf %47, %46 : vector<8x128xf32>
    %49 = arith.divf %47, %48 : vector<8x128xf32>
    %50 = math.tanh %44 : vector<8x128xf32>
    %51 = vector.extract_strided_slice %49 {offsets = [0, 0], sizes = [8, 32], strides = [1, 1]} : vector<8x128xf32> to vector<8x32xf32>
    %52 = vector.extract_strided_slice %49 {offsets = [0, 32], sizes = [8, 32], strides = [1, 1]} : vector<8x128xf32> to vector<8x32xf32>
    %53 = vector.extract_strided_slice %49 {offsets = [0, 64], sizes = [8, 32], strides = [1, 1]} : vector<8x128xf32> to vector<8x32xf32>
    %54 = vector.extract_strided_slice %50 {offsets = [0, 96], sizes = [8, 32], strides = [1, 1]} : vector<8x128xf32> to vector<8x32xf32>
    %55 = arith.mulf %52, %14 : vector<8x32xf32>
    %56 = arith.mulf %51, %54 : vector<8x32xf32>
    %57 = arith.addf %55, %56 : vector<8x32xf32>
    %58 = math.tanh %57 : vector<8x32xf32>
    %59 = arith.mulf %53, %58 : vector<8x32xf32>
    %60 = vector.shape_cast %16 : vector<8x1xi1> to vector<8x1xi1>
    %61 = vector.broadcast %60 : vector<8x1xi1> to vector<8x32xi1>
    %62 = arith.select %61, %59, %12 : vector<8x32xi1>, vector<8x32xf32>
    %63 = vector.shape_cast %16 : vector<8x1xi1> to vector<8x1xi1>
    %64 = vector.broadcast %63 : vector<8x1xi1> to vector<8x32xi1>
    %65 = arith.select %64, %57, %14 : vector<8x32xi1>, vector<8x32xf32>
    %cst_25 = arith.constant 0.000000e+00 : f32
    %66 = vector.shape_cast %16 : vector<8x1xi1> to vector<8x1xi1>
    %67 = vector.broadcast %66 : vector<8x1xi1> to vector<8x32xi1>
    %68 = vector.broadcast %cst_25 : f32 to vector<8x32xf32>
    %69 = arith.select %67, %59, %68 : vector<8x32xi1>, vector<8x32xf32>
    %c0_26 = arith.constant 0 : index
    %c0_27 = arith.constant 0 : index
    %70 = vector.load %arg8[%c0_26, %c0_27] : memref<8x640xf32, #tpu.memory_space<vmem>>, vector<8x32xf32>
    tpu.vector_store %arg8[%c0_26, %c0_27], %69 {strides = array<i32>} : memref<8x640xf32, #tpu.memory_space<vmem>>, vector<8x32xf32>,
    %c1_i32 = arith.constant 1 : i32
    %71 = vector.broadcast %c1_i32 : i32 to vector<8x1xi32>
    %72 = arith.cmpi sgt, %7, %71 : vector<8x1xi32>
    %c8 = arith.constant 8 : index
    %c0_28 = arith.constant 0 : index
    %73 = vector.load %arg11[%c8, %c0_28] : memref<160x128xf32, #tpu.memory_space<vmem>>, vector<8x128xf32>
    %cst_29 = arith.constant dense<0.000000e+00> : vector<8x128xf32>
    %74 = tpu.matmul %37, %8, %cst_29 {dimension_numbers = #tpu.dot_dimension_numbers<[1], [0], [0], [1], [0, 0, 1, 1], [], []>} : vector<8x32xf32>, vector<32x128xf32>, vector<8x128xf32> -> vector<8x128xf32>
    %75 = arith.addf %73, %74 : vector<8x128xf32>
    %76 = arith.negf %75 : vector<8x128xf32>
    %77 = math.exp %76 : vector<8x128xf32>
    %cst_30 = arith.constant 1.000000e+00 : f32
    %78 = vector.broadcast %cst_30 : f32 to vector<8x128xf32>
    %79 = arith.addf %78, %77 : vector<8x128xf32>
    %80 = arith.divf %78, %79 : vector<8x128xf32>
    %81 = math.tanh %75 : vector<8x128xf32>
    %82 = vector.extract_strided_slice %80 {offsets = [0, 0], sizes = [8, 32], strides = [1, 1]} : vector<8x128xf32> to vector<8x32xf32>
    %83 = vector.extract_strided_slice %80 {offsets = [0, 32], sizes = [8, 32], strides = [1, 1]} : vector<8x128xf32> to vector<8x32xf32>
    %84 = vector.extract_strided_slice %80 {offsets = [0, 64], sizes = [8, 32], strides = [1, 1]} : vector<8x128xf32> to vector<8x32xf32>
    %85 = vector.extract_strided_slice %81 {offsets = [0, 96], sizes = [8, 32], strides = [1, 1]} : vector<8x128xf32> to vector<8x32xf32>
    %86 = arith.mulf %83, %40 : vector<8x32xf32>
    %87 = arith.mulf %82, %85 : vector<8x32xf32>
    %88 = arith.addf %86, %87 : vector<8x32xf32>
    %89 = math.tanh %88 : vector<8x32xf32>
    %90 = arith.mulf %84, %89 : vector<8x32xf32>
    %91 = vector.shape_cast %72 : vector<8x1xi1> to vector<8x1xi1>
    %92 = vector.broadcast %91 : vector<8x1xi1> to vector<8x32xi1>
    %93 = arith.select %92, %90, %37 : vector<8x32xi1>, vector<8x32xf32>
    %94 = vector.shape_cast %72 : vector<8x1xi1> to vector<8x1xi1>
    %95 = vector.broadcast %94 : vector<8x1xi1> to vector<8x32xi1>
    %96 = arith.select %95, %88, %40 : vector<8x32xi1>, vector<8x32xf32>
    %97 = tpu.concatenate %90, %62 in 1 : vector<8x32xf32>, vector<8x32xf32> -> vector<8x64xf32>
    %cst_31 = arith.constant dense<0.000000e+00> : vector<8x128xf32>
    %98 = tpu.matmul %97, %9, %cst_31 {dimension_numbers = #tpu.dot_dimension_numbers<[1], [0], [0], [1], [0, 0, 1, 1], [], []>} : vector<8x64xf32>, vector<64x128xf32>, vector<8x128xf32> -> vector<8x128xf32>
    %99 = vector.broadcast %10 : vector<1x128xf32> to vector<8x128xf32>
    %100 = arith.addf %98, %99 : vector<8x128xf32>
    %101 = arith.negf %100 : vector<8x128xf32>
    %102 = math.exp %101 : vector<8x128xf32>
    %cst_32 = arith.constant 1.000000e+00 : f32
    %103 = vector.broadcast %cst_32 : f32 to vector<8x128xf32>
    %104 = arith.addf %103, %102 : vector<8x128xf32>
    %105 = arith.divf %103, %104 : vector<8x128xf32>
    %106 = math.tanh %100 : vector<8x128xf32>
    %107 = vector.extract_strided_slice %105 {offsets = [0, 0], sizes = [8, 32], strides = [1, 1]} : vector<8x128xf32> to vector<8x32xf32>
    %108 = vector.extract_strided_slice %105 {offsets = [0, 32], sizes = [8, 32], strides = [1, 1]} : vector<8x128xf32> to vector<8x32xf32>
    %109 = vector.extract_strided_slice %105 {offsets = [0, 64], sizes = [8, 32], strides = [1, 1]} : vector<8x128xf32> to vector<8x32xf32>
    %110 = vector.extract_strided_slice %106 {offsets = [0, 96], sizes = [8, 32], strides = [1, 1]} : vector<8x128xf32> to vector<8x32xf32>
    %111 = arith.mulf %108, %65 : vector<8x32xf32>
    %112 = arith.mulf %107, %110 : vector<8x32xf32>
    %113 = arith.addf %111, %112 : vector<8x32xf32>
    %114 = math.tanh %113 : vector<8x32xf32>
    %115 = arith.mulf %109, %114 : vector<8x32xf32>
    %116 = vector.shape_cast %72 : vector<8x1xi1> to vector<8x1xi1>
    %117 = vector.broadcast %116 : vector<8x1xi1> to vector<8x32xi1>
    %118 = arith.select %117, %115, %62 : vector<8x32xi1>, vector<8x32xf32>
    %119 = vector.shape_cast %72 : vector<8x1xi1> to vector<8x1xi1>
    %120 = vector.broadcast %119 : vector<8x1xi1> to vector<8x32xi1>
    %121 = arith.select %120, %113, %65 : vector<8x32xi1>, vector<8x32xf32>
    %cst_33 = arith.constant 0.000000e+00 : f32
    %122 = vector.shape_cast %72 : vector<8x1xi1> to vector<8x1xi1>
    %123 = vector.broadcast %122 : vector<8x1xi1> to vector<8x32xi1>
    %124 = vector.broadcast %cst_33 : f32 to vector<8x32xf32>
    %125 = arith.select %123, %115, %124 : vector<8x32xi1>, vector<8x32xf32>
    %c0_34 = arith.constant 0 : index
    %c32 = arith.constant 32 : index
    %126 = vector.load %arg8[%c0_34, %c32] : memref<8x640xf32, #tpu.memory_space<vmem>>, vector<8x32xf32>
    tpu.vector_store %arg8[%c0_34, %c32], %125 {strides = array<i32>} : memref<8x640xf32, #tpu.memory_space<vmem>>, vector<8x32xf32>,
    %c2_i32 = arith.constant 2 : i32
    %127 = vector.broadcast %c2_i32 : i32 to vector<8x1xi32>
    %128 = arith.cmpi sgt, %7, %127 : vector<8x1xi32>
    %c16 = arith.constant 16 : index
    %c0_35 = arith.constant 0 : index
    %129 = vector.load %arg11[%c16, %c0_35] : memref<160x128xf32, #tpu.memory_space<vmem>>, vector<8x128xf32>
    %cst_36 = arith.constant dense<0.000000e+00> : vector<8x128xf32>
    %130 = tpu.matmul %93, %8, %cst_36 {dimension_numbers = #tpu.dot_dimension_numbers<[1], [0], [0], [1], [0, 0, 1, 1], [], []>} : vector<8x32xf32>, vector<32x128xf32>, vector<8x128xf32> -> vector<8x128xf32>
    %131 = arith.addf %129, %130 : vector<8x128xf32>
    %132 = arith.negf %131 : vector<8x128xf32>
    %133 = math.exp %132 : vector<8x128xf32>
    %cst_37 = arith.constant 1.000000e+00 : f32
    %134 = vector.broadcast %cst_37 : f32 to vector<8x128xf32>
    %135 = arith.addf %134, %133 : vector<8x128xf32>
    %136 = arith.divf %134, %135 : vector<8x128xf32>
    %137 = math.tanh %131 : vector<8x128xf32>
    %138 = vector.extract_strided_slice %136 {offsets = [0, 0], sizes = [8, 32], strides = [1, 1]} : vector<8x128xf32> to vector<8x32xf32>
    %139 = vector.extract_strided_slice %136 {offsets = [0, 32], sizes = [8, 32], strides = [1, 1]} : vector<8x128xf32> to vector<8x32xf32>
    %140 = vector.extract_strided_slice %136 {offsets = [0, 64], sizes = [8, 32], strides = [1, 1]} : vector<8x128xf32> to vector<8x32xf32>
    %141 = vector.extract_strided_slice %137 {offsets = [0, 96], sizes = [8, 32], strides = [1, 1]} : vector<8x128xf32> to vector<8x32xf32>
    %142 = arith.mulf %139, %96 : vector<8x32xf32>
    %143 = arith.mulf %138, %141 : vector<8x32xf32>
    %144 = arith.addf %142, %143 : vector<8x32xf32>
    %145 = math.tanh %144 : vector<8x32xf32>
    %146 = arith.mulf %140, %145 : vector<8x32xf32>
    %147 = vector.shape_cast %128 : vector<8x1xi1> to vector<8x1xi1>
    %148 = vector.broadcast %147 : vector<8x1xi1> to vector<8x32xi1>
    %149 = arith.select %148, %146, %93 : vector<8x32xi1>, vector<8x32xf32>
    %150 = vector.shape_cast %128 : vector<8x1xi1> to vector<8x1xi1>
    %151 = vector.broadcast %150 : vector<8x1xi1> to vector<8x32xi1>
    %152 = arith.select %151, %144, %96 : vector<8x32xi1>, vector<8x32xf32>
    %153 = tpu.concatenate %146, %118 in 1 : vector<8x32xf32>, vector<8x32xf32> -> vector<8x64xf32>
    %cst_38 = arith.constant dense<0.000000e+00> : vector<8x128xf32>
    %154 = tpu.matmul %153, %9, %cst_38 {dimension_numbers = #tpu.dot_dimension_numbers<[1], [0], [0], [1], [0, 0, 1, 1], [], []>} : vector<8x64xf32>, vector<64x128xf32>, vector<8x128xf32> -> vector<8x128xf32>
    %155 = vector.broadcast %10 : vector<1x128xf32> to vector<8x128xf32>
    %156 = arith.addf %154, %155 : vector<8x128xf32>
    %157 = arith.negf %156 : vector<8x128xf32>
    %158 = math.exp %157 : vector<8x128xf32>
    %cst_39 = arith.constant 1.000000e+00 : f32
    %159 = vector.broadcast %cst_39 : f32 to vector<8x128xf32>
    %160 = arith.addf %159, %158 : vector<8x128xf32>
    %161 = arith.divf %159, %160 : vector<8x128xf32>
    %162 = math.tanh %156 : vector<8x128xf32>
    %163 = vector.extract_strided_slice %161 {offsets = [0, 0], sizes = [8, 32], strides = [1, 1]} : vector<8x128xf32> to vector<8x32xf32>
    %164 = vector.extract_strided_slice %161 {offsets = [0, 32], sizes = [8, 32], strides = [1, 1]} : vector<8x128xf32> to vector<8x32xf32>
    %165 = vector.extract_strided_slice %161 {offsets = [0, 64], sizes = [8, 32], strides = [1, 1]} : vector<8x128xf32> to vector<8x32xf32>
    %166 = vector.extract_strided_slice %162 {offsets = [0, 96], sizes = [8, 32], strides = [1, 1]} : vector<8x128xf32> to vector<8x32xf32>
    %167 = arith.mulf %164, %121 : vector<8x32xf32>
    %168 = arith.mulf %163, %166 : vector<8x32xf32>
    %169 = arith.addf %167, %168 : vector<8x32xf32>
    %170 = math.tanh %169 : vector<8x32xf32>
    %171 = arith.mulf %165, %170 : vector<8x32xf32>
    %172 = vector.shape_cast %128 : vector<8x1xi1> to vector<8x1xi1>
    %173 = vector.broadcast %172 : vector<8x1xi1> to vector<8x32xi1>
    %174 = arith.select %173, %171, %118 : vector<8x32xi1>, vector<8x32xf32>
    %175 = vector.shape_cast %128 : vector<8x1xi1> to vector<8x1xi1>
    %176 = vector.broadcast %175 : vector<8x1xi1> to vector<8x32xi1>
    %177 = arith.select %176, %169, %121 : vector<8x32xi1>, vector<8x32xf32>
    %cst_40 = arith.constant 0.000000e+00 : f32
    %178 = vector.shape_cast %128 : vector<8x1xi1> to vector<8x1xi1>
    %179 = vector.broadcast %178 : vector<8x1xi1> to vector<8x32xi1>
    %180 = vector.broadcast %cst_40 : f32 to vector<8x32xf32>
    %181 = arith.select %179, %171, %180 : vector<8x32xi1>, vector<8x32xf32>
    %c0_41 = arith.constant 0 : index
    %c64 = arith.constant 64 : index
    %182 = vector.load %arg8[%c0_41, %c64] : memref<8x640xf32, #tpu.memory_space<vmem>>, vector<8x32xf32>
    tpu.vector_store %arg8[%c0_41, %c64], %181 {strides = array<i32>} : memref<8x640xf32, #tpu.memory_space<vmem>>, vector<8x32xf32>,
    %c3_i32 = arith.constant 3 : i32
    %183 = vector.broadcast %c3_i32 : i32 to vector<8x1xi32>
    %184 = arith.cmpi sgt, %7, %183 : vector<8x1xi32>
    %c24 = arith.constant 24 : index
    %c0_42 = arith.constant 0 : index
    %185 = vector.load %arg11[%c24, %c0_42] : memref<160x128xf32, #tpu.memory_space<vmem>>, vector<8x128xf32>
    %cst_43 = arith.constant dense<0.000000e+00> : vector<8x128xf32>
    %186 = tpu.matmul %149, %8, %cst_43 {dimension_numbers = #tpu.dot_dimension_numbers<[1], [0], [0], [1], [0, 0, 1, 1], [], []>} : vector<8x32xf32>, vector<32x128xf32>, vector<8x128xf32> -> vector<8x128xf32>
    %187 = arith.addf %185, %186 : vector<8x128xf32>
    %188 = arith.negf %187 : vector<8x128xf32>
    %189 = math.exp %188 : vector<8x128xf32>
    %cst_44 = arith.constant 1.000000e+00 : f32
    %190 = vector.broadcast %cst_44 : f32 to vector<8x128xf32>
    %191 = arith.addf %190, %189 : vector<8x128xf32>
    %192 = arith.divf %190, %191 : vector<8x128xf32>
    %193 = math.tanh %187 : vector<8x128xf32>
    %194 = vector.extract_strided_slice %192 {offsets = [0, 0], sizes = [8, 32], strides = [1, 1]} : vector<8x128xf32> to vector<8x32xf32>
    %195 = vector.extract_strided_slice %192 {offsets = [0, 32], sizes = [8, 32], strides = [1, 1]} : vector<8x128xf32> to vector<8x32xf32>
    %196 = vector.extract_strided_slice %192 {offsets = [0, 64], sizes = [8, 32], strides = [1, 1]} : vector<8x128xf32> to vector<8x32xf32>
    %197 = vector.extract_strided_slice %193 {offsets = [0, 96], sizes = [8, 32], strides = [1, 1]} : vector<8x128xf32> to vector<8x32xf32>
    %198 = arith.mulf %195, %152 : vector<8x32xf32>
    %199 = arith.mulf %194, %197 : vector<8x32xf32>
    %200 = arith.addf %198, %199 : vector<8x32xf32>
    %201 = math.tanh %200 : vector<8x32xf32>
    %202 = arith.mulf %196, %201 : vector<8x32xf32>
    %203 = vector.shape_cast %184 : vector<8x1xi1> to vector<8x1xi1>
    %204 = vector.broadcast %203 : vector<8x1xi1> to vector<8x32xi1>
    %205 = arith.select %204, %202, %149 : vector<8x32xi1>, vector<8x32xf32>
    %206 = vector.shape_cast %184 : vector<8x1xi1> to vector<8x1xi1>
    %207 = vector.broadcast %206 : vector<8x1xi1> to vector<8x32xi1>
    %208 = arith.select %207, %200, %152 : vector<8x32xi1>, vector<8x32xf32>
    %209 = tpu.concatenate %202, %174 in 1 : vector<8x32xf32>, vector<8x32xf32> -> vector<8x64xf32>
    %cst_45 = arith.constant dense<0.000000e+00> : vector<8x128xf32>
    %210 = tpu.matmul %209, %9, %cst_45 {dimension_numbers = #tpu.dot_dimension_numbers<[1], [0], [0], [1], [0, 0, 1, 1], [], []>} : vector<8x64xf32>, vector<64x128xf32>, vector<8x128xf32> -> vector<8x128xf32>
    %211 = vector.broadcast %10 : vector<1x128xf32> to vector<8x128xf32>
    %212 = arith.addf %210, %211 : vector<8x128xf32>
    %213 = arith.negf %212 : vector<8x128xf32>
    %214 = math.exp %213 : vector<8x128xf32>
    %cst_46 = arith.constant 1.000000e+00 : f32
    %215 = vector.broadcast %cst_46 : f32 to vector<8x128xf32>
    %216 = arith.addf %215, %214 : vector<8x128xf32>
    %217 = arith.divf %215, %216 : vector<8x128xf32>
    %218 = math.tanh %212 : vector<8x128xf32>
    %219 = vector.extract_strided_slice %217 {offsets = [0, 0], sizes = [8, 32], strides = [1, 1]} : vector<8x128xf32> to vector<8x32xf32>
    %220 = vector.extract_strided_slice %217 {offsets = [0, 32], sizes = [8, 32], strides = [1, 1]} : vector<8x128xf32> to vector<8x32xf32>
    %221 = vector.extract_strided_slice %217 {offsets = [0, 64], sizes = [8, 32], strides = [1, 1]} : vector<8x128xf32> to vector<8x32xf32>
    %222 = vector.extract_strided_slice %218 {offsets = [0, 96], sizes = [8, 32], strides = [1, 1]} : vector<8x128xf32> to vector<8x32xf32>
    %223 = arith.mulf %220, %177 : vector<8x32xf32>
    %224 = arith.mulf %219, %222 : vector<8x32xf32>
    %225 = arith.addf %223, %224 : vector<8x32xf32>
    %226 = math.tanh %225 : vector<8x32xf32>
    %227 = arith.mulf %221, %226 : vector<8x32xf32>
    %228 = vector.shape_cast %184 : vector<8x1xi1> to vector<8x1xi1>
    %229 = vector.broadcast %228 : vector<8x1xi1> to vector<8x32xi1>
    %230 = arith.select %229, %227, %174 : vector<8x32xi1>, vector<8x32xf32>
    %231 = vector.shape_cast %184 : vector<8x1xi1> to vector<8x1xi1>
    %232 = vector.broadcast %231 : vector<8x1xi1> to vector<8x32xi1>
    %233 = arith.select %232, %225, %177 : vector<8x32xi1>, vector<8x32xf32>
    %cst_47 = arith.constant 0.000000e+00 : f32
    %234 = vector.shape_cast %184 : vector<8x1xi1> to vector<8x1xi1>
    %235 = vector.broadcast %234 : vector<8x1xi1> to vector<8x32xi1>
    %236 = vector.broadcast %cst_47 : f32 to vector<8x32xf32>
    %237 = arith.select %235, %227, %236 : vector<8x32xi1>, vector<8x32xf32>
    %c0_48 = arith.constant 0 : index
    %c96 = arith.constant 96 : index
    %238 = vector.load %arg8[%c0_48, %c96] : memref<8x640xf32, #tpu.memory_space<vmem>>, vector<8x32xf32>
    tpu.vector_store %arg8[%c0_48, %c96], %237 {strides = array<i32>} : memref<8x640xf32, #tpu.memory_space<vmem>>, vector<8x32xf32>,
    %c4_i32 = arith.constant 4 : i32
    %239 = vector.broadcast %c4_i32 : i32 to vector<8x1xi32>
    %240 = arith.cmpi sgt, %7, %239 : vector<8x1xi32>
    %c32_49 = arith.constant 32 : index
    %c0_50 = arith.constant 0 : index
    %241 = vector.load %arg11[%c32_49, %c0_50] : memref<160x128xf32, #tpu.memory_space<vmem>>, vector<8x128xf32>
    %cst_51 = arith.constant dense<0.000000e+00> : vector<8x128xf32>
    %242 = tpu.matmul %205, %8, %cst_51 {dimension_numbers = #tpu.dot_dimension_numbers<[1], [0], [0], [1], [0, 0, 1, 1], [], []>} : vector<8x32xf32>, vector<32x128xf32>, vector<8x128xf32> -> vector<8x128xf32>
    %243 = arith.addf %241, %242 : vector<8x128xf32>
    %244 = arith.negf %243 : vector<8x128xf32>
    %245 = math.exp %244 : vector<8x128xf32>
    %cst_52 = arith.constant 1.000000e+00 : f32
    %246 = vector.broadcast %cst_52 : f32 to vector<8x128xf32>
    %247 = arith.addf %246, %245 : vector<8x128xf32>
    %248 = arith.divf %246, %247 : vector<8x128xf32>
    %249 = math.tanh %243 : vector<8x128xf32>
    %250 = vector.extract_strided_slice %248 {offsets = [0, 0], sizes = [8, 32], strides = [1, 1]} : vector<8x128xf32> to vector<8x32xf32>
    %251 = vector.extract_strided_slice %248 {offsets = [0, 32], sizes = [8, 32], strides = [1, 1]} : vector<8x128xf32> to vector<8x32xf32>
    %252 = vector.extract_strided_slice %248 {offsets = [0, 64], sizes = [8, 32], strides = [1, 1]} : vector<8x128xf32> to vector<8x32xf32>
    %253 = vector.extract_strided_slice %249 {offsets = [0, 96], sizes = [8, 32], strides = [1, 1]} : vector<8x128xf32> to vector<8x32xf32>
    %254 = arith.mulf %251, %208 : vector<8x32xf32>
    %255 = arith.mulf %250, %253 : vector<8x32xf32>
    %256 = arith.addf %254, %255 : vector<8x32xf32>
    %257 = math.tanh %256 : vector<8x32xf32>
    %258 = arith.mulf %252, %257 : vector<8x32xf32>
    %259 = vector.shape_cast %240 : vector<8x1xi1> to vector<8x1xi1>
    %260 = vector.broadcast %259 : vector<8x1xi1> to vector<8x32xi1>
    %261 = arith.select %260, %258, %205 : vector<8x32xi1>, vector<8x32xf32>
    %262 = vector.shape_cast %240 : vector<8x1xi1> to vector<8x1xi1>
    %263 = vector.broadcast %262 : vector<8x1xi1> to vector<8x32xi1>
    %264 = arith.select %263, %256, %208 : vector<8x32xi1>, vector<8x32xf32>
    %265 = tpu.concatenate %258, %230 in 1 : vector<8x32xf32>, vector<8x32xf32> -> vector<8x64xf32>
    %cst_53 = arith.constant dense<0.000000e+00> : vector<8x128xf32>
    %266 = tpu.matmul %265, %9, %cst_53 {dimension_numbers = #tpu.dot_dimension_numbers<[1], [0], [0], [1], [0, 0, 1, 1], [], []>} : vector<8x64xf32>, vector<64x128xf32>, vector<8x128xf32> -> vector<8x128xf32>
    %267 = vector.broadcast %10 : vector<1x128xf32> to vector<8x128xf32>
    %268 = arith.addf %266, %267 : vector<8x128xf32>
    %269 = arith.negf %268 : vector<8x128xf32>
    %270 = math.exp %269 : vector<8x128xf32>
    %cst_54 = arith.constant 1.000000e+00 : f32
    %271 = vector.broadcast %cst_54 : f32 to vector<8x128xf32>
    %272 = arith.addf %271, %270 : vector<8x128xf32>
    %273 = arith.divf %271, %272 : vector<8x128xf32>
    %274 = math.tanh %268 : vector<8x128xf32>
    %275 = vector.extract_strided_slice %273 {offsets = [0, 0], sizes = [8, 32], strides = [1, 1]} : vector<8x128xf32> to vector<8x32xf32>
    %276 = vector.extract_strided_slice %273 {offsets = [0, 32], sizes = [8, 32], strides = [1, 1]} : vector<8x128xf32> to vector<8x32xf32>
    %277 = vector.extract_strided_slice %273 {offsets = [0, 64], sizes = [8, 32], strides = [1, 1]} : vector<8x128xf32> to vector<8x32xf32>
    %278 = vector.extract_strided_slice %274 {offsets = [0, 96], sizes = [8, 32], strides = [1, 1]} : vector<8x128xf32> to vector<8x32xf32>
    %279 = arith.mulf %276, %233 : vector<8x32xf32>
    %280 = arith.mulf %275, %278 : vector<8x32xf32>
    %281 = arith.addf %279, %280 : vector<8x32xf32>
    %282 = math.tanh %281 : vector<8x32xf32>
    %283 = arith.mulf %277, %282 : vector<8x32xf32>
    %284 = vector.shape_cast %240 : vector<8x1xi1> to vector<8x1xi1>
    %285 = vector.broadcast %284 : vector<8x1xi1> to vector<8x32xi1>
    %286 = arith.select %285, %283, %230 : vector<8x32xi1>, vector<8x32xf32>
    %287 = vector.shape_cast %240 : vector<8x1xi1> to vector<8x1xi1>
    %288 = vector.broadcast %287 : vector<8x1xi1> to vector<8x32xi1>
    %289 = arith.select %288, %281, %233 : vector<8x32xi1>, vector<8x32xf32>
    %cst_55 = arith.constant 0.000000e+00 : f32
    %290 = vector.shape_cast %240 : vector<8x1xi1> to vector<8x1xi1>
    %291 = vector.broadcast %290 : vector<8x1xi1> to vector<8x32xi1>
    %292 = vector.broadcast %cst_55 : f32 to vector<8x32xf32>
    %293 = arith.select %291, %283, %292 : vector<8x32xi1>, vector<8x32xf32>
    %c0_56 = arith.constant 0 : index
    %c128 = arith.constant 128 : index
    %294 = vector.load %arg8[%c0_56, %c128] : memref<8x640xf32, #tpu.memory_space<vmem>>, vector<8x32xf32>
    tpu.vector_store %arg8[%c0_56, %c128], %293 {strides = array<i32>} : memref<8x640xf32, #tpu.memory_space<vmem>>, vector<8x32xf32>,
    %c5_i32 = arith.constant 5 : i32
    %295 = vector.broadcast %c5_i32 : i32 to vector<8x1xi32>
    %296 = arith.cmpi sgt, %7, %295 : vector<8x1xi32>
    %c40 = arith.constant 40 : index
    %c0_57 = arith.constant 0 : index
    %297 = vector.load %arg11[%c40, %c0_57] : memref<160x128xf32, #tpu.memory_space<vmem>>, vector<8x128xf32>
    %cst_58 = arith.constant dense<0.000000e+00> : vector<8x128xf32>
    %298 = tpu.matmul %261, %8, %cst_58 {dimension_numbers = #tpu.dot_dimension_numbers<[1], [0], [0], [1], [0, 0, 1, 1], [], []>} : vector<8x32xf32>, vector<32x128xf32>, vector<8x128xf32> -> vector<8x128xf32>
    %299 = arith.addf %297, %298 : vector<8x128xf32>
    %300 = arith.negf %299 : vector<8x128xf32>
    %301 = math.exp %300 : vector<8x128xf32>
    %cst_59 = arith.constant 1.000000e+00 : f32
    %302 = vector.broadcast %cst_59 : f32 to vector<8x128xf32>
    %303 = arith.addf %302, %301 : vector<8x128xf32>
    %304 = arith.divf %302, %303 : vector<8x128xf32>
    %305 = math.tanh %299 : vector<8x128xf32>
    %306 = vector.extract_strided_slice %304 {offsets = [0, 0], sizes = [8, 32], strides = [1, 1]} : vector<8x128xf32> to vector<8x32xf32>
    %307 = vector.extract_strided_slice %304 {offsets = [0, 32], sizes = [8, 32], strides = [1, 1]} : vector<8x128xf32> to vector<8x32xf32>
    %308 = vector.extract_strided_slice %304 {offsets = [0, 64], sizes = [8, 32], strides = [1, 1]} : vector<8x128xf32> to vector<8x32xf32>
    %309 = vector.extract_strided_slice %305 {offsets = [0, 96], sizes = [8, 32], strides = [1, 1]} : vector<8x128xf32> to vector<8x32xf32>
    %310 = arith.mulf %307, %264 : vector<8x32xf32>
    %311 = arith.mulf %306, %309 : vector<8x32xf32>
    %312 = arith.addf %310, %311 : vector<8x32xf32>
    %313 = math.tanh %312 : vector<8x32xf32>
    %314 = arith.mulf %308, %313 : vector<8x32xf32>
    %315 = vector.shape_cast %296 : vector<8x1xi1> to vector<8x1xi1>
    %316 = vector.broadcast %315 : vector<8x1xi1> to vector<8x32xi1>
    %317 = arith.select %316, %314, %261 : vector<8x32xi1>, vector<8x32xf32>
    %318 = vector.shape_cast %296 : vector<8x1xi1> to vector<8x1xi1>
    %319 = vector.broadcast %318 : vector<8x1xi1> to vector<8x32xi1>
    %320 = arith.select %319, %312, %264 : vector<8x32xi1>, vector<8x32xf32>
    %321 = tpu.concatenate %314, %286 in 1 : vector<8x32xf32>, vector<8x32xf32> -> vector<8x64xf32>
    %cst_60 = arith.constant dense<0.000000e+00> : vector<8x128xf32>
    %322 = tpu.matmul %321, %9, %cst_60 {dimension_numbers = #tpu.dot_dimension_numbers<[1], [0], [0], [1], [0, 0, 1, 1], [], []>} : vector<8x64xf32>, vector<64x128xf32>, vector<8x128xf32> -> vector<8x128xf32>
    %323 = vector.broadcast %10 : vector<1x128xf32> to vector<8x128xf32>
    %324 = arith.addf %322, %323 : vector<8x128xf32>
    %325 = arith.negf %324 : vector<8x128xf32>
    %326 = math.exp %325 : vector<8x128xf32>
    %cst_61 = arith.constant 1.000000e+00 : f32
    %327 = vector.broadcast %cst_61 : f32 to vector<8x128xf32>
    %328 = arith.addf %327, %326 : vector<8x128xf32>
    %329 = arith.divf %327, %328 : vector<8x128xf32>
    %330 = math.tanh %324 : vector<8x128xf32>
    %331 = vector.extract_strided_slice %329 {offsets = [0, 0], sizes = [8, 32], strides = [1, 1]} : vector<8x128xf32> to vector<8x32xf32>
    %332 = vector.extract_strided_slice %329 {offsets = [0, 32], sizes = [8, 32], strides = [1, 1]} : vector<8x128xf32> to vector<8x32xf32>
    %333 = vector.extract_strided_slice %329 {offsets = [0, 64], sizes = [8, 32], strides = [1, 1]} : vector<8x128xf32> to vector<8x32xf32>
    %334 = vector.extract_strided_slice %330 {offsets = [0, 96], sizes = [8, 32], strides = [1, 1]} : vector<8x128xf32> to vector<8x32xf32>
    %335 = arith.mulf %332, %289 : vector<8x32xf32>
    %336 = arith.mulf %331, %334 : vector<8x32xf32>
    %337 = arith.addf %335, %336 : vector<8x32xf32>
    %338 = math.tanh %337 : vector<8x32xf32>
    %339 = arith.mulf %333, %338 : vector<8x32xf32>
    %340 = vector.shape_cast %296 : vector<8x1xi1> to vector<8x1xi1>
    %341 = vector.broadcast %340 : vector<8x1xi1> to vector<8x32xi1>
    %342 = arith.select %341, %339, %286 : vector<8x32xi1>, vector<8x32xf32>
    %343 = vector.shape_cast %296 : vector<8x1xi1> to vector<8x1xi1>
    %344 = vector.broadcast %343 : vector<8x1xi1> to vector<8x32xi1>
    %345 = arith.select %344, %337, %289 : vector<8x32xi1>, vector<8x32xf32>
    %cst_62 = arith.constant 0.000000e+00 : f32
    %346 = vector.shape_cast %296 : vector<8x1xi1> to vector<8x1xi1>
    %347 = vector.broadcast %346 : vector<8x1xi1> to vector<8x32xi1>
    %348 = vector.broadcast %cst_62 : f32 to vector<8x32xf32>
    %349 = arith.select %347, %339, %348 : vector<8x32xi1>, vector<8x32xf32>
    %c0_63 = arith.constant 0 : index
    %c160 = arith.constant 160 : index
    %350 = vector.load %arg8[%c0_63, %c160] : memref<8x640xf32, #tpu.memory_space<vmem>>, vector<8x32xf32>
    tpu.vector_store %arg8[%c0_63, %c160], %349 {strides = array<i32>} : memref<8x640xf32, #tpu.memory_space<vmem>>, vector<8x32xf32>,
    %c6_i32 = arith.constant 6 : i32
    %351 = vector.broadcast %c6_i32 : i32 to vector<8x1xi32>
    %352 = arith.cmpi sgt, %7, %351 : vector<8x1xi32>
    %c48 = arith.constant 48 : index
    %c0_64 = arith.constant 0 : index
    %353 = vector.load %arg11[%c48, %c0_64] : memref<160x128xf32, #tpu.memory_space<vmem>>, vector<8x128xf32>
    %cst_65 = arith.constant dense<0.000000e+00> : vector<8x128xf32>
    %354 = tpu.matmul %317, %8, %cst_65 {dimension_numbers = #tpu.dot_dimension_numbers<[1], [0], [0], [1], [0, 0, 1, 1], [], []>} : vector<8x32xf32>, vector<32x128xf32>, vector<8x128xf32> -> vector<8x128xf32>
    %355 = arith.addf %353, %354 : vector<8x128xf32>
    %356 = arith.negf %355 : vector<8x128xf32>
    %357 = math.exp %356 : vector<8x128xf32>
    %cst_66 = arith.constant 1.000000e+00 : f32
    %358 = vector.broadcast %cst_66 : f32 to vector<8x128xf32>
    %359 = arith.addf %358, %357 : vector<8x128xf32>
    %360 = arith.divf %358, %359 : vector<8x128xf32>
    %361 = math.tanh %355 : vector<8x128xf32>
    %362 = vector.extract_strided_slice %360 {offsets = [0, 0], sizes = [8, 32], strides = [1, 1]} : vector<8x128xf32> to vector<8x32xf32>
    %363 = vector.extract_strided_slice %360 {offsets = [0, 32], sizes = [8, 32], strides = [1, 1]} : vector<8x128xf32> to vector<8x32xf32>
    %364 = vector.extract_strided_slice %360 {offsets = [0, 64], sizes = [8, 32], strides = [1, 1]} : vector<8x128xf32> to vector<8x32xf32>
    %365 = vector.extract_strided_slice %361 {offsets = [0, 96], sizes = [8, 32], strides = [1, 1]} : vector<8x128xf32> to vector<8x32xf32>
    %366 = arith.mulf %363, %320 : vector<8x32xf32>
    %367 = arith.mulf %362, %365 : vector<8x32xf32>
    %368 = arith.addf %366, %367 : vector<8x32xf32>
    %369 = math.tanh %368 : vector<8x32xf32>
    %370 = arith.mulf %364, %369 : vector<8x32xf32>
    %371 = vector.shape_cast %352 : vector<8x1xi1> to vector<8x1xi1>
    %372 = vector.broadcast %371 : vector<8x1xi1> to vector<8x32xi1>
    %373 = arith.select %372, %370, %317 : vector<8x32xi1>, vector<8x32xf32>
    %374 = vector.shape_cast %352 : vector<8x1xi1> to vector<8x1xi1>
    %375 = vector.broadcast %374 : vector<8x1xi1> to vector<8x32xi1>
    %376 = arith.select %375, %368, %320 : vector<8x32xi1>, vector<8x32xf32>
    %377 = tpu.concatenate %370, %342 in 1 : vector<8x32xf32>, vector<8x32xf32> -> vector<8x64xf32>
    %cst_67 = arith.constant dense<0.000000e+00> : vector<8x128xf32>
    %378 = tpu.matmul %377, %9, %cst_67 {dimension_numbers = #tpu.dot_dimension_numbers<[1], [0], [0], [1], [0, 0, 1, 1], [], []>} : vector<8x64xf32>, vector<64x128xf32>, vector<8x128xf32> -> vector<8x128xf32>
    %379 = vector.broadcast %10 : vector<1x128xf32> to vector<8x128xf32>
    %380 = arith.addf %378, %379 : vector<8x128xf32>
    %381 = arith.negf %380 : vector<8x128xf32>
    %382 = math.exp %381 : vector<8x128xf32>
    %cst_68 = arith.constant 1.000000e+00 : f32
    %383 = vector.broadcast %cst_68 : f32 to vector<8x128xf32>
    %384 = arith.addf %383, %382 : vector<8x128xf32>
    %385 = arith.divf %383, %384 : vector<8x128xf32>
    %386 = math.tanh %380 : vector<8x128xf32>
    %387 = vector.extract_strided_slice %385 {offsets = [0, 0], sizes = [8, 32], strides = [1, 1]} : vector<8x128xf32> to vector<8x32xf32>
    %388 = vector.extract_strided_slice %385 {offsets = [0, 32], sizes = [8, 32], strides = [1, 1]} : vector<8x128xf32> to vector<8x32xf32>
    %389 = vector.extract_strided_slice %385 {offsets = [0, 64], sizes = [8, 32], strides = [1, 1]} : vector<8x128xf32> to vector<8x32xf32>
    %390 = vector.extract_strided_slice %386 {offsets = [0, 96], sizes = [8, 32], strides = [1, 1]} : vector<8x128xf32> to vector<8x32xf32>
    %391 = arith.mulf %388, %345 : vector<8x32xf32>
    %392 = arith.mulf %387, %390 : vector<8x32xf32>
    %393 = arith.addf %391, %392 : vector<8x32xf32>
    %394 = math.tanh %393 : vector<8x32xf32>
    %395 = arith.mulf %389, %394 : vector<8x32xf32>
    %396 = vector.shape_cast %352 : vector<8x1xi1> to vector<8x1xi1>
    %397 = vector.broadcast %396 : vector<8x1xi1> to vector<8x32xi1>
    %398 = arith.select %397, %395, %342 : vector<8x32xi1>, vector<8x32xf32>
    %399 = vector.shape_cast %352 : vector<8x1xi1> to vector<8x1xi1>
    %400 = vector.broadcast %399 : vector<8x1xi1> to vector<8x32xi1>
    %401 = arith.select %400, %393, %345 : vector<8x32xi1>, vector<8x32xf32>
    %cst_69 = arith.constant 0.000000e+00 : f32
    %402 = vector.shape_cast %352 : vector<8x1xi1> to vector<8x1xi1>
    %403 = vector.broadcast %402 : vector<8x1xi1> to vector<8x32xi1>
    %404 = vector.broadcast %cst_69 : f32 to vector<8x32xf32>
    %405 = arith.select %403, %395, %404 : vector<8x32xi1>, vector<8x32xf32>
    %c0_70 = arith.constant 0 : index
    %c192 = arith.constant 192 : index
    %406 = vector.load %arg8[%c0_70, %c192] : memref<8x640xf32, #tpu.memory_space<vmem>>, vector<8x32xf32>
    tpu.vector_store %arg8[%c0_70, %c192], %405 {strides = array<i32>} : memref<8x640xf32, #tpu.memory_space<vmem>>, vector<8x32xf32>,
    %c7_i32 = arith.constant 7 : i32
    %407 = vector.broadcast %c7_i32 : i32 to vector<8x1xi32>
    %408 = arith.cmpi sgt, %7, %407 : vector<8x1xi32>
    %c56 = arith.constant 56 : index
    %c0_71 = arith.constant 0 : index
    %409 = vector.load %arg11[%c56, %c0_71] : memref<160x128xf32, #tpu.memory_space<vmem>>, vector<8x128xf32>
    %cst_72 = arith.constant dense<0.000000e+00> : vector<8x128xf32>
    %410 = tpu.matmul %373, %8, %cst_72 {dimension_numbers = #tpu.dot_dimension_numbers<[1], [0], [0], [1], [0, 0, 1, 1], [], []>} : vector<8x32xf32>, vector<32x128xf32>, vector<8x128xf32> -> vector<8x128xf32>
    %411 = arith.addf %409, %410 : vector<8x128xf32>
    %412 = arith.negf %411 : vector<8x128xf32>
    %413 = math.exp %412 : vector<8x128xf32>
    %cst_73 = arith.constant 1.000000e+00 : f32
    %414 = vector.broadcast %cst_73 : f32 to vector<8x128xf32>
    %415 = arith.addf %414, %413 : vector<8x128xf32>
    %416 = arith.divf %414, %415 : vector<8x128xf32>
    %417 = math.tanh %411 : vector<8x128xf32>
    %418 = vector.extract_strided_slice %416 {offsets = [0, 0], sizes = [8, 32], strides = [1, 1]} : vector<8x128xf32> to vector<8x32xf32>
    %419 = vector.extract_strided_slice %416 {offsets = [0, 32], sizes = [8, 32], strides = [1, 1]} : vector<8x128xf32> to vector<8x32xf32>
    %420 = vector.extract_strided_slice %416 {offsets = [0, 64], sizes = [8, 32], strides = [1, 1]} : vector<8x128xf32> to vector<8x32xf32>
    %421 = vector.extract_strided_slice %417 {offsets = [0, 96], sizes = [8, 32], strides = [1, 1]} : vector<8x128xf32> to vector<8x32xf32>
    %422 = arith.mulf %419, %376 : vector<8x32xf32>
    %423 = arith.mulf %418, %421 : vector<8x32xf32>
    %424 = arith.addf %422, %423 : vector<8x32xf32>
    %425 = math.tanh %424 : vector<8x32xf32>
    %426 = arith.mulf %420, %425 : vector<8x32xf32>
    %427 = vector.shape_cast %408 : vector<8x1xi1> to vector<8x1xi1>
    %428 = vector.broadcast %427 : vector<8x1xi1> to vector<8x32xi1>
    %429 = arith.select %428, %426, %373 : vector<8x32xi1>, vector<8x32xf32>
    %430 = vector.shape_cast %408 : vector<8x1xi1> to vector<8x1xi1>
    %431 = vector.broadcast %430 : vector<8x1xi1> to vector<8x32xi1>
    %432 = arith.select %431, %424, %376 : vector<8x32xi1>, vector<8x32xf32>
    %433 = tpu.concatenate %426, %398 in 1 : vector<8x32xf32>, vector<8x32xf32> -> vector<8x64xf32>
    %cst_74 = arith.constant dense<0.000000e+00> : vector<8x128xf32>
    %434 = tpu.matmul %433, %9, %cst_74 {dimension_numbers = #tpu.dot_dimension_numbers<[1], [0], [0], [1], [0, 0, 1, 1], [], []>} : vector<8x64xf32>, vector<64x128xf32>, vector<8x128xf32> -> vector<8x128xf32>
    %435 = vector.broadcast %10 : vector<1x128xf32> to vector<8x128xf32>
    %436 = arith.addf %434, %435 : vector<8x128xf32>
    %437 = arith.negf %436 : vector<8x128xf32>
    %438 = math.exp %437 : vector<8x128xf32>
    %cst_75 = arith.constant 1.000000e+00 : f32
    %439 = vector.broadcast %cst_75 : f32 to vector<8x128xf32>
    %440 = arith.addf %439, %438 : vector<8x128xf32>
    %441 = arith.divf %439, %440 : vector<8x128xf32>
    %442 = math.tanh %436 : vector<8x128xf32>
    %443 = vector.extract_strided_slice %441 {offsets = [0, 0], sizes = [8, 32], strides = [1, 1]} : vector<8x128xf32> to vector<8x32xf32>
    %444 = vector.extract_strided_slice %441 {offsets = [0, 32], sizes = [8, 32], strides = [1, 1]} : vector<8x128xf32> to vector<8x32xf32>
    %445 = vector.extract_strided_slice %441 {offsets = [0, 64], sizes = [8, 32], strides = [1, 1]} : vector<8x128xf32> to vector<8x32xf32>
    %446 = vector.extract_strided_slice %442 {offsets = [0, 96], sizes = [8, 32], strides = [1, 1]} : vector<8x128xf32> to vector<8x32xf32>
    %447 = arith.mulf %444, %401 : vector<8x32xf32>
    %448 = arith.mulf %443, %446 : vector<8x32xf32>
    %449 = arith.addf %447, %448 : vector<8x32xf32>
    %450 = math.tanh %449 : vector<8x32xf32>
    %451 = arith.mulf %445, %450 : vector<8x32xf32>
    %452 = vector.shape_cast %408 : vector<8x1xi1> to vector<8x1xi1>
    %453 = vector.broadcast %452 : vector<8x1xi1> to vector<8x32xi1>
    %454 = arith.select %453, %451, %398 : vector<8x32xi1>, vector<8x32xf32>
    %455 = vector.shape_cast %408 : vector<8x1xi1> to vector<8x1xi1>
    %456 = vector.broadcast %455 : vector<8x1xi1> to vector<8x32xi1>
    %457 = arith.select %456, %449, %401 : vector<8x32xi1>, vector<8x32xf32>
    %cst_76 = arith.constant 0.000000e+00 : f32
    %458 = vector.shape_cast %408 : vector<8x1xi1> to vector<8x1xi1>
    %459 = vector.broadcast %458 : vector<8x1xi1> to vector<8x32xi1>
    %460 = vector.broadcast %cst_76 : f32 to vector<8x32xf32>
    %461 = arith.select %459, %451, %460 : vector<8x32xi1>, vector<8x32xf32>
    %c0_77 = arith.constant 0 : index
    %c224 = arith.constant 224 : index
    %462 = vector.load %arg8[%c0_77, %c224] : memref<8x640xf32, #tpu.memory_space<vmem>>, vector<8x32xf32>
    tpu.vector_store %arg8[%c0_77, %c224], %461 {strides = array<i32>} : memref<8x640xf32, #tpu.memory_space<vmem>>, vector<8x32xf32>,
    %c8_i32 = arith.constant 8 : i32
    %463 = vector.broadcast %c8_i32 : i32 to vector<8x1xi32>
    %464 = arith.cmpi sgt, %7, %463 : vector<8x1xi32>
    %c64_78 = arith.constant 64 : index
    %c0_79 = arith.constant 0 : index
    %465 = vector.load %arg11[%c64_78, %c0_79] : memref<160x128xf32, #tpu.memory_space<vmem>>, vector<8x128xf32>
    %cst_80 = arith.constant dense<0.000000e+00> : vector<8x128xf32>
    %466 = tpu.matmul %429, %8, %cst_80 {dimension_numbers = #tpu.dot_dimension_numbers<[1], [0], [0], [1], [0, 0, 1, 1], [], []>} : vector<8x32xf32>, vector<32x128xf32>, vector<8x128xf32> -> vector<8x128xf32>
    %467 = arith.addf %465, %466 : vector<8x128xf32>
    %468 = arith.negf %467 : vector<8x128xf32>
    %469 = math.exp %468 : vector<8x128xf32>
    %cst_81 = arith.constant 1.000000e+00 : f32
    %470 = vector.broadcast %cst_81 : f32 to vector<8x128xf32>
    %471 = arith.addf %470, %469 : vector<8x128xf32>
    %472 = arith.divf %470, %471 : vector<8x128xf32>
    %473 = math.tanh %467 : vector<8x128xf32>
    %474 = vector.extract_strided_slice %472 {offsets = [0, 0], sizes = [8, 32], strides = [1, 1]} : vector<8x128xf32> to vector<8x32xf32>
    %475 = vector.extract_strided_slice %472 {offsets = [0, 32], sizes = [8, 32], strides = [1, 1]} : vector<8x128xf32> to vector<8x32xf32>
    %476 = vector.extract_strided_slice %472 {offsets = [0, 64], sizes = [8, 32], strides = [1, 1]} : vector<8x128xf32> to vector<8x32xf32>
    %477 = vector.extract_strided_slice %473 {offsets = [0, 96], sizes = [8, 32], strides = [1, 1]} : vector<8x128xf32> to vector<8x32xf32>
    %478 = arith.mulf %475, %432 : vector<8x32xf32>
    %479 = arith.mulf %474, %477 : vector<8x32xf32>
    %480 = arith.addf %478, %479 : vector<8x32xf32>
    %481 = math.tanh %480 : vector<8x32xf32>
    %482 = arith.mulf %476, %481 : vector<8x32xf32>
    %483 = vector.shape_cast %464 : vector<8x1xi1> to vector<8x1xi1>
    %484 = vector.broadcast %483 : vector<8x1xi1> to vector<8x32xi1>
    %485 = arith.select %484, %482, %429 : vector<8x32xi1>, vector<8x32xf32>
    %486 = vector.shape_cast %464 : vector<8x1xi1> to vector<8x1xi1>
    %487 = vector.broadcast %486 : vector<8x1xi1> to vector<8x32xi1>
    %488 = arith.select %487, %480, %432 : vector<8x32xi1>, vector<8x32xf32>
    %489 = tpu.concatenate %482, %454 in 1 : vector<8x32xf32>, vector<8x32xf32> -> vector<8x64xf32>
    %cst_82 = arith.constant dense<0.000000e+00> : vector<8x128xf32>
    %490 = tpu.matmul %489, %9, %cst_82 {dimension_numbers = #tpu.dot_dimension_numbers<[1], [0], [0], [1], [0, 0, 1, 1], [], []>} : vector<8x64xf32>, vector<64x128xf32>, vector<8x128xf32> -> vector<8x128xf32>
    %491 = vector.broadcast %10 : vector<1x128xf32> to vector<8x128xf32>
    %492 = arith.addf %490, %491 : vector<8x128xf32>
    %493 = arith.negf %492 : vector<8x128xf32>
    %494 = math.exp %493 : vector<8x128xf32>
    %cst_83 = arith.constant 1.000000e+00 : f32
    %495 = vector.broadcast %cst_83 : f32 to vector<8x128xf32>
    %496 = arith.addf %495, %494 : vector<8x128xf32>
    %497 = arith.divf %495, %496 : vector<8x128xf32>
    %498 = math.tanh %492 : vector<8x128xf32>
    %499 = vector.extract_strided_slice %497 {offsets = [0, 0], sizes = [8, 32], strides = [1, 1]} : vector<8x128xf32> to vector<8x32xf32>
    %500 = vector.extract_strided_slice %497 {offsets = [0, 32], sizes = [8, 32], strides = [1, 1]} : vector<8x128xf32> to vector<8x32xf32>
    %501 = vector.extract_strided_slice %497 {offsets = [0, 64], sizes = [8, 32], strides = [1, 1]} : vector<8x128xf32> to vector<8x32xf32>
    %502 = vector.extract_strided_slice %498 {offsets = [0, 96], sizes = [8, 32], strides = [1, 1]} : vector<8x128xf32> to vector<8x32xf32>
    %503 = arith.mulf %500, %457 : vector<8x32xf32>
    %504 = arith.mulf %499, %502 : vector<8x32xf32>
    %505 = arith.addf %503, %504 : vector<8x32xf32>
    %506 = math.tanh %505 : vector<8x32xf32>
    %507 = arith.mulf %501, %506 : vector<8x32xf32>
    %508 = vector.shape_cast %464 : vector<8x1xi1> to vector<8x1xi1>
    %509 = vector.broadcast %508 : vector<8x1xi1> to vector<8x32xi1>
    %510 = arith.select %509, %507, %454 : vector<8x32xi1>, vector<8x32xf32>
    %511 = vector.shape_cast %464 : vector<8x1xi1> to vector<8x1xi1>
    %512 = vector.broadcast %511 : vector<8x1xi1> to vector<8x32xi1>
    %513 = arith.select %512, %505, %457 : vector<8x32xi1>, vector<8x32xf32>
    %cst_84 = arith.constant 0.000000e+00 : f32
    %514 = vector.shape_cast %464 : vector<8x1xi1> to vector<8x1xi1>
    %515 = vector.broadcast %514 : vector<8x1xi1> to vector<8x32xi1>
    %516 = vector.broadcast %cst_84 : f32 to vector<8x32xf32>
    %517 = arith.select %515, %507, %516 : vector<8x32xi1>, vector<8x32xf32>
    %c0_85 = arith.constant 0 : index
    %c256 = arith.constant 256 : index
    %518 = vector.load %arg8[%c0_85, %c256] : memref<8x640xf32, #tpu.memory_space<vmem>>, vector<8x32xf32>
    tpu.vector_store %arg8[%c0_85, %c256], %517 {strides = array<i32>} : memref<8x640xf32, #tpu.memory_space<vmem>>, vector<8x32xf32>,
    %c9_i32 = arith.constant 9 : i32
    %519 = vector.broadcast %c9_i32 : i32 to vector<8x1xi32>
    %520 = arith.cmpi sgt, %7, %519 : vector<8x1xi32>
    %c72 = arith.constant 72 : index
    %c0_86 = arith.constant 0 : index
    %521 = vector.load %arg11[%c72, %c0_86] : memref<160x128xf32, #tpu.memory_space<vmem>>, vector<8x128xf32>
    %cst_87 = arith.constant dense<0.000000e+00> : vector<8x128xf32>
    %522 = tpu.matmul %485, %8, %cst_87 {dimension_numbers = #tpu.dot_dimension_numbers<[1], [0], [0], [1], [0, 0, 1, 1], [], []>} : vector<8x32xf32>, vector<32x128xf32>, vector<8x128xf32> -> vector<8x128xf32>
    %523 = arith.addf %521, %522 : vector<8x128xf32>
    %524 = arith.negf %523 : vector<8x128xf32>
    %525 = math.exp %524 : vector<8x128xf32>
    %cst_88 = arith.constant 1.000000e+00 : f32
    %526 = vector.broadcast %cst_88 : f32 to vector<8x128xf32>
    %527 = arith.addf %526, %525 : vector<8x128xf32>
    %528 = arith.divf %526, %527 : vector<8x128xf32>
    %529 = math.tanh %523 : vector<8x128xf32>
    %530 = vector.extract_strided_slice %528 {offsets = [0, 0], sizes = [8, 32], strides = [1, 1]} : vector<8x128xf32> to vector<8x32xf32>
    %531 = vector.extract_strided_slice %528 {offsets = [0, 32], sizes = [8, 32], strides = [1, 1]} : vector<8x128xf32> to vector<8x32xf32>
    %532 = vector.extract_strided_slice %528 {offsets = [0, 64], sizes = [8, 32], strides = [1, 1]} : vector<8x128xf32> to vector<8x32xf32>
    %533 = vector.extract_strided_slice %529 {offsets = [0, 96], sizes = [8, 32], strides = [1, 1]} : vector<8x128xf32> to vector<8x32xf32>
    %534 = arith.mulf %531, %488 : vector<8x32xf32>
    %535 = arith.mulf %530, %533 : vector<8x32xf32>
    %536 = arith.addf %534, %535 : vector<8x32xf32>
    %537 = math.tanh %536 : vector<8x32xf32>
    %538 = arith.mulf %532, %537 : vector<8x32xf32>
    %539 = vector.shape_cast %520 : vector<8x1xi1> to vector<8x1xi1>
    %540 = vector.broadcast %539 : vector<8x1xi1> to vector<8x32xi1>
    %541 = arith.select %540, %538, %485 : vector<8x32xi1>, vector<8x32xf32>
    %542 = vector.shape_cast %520 : vector<8x1xi1> to vector<8x1xi1>
    %543 = vector.broadcast %542 : vector<8x1xi1> to vector<8x32xi1>
    %544 = arith.select %543, %536, %488 : vector<8x32xi1>, vector<8x32xf32>
    %545 = tpu.concatenate %538, %510 in 1 : vector<8x32xf32>, vector<8x32xf32> -> vector<8x64xf32>
    %cst_89 = arith.constant dense<0.000000e+00> : vector<8x128xf32>
    %546 = tpu.matmul %545, %9, %cst_89 {dimension_numbers = #tpu.dot_dimension_numbers<[1], [0], [0], [1], [0, 0, 1, 1], [], []>} : vector<8x64xf32>, vector<64x128xf32>, vector<8x128xf32> -> vector<8x128xf32>
    %547 = vector.broadcast %10 : vector<1x128xf32> to vector<8x128xf32>
    %548 = arith.addf %546, %547 : vector<8x128xf32>
    %549 = arith.negf %548 : vector<8x128xf32>
    %550 = math.exp %549 : vector<8x128xf32>
    %cst_90 = arith.constant 1.000000e+00 : f32
    %551 = vector.broadcast %cst_90 : f32 to vector<8x128xf32>
    %552 = arith.addf %551, %550 : vector<8x128xf32>
    %553 = arith.divf %551, %552 : vector<8x128xf32>
    %554 = math.tanh %548 : vector<8x128xf32>
    %555 = vector.extract_strided_slice %553 {offsets = [0, 0], sizes = [8, 32], strides = [1, 1]} : vector<8x128xf32> to vector<8x32xf32>
    %556 = vector.extract_strided_slice %553 {offsets = [0, 32], sizes = [8, 32], strides = [1, 1]} : vector<8x128xf32> to vector<8x32xf32>
    %557 = vector.extract_strided_slice %553 {offsets = [0, 64], sizes = [8, 32], strides = [1, 1]} : vector<8x128xf32> to vector<8x32xf32>
    %558 = vector.extract_strided_slice %554 {offsets = [0, 96], sizes = [8, 32], strides = [1, 1]} : vector<8x128xf32> to vector<8x32xf32>
    %559 = arith.mulf %556, %513 : vector<8x32xf32>
    %560 = arith.mulf %555, %558 : vector<8x32xf32>
    %561 = arith.addf %559, %560 : vector<8x32xf32>
    %562 = math.tanh %561 : vector<8x32xf32>
    %563 = arith.mulf %557, %562 : vector<8x32xf32>
    %564 = vector.shape_cast %520 : vector<8x1xi1> to vector<8x1xi1>
    %565 = vector.broadcast %564 : vector<8x1xi1> to vector<8x32xi1>
    %566 = arith.select %565, %563, %510 : vector<8x32xi1>, vector<8x32xf32>
    %567 = vector.shape_cast %520 : vector<8x1xi1> to vector<8x1xi1>
    %568 = vector.broadcast %567 : vector<8x1xi1> to vector<8x32xi1>
    %569 = arith.select %568, %561, %513 : vector<8x32xi1>, vector<8x32xf32>
    %cst_91 = arith.constant 0.000000e+00 : f32
    %570 = vector.shape_cast %520 : vector<8x1xi1> to vector<8x1xi1>
    %571 = vector.broadcast %570 : vector<8x1xi1> to vector<8x32xi1>
    %572 = vector.broadcast %cst_91 : f32 to vector<8x32xf32>
    %573 = arith.select %571, %563, %572 : vector<8x32xi1>, vector<8x32xf32>
    %c0_92 = arith.constant 0 : index
    %c288 = arith.constant 288 : index
    %574 = vector.load %arg8[%c0_92, %c288] : memref<8x640xf32, #tpu.memory_space<vmem>>, vector<8x32xf32>
    tpu.vector_store %arg8[%c0_92, %c288], %573 {strides = array<i32>} : memref<8x640xf32, #tpu.memory_space<vmem>>, vector<8x32xf32>,
    %c10_i32 = arith.constant 10 : i32
    %575 = vector.broadcast %c10_i32 : i32 to vector<8x1xi32>
    %576 = arith.cmpi sgt, %7, %575 : vector<8x1xi32>
    %c80 = arith.constant 80 : index
    %c0_93 = arith.constant 0 : index
    %577 = vector.load %arg11[%c80, %c0_93] : memref<160x128xf32, #tpu.memory_space<vmem>>, vector<8x128xf32>
    %cst_94 = arith.constant dense<0.000000e+00> : vector<8x128xf32>
    %578 = tpu.matmul %541, %8, %cst_94 {dimension_numbers = #tpu.dot_dimension_numbers<[1], [0], [0], [1], [0, 0, 1, 1], [], []>} : vector<8x32xf32>, vector<32x128xf32>, vector<8x128xf32> -> vector<8x128xf32>
    %579 = arith.addf %577, %578 : vector<8x128xf32>
    %580 = arith.negf %579 : vector<8x128xf32>
    %581 = math.exp %580 : vector<8x128xf32>
    %cst_95 = arith.constant 1.000000e+00 : f32
    %582 = vector.broadcast %cst_95 : f32 to vector<8x128xf32>
    %583 = arith.addf %582, %581 : vector<8x128xf32>
    %584 = arith.divf %582, %583 : vector<8x128xf32>
    %585 = math.tanh %579 : vector<8x128xf32>
    %586 = vector.extract_strided_slice %584 {offsets = [0, 0], sizes = [8, 32], strides = [1, 1]} : vector<8x128xf32> to vector<8x32xf32>
    %587 = vector.extract_strided_slice %584 {offsets = [0, 32], sizes = [8, 32], strides = [1, 1]} : vector<8x128xf32> to vector<8x32xf32>
    %588 = vector.extract_strided_slice %584 {offsets = [0, 64], sizes = [8, 32], strides = [1, 1]} : vector<8x128xf32> to vector<8x32xf32>
    %589 = vector.extract_strided_slice %585 {offsets = [0, 96], sizes = [8, 32], strides = [1, 1]} : vector<8x128xf32> to vector<8x32xf32>
    %590 = arith.mulf %587, %544 : vector<8x32xf32>
    %591 = arith.mulf %586, %589 : vector<8x32xf32>
    %592 = arith.addf %590, %591 : vector<8x32xf32>
    %593 = math.tanh %592 : vector<8x32xf32>
    %594 = arith.mulf %588, %593 : vector<8x32xf32>
    %595 = vector.shape_cast %576 : vector<8x1xi1> to vector<8x1xi1>
    %596 = vector.broadcast %595 : vector<8x1xi1> to vector<8x32xi1>
    %597 = arith.select %596, %594, %541 : vector<8x32xi1>, vector<8x32xf32>
    %598 = vector.shape_cast %576 : vector<8x1xi1> to vector<8x1xi1>
    %599 = vector.broadcast %598 : vector<8x1xi1> to vector<8x32xi1>
    %600 = arith.select %599, %592, %544 : vector<8x32xi1>, vector<8x32xf32>
    %601 = tpu.concatenate %594, %566 in 1 : vector<8x32xf32>, vector<8x32xf32> -> vector<8x64xf32>
    %cst_96 = arith.constant dense<0.000000e+00> : vector<8x128xf32>
    %602 = tpu.matmul %601, %9, %cst_96 {dimension_numbers = #tpu.dot_dimension_numbers<[1], [0], [0], [1], [0, 0, 1, 1], [], []>} : vector<8x64xf32>, vector<64x128xf32>, vector<8x128xf32> -> vector<8x128xf32>
    %603 = vector.broadcast %10 : vector<1x128xf32> to vector<8x128xf32>
    %604 = arith.addf %602, %603 : vector<8x128xf32>
    %605 = arith.negf %604 : vector<8x128xf32>
    %606 = math.exp %605 : vector<8x128xf32>
    %cst_97 = arith.constant 1.000000e+00 : f32
    %607 = vector.broadcast %cst_97 : f32 to vector<8x128xf32>
    %608 = arith.addf %607, %606 : vector<8x128xf32>
    %609 = arith.divf %607, %608 : vector<8x128xf32>
    %610 = math.tanh %604 : vector<8x128xf32>
    %611 = vector.extract_strided_slice %609 {offsets = [0, 0], sizes = [8, 32], strides = [1, 1]} : vector<8x128xf32> to vector<8x32xf32>
    %612 = vector.extract_strided_slice %609 {offsets = [0, 32], sizes = [8, 32], strides = [1, 1]} : vector<8x128xf32> to vector<8x32xf32>
    %613 = vector.extract_strided_slice %609 {offsets = [0, 64], sizes = [8, 32], strides = [1, 1]} : vector<8x128xf32> to vector<8x32xf32>
    %614 = vector.extract_strided_slice %610 {offsets = [0, 96], sizes = [8, 32], strides = [1, 1]} : vector<8x128xf32> to vector<8x32xf32>
    %615 = arith.mulf %612, %569 : vector<8x32xf32>
    %616 = arith.mulf %611, %614 : vector<8x32xf32>
    %617 = arith.addf %615, %616 : vector<8x32xf32>
    %618 = math.tanh %617 : vector<8x32xf32>
    %619 = arith.mulf %613, %618 : vector<8x32xf32>
    %620 = vector.shape_cast %576 : vector<8x1xi1> to vector<8x1xi1>
    %621 = vector.broadcast %620 : vector<8x1xi1> to vector<8x32xi1>
    %622 = arith.select %621, %619, %566 : vector<8x32xi1>, vector<8x32xf32>
    %623 = vector.shape_cast %576 : vector<8x1xi1> to vector<8x1xi1>
    %624 = vector.broadcast %623 : vector<8x1xi1> to vector<8x32xi1>
    %625 = arith.select %624, %617, %569 : vector<8x32xi1>, vector<8x32xf32>
    %cst_98 = arith.constant 0.000000e+00 : f32
    %626 = vector.shape_cast %576 : vector<8x1xi1> to vector<8x1xi1>
    %627 = vector.broadcast %626 : vector<8x1xi1> to vector<8x32xi1>
    %628 = vector.broadcast %cst_98 : f32 to vector<8x32xf32>
    %629 = arith.select %627, %619, %628 : vector<8x32xi1>, vector<8x32xf32>
    %c0_99 = arith.constant 0 : index
    %c320 = arith.constant 320 : index
    %630 = vector.load %arg8[%c0_99, %c320] : memref<8x640xf32, #tpu.memory_space<vmem>>, vector<8x32xf32>
    tpu.vector_store %arg8[%c0_99, %c320], %629 {strides = array<i32>} : memref<8x640xf32, #tpu.memory_space<vmem>>, vector<8x32xf32>,
    %c11_i32 = arith.constant 11 : i32
    %631 = vector.broadcast %c11_i32 : i32 to vector<8x1xi32>
    %632 = arith.cmpi sgt, %7, %631 : vector<8x1xi32>
    %c88 = arith.constant 88 : index
    %c0_100 = arith.constant 0 : index
    %633 = vector.load %arg11[%c88, %c0_100] : memref<160x128xf32, #tpu.memory_space<vmem>>, vector<8x128xf32>
    %cst_101 = arith.constant dense<0.000000e+00> : vector<8x128xf32>
    %634 = tpu.matmul %597, %8, %cst_101 {dimension_numbers = #tpu.dot_dimension_numbers<[1], [0], [0], [1], [0, 0, 1, 1], [], []>} : vector<8x32xf32>, vector<32x128xf32>, vector<8x128xf32> -> vector<8x128xf32>
    %635 = arith.addf %633, %634 : vector<8x128xf32>
    %636 = arith.negf %635 : vector<8x128xf32>
    %637 = math.exp %636 : vector<8x128xf32>
    %cst_102 = arith.constant 1.000000e+00 : f32
    %638 = vector.broadcast %cst_102 : f32 to vector<8x128xf32>
    %639 = arith.addf %638, %637 : vector<8x128xf32>
    %640 = arith.divf %638, %639 : vector<8x128xf32>
    %641 = math.tanh %635 : vector<8x128xf32>
    %642 = vector.extract_strided_slice %640 {offsets = [0, 0], sizes = [8, 32], strides = [1, 1]} : vector<8x128xf32> to vector<8x32xf32>
    %643 = vector.extract_strided_slice %640 {offsets = [0, 32], sizes = [8, 32], strides = [1, 1]} : vector<8x128xf32> to vector<8x32xf32>
    %644 = vector.extract_strided_slice %640 {offsets = [0, 64], sizes = [8, 32], strides = [1, 1]} : vector<8x128xf32> to vector<8x32xf32>
    %645 = vector.extract_strided_slice %641 {offsets = [0, 96], sizes = [8, 32], strides = [1, 1]} : vector<8x128xf32> to vector<8x32xf32>
    %646 = arith.mulf %643, %600 : vector<8x32xf32>
    %647 = arith.mulf %642, %645 : vector<8x32xf32>
    %648 = arith.addf %646, %647 : vector<8x32xf32>
    %649 = math.tanh %648 : vector<8x32xf32>
    %650 = arith.mulf %644, %649 : vector<8x32xf32>
    %651 = vector.shape_cast %632 : vector<8x1xi1> to vector<8x1xi1>
    %652 = vector.broadcast %651 : vector<8x1xi1> to vector<8x32xi1>
    %653 = arith.select %652, %650, %597 : vector<8x32xi1>, vector<8x32xf32>
    %654 = vector.shape_cast %632 : vector<8x1xi1> to vector<8x1xi1>
    %655 = vector.broadcast %654 : vector<8x1xi1> to vector<8x32xi1>
    %656 = arith.select %655, %648, %600 : vector<8x32xi1>, vector<8x32xf32>
    %657 = tpu.concatenate %650, %622 in 1 : vector<8x32xf32>, vector<8x32xf32> -> vector<8x64xf32>
    %cst_103 = arith.constant dense<0.000000e+00> : vector<8x128xf32>
    %658 = tpu.matmul %657, %9, %cst_103 {dimension_numbers = #tpu.dot_dimension_numbers<[1], [0], [0], [1], [0, 0, 1, 1], [], []>} : vector<8x64xf32>, vector<64x128xf32>, vector<8x128xf32> -> vector<8x128xf32>
    %659 = vector.broadcast %10 : vector<1x128xf32> to vector<8x128xf32>
    %660 = arith.addf %658, %659 : vector<8x128xf32>
    %661 = arith.negf %660 : vector<8x128xf32>
    %662 = math.exp %661 : vector<8x128xf32>
    %cst_104 = arith.constant 1.000000e+00 : f32
    %663 = vector.broadcast %cst_104 : f32 to vector<8x128xf32>
    %664 = arith.addf %663, %662 : vector<8x128xf32>
    %665 = arith.divf %663, %664 : vector<8x128xf32>
    %666 = math.tanh %660 : vector<8x128xf32>
    %667 = vector.extract_strided_slice %665 {offsets = [0, 0], sizes = [8, 32], strides = [1, 1]} : vector<8x128xf32> to vector<8x32xf32>
    %668 = vector.extract_strided_slice %665 {offsets = [0, 32], sizes = [8, 32], strides = [1, 1]} : vector<8x128xf32> to vector<8x32xf32>
    %669 = vector.extract_strided_slice %665 {offsets = [0, 64], sizes = [8, 32], strides = [1, 1]} : vector<8x128xf32> to vector<8x32xf32>
    %670 = vector.extract_strided_slice %666 {offsets = [0, 96], sizes = [8, 32], strides = [1, 1]} : vector<8x128xf32> to vector<8x32xf32>
    %671 = arith.mulf %668, %625 : vector<8x32xf32>
    %672 = arith.mulf %667, %670 : vector<8x32xf32>
    %673 = arith.addf %671, %672 : vector<8x32xf32>
    %674 = math.tanh %673 : vector<8x32xf32>
    %675 = arith.mulf %669, %674 : vector<8x32xf32>
    %676 = vector.shape_cast %632 : vector<8x1xi1> to vector<8x1xi1>
    %677 = vector.broadcast %676 : vector<8x1xi1> to vector<8x32xi1>
    %678 = arith.select %677, %675, %622 : vector<8x32xi1>, vector<8x32xf32>
    %679 = vector.shape_cast %632 : vector<8x1xi1> to vector<8x1xi1>
    %680 = vector.broadcast %679 : vector<8x1xi1> to vector<8x32xi1>
    %681 = arith.select %680, %673, %625 : vector<8x32xi1>, vector<8x32xf32>
    %cst_105 = arith.constant 0.000000e+00 : f32
    %682 = vector.shape_cast %632 : vector<8x1xi1> to vector<8x1xi1>
    %683 = vector.broadcast %682 : vector<8x1xi1> to vector<8x32xi1>
    %684 = vector.broadcast %cst_105 : f32 to vector<8x32xf32>
    %685 = arith.select %683, %675, %684 : vector<8x32xi1>, vector<8x32xf32>
    %c0_106 = arith.constant 0 : index
    %c352 = arith.constant 352 : index
    %686 = vector.load %arg8[%c0_106, %c352] : memref<8x640xf32, #tpu.memory_space<vmem>>, vector<8x32xf32>
    tpu.vector_store %arg8[%c0_106, %c352], %685 {strides = array<i32>} : memref<8x640xf32, #tpu.memory_space<vmem>>, vector<8x32xf32>,
    %c12_i32 = arith.constant 12 : i32
    %687 = vector.broadcast %c12_i32 : i32 to vector<8x1xi32>
    %688 = arith.cmpi sgt, %7, %687 : vector<8x1xi32>
    %c96_107 = arith.constant 96 : index
    %c0_108 = arith.constant 0 : index
    %689 = vector.load %arg11[%c96_107, %c0_108] : memref<160x128xf32, #tpu.memory_space<vmem>>, vector<8x128xf32>
    %cst_109 = arith.constant dense<0.000000e+00> : vector<8x128xf32>
    %690 = tpu.matmul %653, %8, %cst_109 {dimension_numbers = #tpu.dot_dimension_numbers<[1], [0], [0], [1], [0, 0, 1, 1], [], []>} : vector<8x32xf32>, vector<32x128xf32>, vector<8x128xf32> -> vector<8x128xf32>
    %691 = arith.addf %689, %690 : vector<8x128xf32>
    %692 = arith.negf %691 : vector<8x128xf32>
    %693 = math.exp %692 : vector<8x128xf32>
    %cst_110 = arith.constant 1.000000e+00 : f32
    %694 = vector.broadcast %cst_110 : f32 to vector<8x128xf32>
    %695 = arith.addf %694, %693 : vector<8x128xf32>
    %696 = arith.divf %694, %695 : vector<8x128xf32>
    %697 = math.tanh %691 : vector<8x128xf32>
    %698 = vector.extract_strided_slice %696 {offsets = [0, 0], sizes = [8, 32], strides = [1, 1]} : vector<8x128xf32> to vector<8x32xf32>
    %699 = vector.extract_strided_slice %696 {offsets = [0, 32], sizes = [8, 32], strides = [1, 1]} : vector<8x128xf32> to vector<8x32xf32>
    %700 = vector.extract_strided_slice %696 {offsets = [0, 64], sizes = [8, 32], strides = [1, 1]} : vector<8x128xf32> to vector<8x32xf32>
    %701 = vector.extract_strided_slice %697 {offsets = [0, 96], sizes = [8, 32], strides = [1, 1]} : vector<8x128xf32> to vector<8x32xf32>
    %702 = arith.mulf %699, %656 : vector<8x32xf32>
    %703 = arith.mulf %698, %701 : vector<8x32xf32>
    %704 = arith.addf %702, %703 : vector<8x32xf32>
    %705 = math.tanh %704 : vector<8x32xf32>
    %706 = arith.mulf %700, %705 : vector<8x32xf32>
    %707 = vector.shape_cast %688 : vector<8x1xi1> to vector<8x1xi1>
    %708 = vector.broadcast %707 : vector<8x1xi1> to vector<8x32xi1>
    %709 = arith.select %708, %706, %653 : vector<8x32xi1>, vector<8x32xf32>
    %710 = vector.shape_cast %688 : vector<8x1xi1> to vector<8x1xi1>
    %711 = vector.broadcast %710 : vector<8x1xi1> to vector<8x32xi1>
    %712 = arith.select %711, %704, %656 : vector<8x32xi1>, vector<8x32xf32>
    %713 = tpu.concatenate %706, %678 in 1 : vector<8x32xf32>, vector<8x32xf32> -> vector<8x64xf32>
    %cst_111 = arith.constant dense<0.000000e+00> : vector<8x128xf32>
    %714 = tpu.matmul %713, %9, %cst_111 {dimension_numbers = #tpu.dot_dimension_numbers<[1], [0], [0], [1], [0, 0, 1, 1], [], []>} : vector<8x64xf32>, vector<64x128xf32>, vector<8x128xf32> -> vector<8x128xf32>
    %715 = vector.broadcast %10 : vector<1x128xf32> to vector<8x128xf32>
    %716 = arith.addf %714, %715 : vector<8x128xf32>
    %717 = arith.negf %716 : vector<8x128xf32>
    %718 = math.exp %717 : vector<8x128xf32>
    %cst_112 = arith.constant 1.000000e+00 : f32
    %719 = vector.broadcast %cst_112 : f32 to vector<8x128xf32>
    %720 = arith.addf %719, %718 : vector<8x128xf32>
    %721 = arith.divf %719, %720 : vector<8x128xf32>
    %722 = math.tanh %716 : vector<8x128xf32>
    %723 = vector.extract_strided_slice %721 {offsets = [0, 0], sizes = [8, 32], strides = [1, 1]} : vector<8x128xf32> to vector<8x32xf32>
    %724 = vector.extract_strided_slice %721 {offsets = [0, 32], sizes = [8, 32], strides = [1, 1]} : vector<8x128xf32> to vector<8x32xf32>
    %725 = vector.extract_strided_slice %721 {offsets = [0, 64], sizes = [8, 32], strides = [1, 1]} : vector<8x128xf32> to vector<8x32xf32>
    %726 = vector.extract_strided_slice %722 {offsets = [0, 96], sizes = [8, 32], strides = [1, 1]} : vector<8x128xf32> to vector<8x32xf32>
    %727 = arith.mulf %724, %681 : vector<8x32xf32>
    %728 = arith.mulf %723, %726 : vector<8x32xf32>
    %729 = arith.addf %727, %728 : vector<8x32xf32>
    %730 = math.tanh %729 : vector<8x32xf32>
    %731 = arith.mulf %725, %730 : vector<8x32xf32>
    %732 = vector.shape_cast %688 : vector<8x1xi1> to vector<8x1xi1>
    %733 = vector.broadcast %732 : vector<8x1xi1> to vector<8x32xi1>
    %734 = arith.select %733, %731, %678 : vector<8x32xi1>, vector<8x32xf32>
    %735 = vector.shape_cast %688 : vector<8x1xi1> to vector<8x1xi1>
    %736 = vector.broadcast %735 : vector<8x1xi1> to vector<8x32xi1>
    %737 = arith.select %736, %729, %681 : vector<8x32xi1>, vector<8x32xf32>
    %cst_113 = arith.constant 0.000000e+00 : f32
    %738 = vector.shape_cast %688 : vector<8x1xi1> to vector<8x1xi1>
    %739 = vector.broadcast %738 : vector<8x1xi1> to vector<8x32xi1>
    %740 = vector.broadcast %cst_113 : f32 to vector<8x32xf32>
    %741 = arith.select %739, %731, %740 : vector<8x32xi1>, vector<8x32xf32>
    %c0_114 = arith.constant 0 : index
    %c384 = arith.constant 384 : index
    %742 = vector.load %arg8[%c0_114, %c384] : memref<8x640xf32, #tpu.memory_space<vmem>>, vector<8x32xf32>
    tpu.vector_store %arg8[%c0_114, %c384], %741 {strides = array<i32>} : memref<8x640xf32, #tpu.memory_space<vmem>>, vector<8x32xf32>,
    %c13_i32 = arith.constant 13 : i32
    %743 = vector.broadcast %c13_i32 : i32 to vector<8x1xi32>
    %744 = arith.cmpi sgt, %7, %743 : vector<8x1xi32>
    %c104 = arith.constant 104 : index
    %c0_115 = arith.constant 0 : index
    %745 = vector.load %arg11[%c104, %c0_115] : memref<160x128xf32, #tpu.memory_space<vmem>>, vector<8x128xf32>
    %cst_116 = arith.constant dense<0.000000e+00> : vector<8x128xf32>
    %746 = tpu.matmul %709, %8, %cst_116 {dimension_numbers = #tpu.dot_dimension_numbers<[1], [0], [0], [1], [0, 0, 1, 1], [], []>} : vector<8x32xf32>, vector<32x128xf32>, vector<8x128xf32> -> vector<8x128xf32>
    %747 = arith.addf %745, %746 : vector<8x128xf32>
    %748 = arith.negf %747 : vector<8x128xf32>
    %749 = math.exp %748 : vector<8x128xf32>
    %cst_117 = arith.constant 1.000000e+00 : f32
    %750 = vector.broadcast %cst_117 : f32 to vector<8x128xf32>
    %751 = arith.addf %750, %749 : vector<8x128xf32>
    %752 = arith.divf %750, %751 : vector<8x128xf32>
    %753 = math.tanh %747 : vector<8x128xf32>
    %754 = vector.extract_strided_slice %752 {offsets = [0, 0], sizes = [8, 32], strides = [1, 1]} : vector<8x128xf32> to vector<8x32xf32>
    %755 = vector.extract_strided_slice %752 {offsets = [0, 32], sizes = [8, 32], strides = [1, 1]} : vector<8x128xf32> to vector<8x32xf32>
    %756 = vector.extract_strided_slice %752 {offsets = [0, 64], sizes = [8, 32], strides = [1, 1]} : vector<8x128xf32> to vector<8x32xf32>
    %757 = vector.extract_strided_slice %753 {offsets = [0, 96], sizes = [8, 32], strides = [1, 1]} : vector<8x128xf32> to vector<8x32xf32>
    %758 = arith.mulf %755, %712 : vector<8x32xf32>
    %759 = arith.mulf %754, %757 : vector<8x32xf32>
    %760 = arith.addf %758, %759 : vector<8x32xf32>
    %761 = math.tanh %760 : vector<8x32xf32>
    %762 = arith.mulf %756, %761 : vector<8x32xf32>
    %763 = vector.shape_cast %744 : vector<8x1xi1> to vector<8x1xi1>
    %764 = vector.broadcast %763 : vector<8x1xi1> to vector<8x32xi1>
    %765 = arith.select %764, %762, %709 : vector<8x32xi1>, vector<8x32xf32>
    %766 = vector.shape_cast %744 : vector<8x1xi1> to vector<8x1xi1>
    %767 = vector.broadcast %766 : vector<8x1xi1> to vector<8x32xi1>
    %768 = arith.select %767, %760, %712 : vector<8x32xi1>, vector<8x32xf32>
    %769 = tpu.concatenate %762, %734 in 1 : vector<8x32xf32>, vector<8x32xf32> -> vector<8x64xf32>
    %cst_118 = arith.constant dense<0.000000e+00> : vector<8x128xf32>
    %770 = tpu.matmul %769, %9, %cst_118 {dimension_numbers = #tpu.dot_dimension_numbers<[1], [0], [0], [1], [0, 0, 1, 1], [], []>} : vector<8x64xf32>, vector<64x128xf32>, vector<8x128xf32> -> vector<8x128xf32>
    %771 = vector.broadcast %10 : vector<1x128xf32> to vector<8x128xf32>
    %772 = arith.addf %770, %771 : vector<8x128xf32>
    %773 = arith.negf %772 : vector<8x128xf32>
    %774 = math.exp %773 : vector<8x128xf32>
    %cst_119 = arith.constant 1.000000e+00 : f32
    %775 = vector.broadcast %cst_119 : f32 to vector<8x128xf32>
    %776 = arith.addf %775, %774 : vector<8x128xf32>
    %777 = arith.divf %775, %776 : vector<8x128xf32>
    %778 = math.tanh %772 : vector<8x128xf32>
    %779 = vector.extract_strided_slice %777 {offsets = [0, 0], sizes = [8, 32], strides = [1, 1]} : vector<8x128xf32> to vector<8x32xf32>
    %780 = vector.extract_strided_slice %777 {offsets = [0, 32], sizes = [8, 32], strides = [1, 1]} : vector<8x128xf32> to vector<8x32xf32>
    %781 = vector.extract_strided_slice %777 {offsets = [0, 64], sizes = [8, 32], strides = [1, 1]} : vector<8x128xf32> to vector<8x32xf32>
    %782 = vector.extract_strided_slice %778 {offsets = [0, 96], sizes = [8, 32], strides = [1, 1]} : vector<8x128xf32> to vector<8x32xf32>
    %783 = arith.mulf %780, %737 : vector<8x32xf32>
    %784 = arith.mulf %779, %782 : vector<8x32xf32>
    %785 = arith.addf %783, %784 : vector<8x32xf32>
    %786 = math.tanh %785 : vector<8x32xf32>
    %787 = arith.mulf %781, %786 : vector<8x32xf32>
    %788 = vector.shape_cast %744 : vector<8x1xi1> to vector<8x1xi1>
    %789 = vector.broadcast %788 : vector<8x1xi1> to vector<8x32xi1>
    %790 = arith.select %789, %787, %734 : vector<8x32xi1>, vector<8x32xf32>
    %791 = vector.shape_cast %744 : vector<8x1xi1> to vector<8x1xi1>
    %792 = vector.broadcast %791 : vector<8x1xi1> to vector<8x32xi1>
    %793 = arith.select %792, %785, %737 : vector<8x32xi1>, vector<8x32xf32>
    %cst_120 = arith.constant 0.000000e+00 : f32
    %794 = vector.shape_cast %744 : vector<8x1xi1> to vector<8x1xi1>
    %795 = vector.broadcast %794 : vector<8x1xi1> to vector<8x32xi1>
    %796 = vector.broadcast %cst_120 : f32 to vector<8x32xf32>
    %797 = arith.select %795, %787, %796 : vector<8x32xi1>, vector<8x32xf32>
    %c0_121 = arith.constant 0 : index
    %c416 = arith.constant 416 : index
    %798 = vector.load %arg8[%c0_121, %c416] : memref<8x640xf32, #tpu.memory_space<vmem>>, vector<8x32xf32>
    tpu.vector_store %arg8[%c0_121, %c416], %797 {strides = array<i32>} : memref<8x640xf32, #tpu.memory_space<vmem>>, vector<8x32xf32>,
    %c14_i32 = arith.constant 14 : i32
    %799 = vector.broadcast %c14_i32 : i32 to vector<8x1xi32>
    %800 = arith.cmpi sgt, %7, %799 : vector<8x1xi32>
    %c112 = arith.constant 112 : index
    %c0_122 = arith.constant 0 : index
    %801 = vector.load %arg11[%c112, %c0_122] : memref<160x128xf32, #tpu.memory_space<vmem>>, vector<8x128xf32>
    %cst_123 = arith.constant dense<0.000000e+00> : vector<8x128xf32>
    %802 = tpu.matmul %765, %8, %cst_123 {dimension_numbers = #tpu.dot_dimension_numbers<[1], [0], [0], [1], [0, 0, 1, 1], [], []>} : vector<8x32xf32>, vector<32x128xf32>, vector<8x128xf32> -> vector<8x128xf32>
    %803 = arith.addf %801, %802 : vector<8x128xf32>
    %804 = arith.negf %803 : vector<8x128xf32>
    %805 = math.exp %804 : vector<8x128xf32>
    %cst_124 = arith.constant 1.000000e+00 : f32
    %806 = vector.broadcast %cst_124 : f32 to vector<8x128xf32>
    %807 = arith.addf %806, %805 : vector<8x128xf32>
    %808 = arith.divf %806, %807 : vector<8x128xf32>
    %809 = math.tanh %803 : vector<8x128xf32>
    %810 = vector.extract_strided_slice %808 {offsets = [0, 0], sizes = [8, 32], strides = [1, 1]} : vector<8x128xf32> to vector<8x32xf32>
    %811 = vector.extract_strided_slice %808 {offsets = [0, 32], sizes = [8, 32], strides = [1, 1]} : vector<8x128xf32> to vector<8x32xf32>
    %812 = vector.extract_strided_slice %808 {offsets = [0, 64], sizes = [8, 32], strides = [1, 1]} : vector<8x128xf32> to vector<8x32xf32>
    %813 = vector.extract_strided_slice %809 {offsets = [0, 96], sizes = [8, 32], strides = [1, 1]} : vector<8x128xf32> to vector<8x32xf32>
    %814 = arith.mulf %811, %768 : vector<8x32xf32>
    %815 = arith.mulf %810, %813 : vector<8x32xf32>
    %816 = arith.addf %814, %815 : vector<8x32xf32>
    %817 = math.tanh %816 : vector<8x32xf32>
    %818 = arith.mulf %812, %817 : vector<8x32xf32>
    %819 = vector.shape_cast %800 : vector<8x1xi1> to vector<8x1xi1>
    %820 = vector.broadcast %819 : vector<8x1xi1> to vector<8x32xi1>
    %821 = arith.select %820, %818, %765 : vector<8x32xi1>, vector<8x32xf32>
    %822 = vector.shape_cast %800 : vector<8x1xi1> to vector<8x1xi1>
    %823 = vector.broadcast %822 : vector<8x1xi1> to vector<8x32xi1>
    %824 = arith.select %823, %816, %768 : vector<8x32xi1>, vector<8x32xf32>
    %825 = tpu.concatenate %818, %790 in 1 : vector<8x32xf32>, vector<8x32xf32> -> vector<8x64xf32>
    %cst_125 = arith.constant dense<0.000000e+00> : vector<8x128xf32>
    %826 = tpu.matmul %825, %9, %cst_125 {dimension_numbers = #tpu.dot_dimension_numbers<[1], [0], [0], [1], [0, 0, 1, 1], [], []>} : vector<8x64xf32>, vector<64x128xf32>, vector<8x128xf32> -> vector<8x128xf32>
    %827 = vector.broadcast %10 : vector<1x128xf32> to vector<8x128xf32>
    %828 = arith.addf %826, %827 : vector<8x128xf32>
    %829 = arith.negf %828 : vector<8x128xf32>
    %830 = math.exp %829 : vector<8x128xf32>
    %cst_126 = arith.constant 1.000000e+00 : f32
    %831 = vector.broadcast %cst_126 : f32 to vector<8x128xf32>
    %832 = arith.addf %831, %830 : vector<8x128xf32>
    %833 = arith.divf %831, %832 : vector<8x128xf32>
    %834 = math.tanh %828 : vector<8x128xf32>
    %835 = vector.extract_strided_slice %833 {offsets = [0, 0], sizes = [8, 32], strides = [1, 1]} : vector<8x128xf32> to vector<8x32xf32>
    %836 = vector.extract_strided_slice %833 {offsets = [0, 32], sizes = [8, 32], strides = [1, 1]} : vector<8x128xf32> to vector<8x32xf32>
    %837 = vector.extract_strided_slice %833 {offsets = [0, 64], sizes = [8, 32], strides = [1, 1]} : vector<8x128xf32> to vector<8x32xf32>
    %838 = vector.extract_strided_slice %834 {offsets = [0, 96], sizes = [8, 32], strides = [1, 1]} : vector<8x128xf32> to vector<8x32xf32>
    %839 = arith.mulf %836, %793 : vector<8x32xf32>
    %840 = arith.mulf %835, %838 : vector<8x32xf32>
    %841 = arith.addf %839, %840 : vector<8x32xf32>
    %842 = math.tanh %841 : vector<8x32xf32>
    %843 = arith.mulf %837, %842 : vector<8x32xf32>
    %844 = vector.shape_cast %800 : vector<8x1xi1> to vector<8x1xi1>
    %845 = vector.broadcast %844 : vector<8x1xi1> to vector<8x32xi1>
    %846 = arith.select %845, %843, %790 : vector<8x32xi1>, vector<8x32xf32>
    %847 = vector.shape_cast %800 : vector<8x1xi1> to vector<8x1xi1>
    %848 = vector.broadcast %847 : vector<8x1xi1> to vector<8x32xi1>
    %849 = arith.select %848, %841, %793 : vector<8x32xi1>, vector<8x32xf32>
    %cst_127 = arith.constant 0.000000e+00 : f32
    %850 = vector.shape_cast %800 : vector<8x1xi1> to vector<8x1xi1>
    %851 = vector.broadcast %850 : vector<8x1xi1> to vector<8x32xi1>
    %852 = vector.broadcast %cst_127 : f32 to vector<8x32xf32>
    %853 = arith.select %851, %843, %852 : vector<8x32xi1>, vector<8x32xf32>
    %c0_128 = arith.constant 0 : index
    %c448 = arith.constant 448 : index
    %854 = vector.load %arg8[%c0_128, %c448] : memref<8x640xf32, #tpu.memory_space<vmem>>, vector<8x32xf32>
    tpu.vector_store %arg8[%c0_128, %c448], %853 {strides = array<i32>} : memref<8x640xf32, #tpu.memory_space<vmem>>, vector<8x32xf32>,
    %c15_i32 = arith.constant 15 : i32
    %855 = vector.broadcast %c15_i32 : i32 to vector<8x1xi32>
    %856 = arith.cmpi sgt, %7, %855 : vector<8x1xi32>
    %c120 = arith.constant 120 : index
    %c0_129 = arith.constant 0 : index
    %857 = vector.load %arg11[%c120, %c0_129] : memref<160x128xf32, #tpu.memory_space<vmem>>, vector<8x128xf32>
    %cst_130 = arith.constant dense<0.000000e+00> : vector<8x128xf32>
    %858 = tpu.matmul %821, %8, %cst_130 {dimension_numbers = #tpu.dot_dimension_numbers<[1], [0], [0], [1], [0, 0, 1, 1], [], []>} : vector<8x32xf32>, vector<32x128xf32>, vector<8x128xf32> -> vector<8x128xf32>
    %859 = arith.addf %857, %858 : vector<8x128xf32>
    %860 = arith.negf %859 : vector<8x128xf32>
    %861 = math.exp %860 : vector<8x128xf32>
    %cst_131 = arith.constant 1.000000e+00 : f32
    %862 = vector.broadcast %cst_131 : f32 to vector<8x128xf32>
    %863 = arith.addf %862, %861 : vector<8x128xf32>
    %864 = arith.divf %862, %863 : vector<8x128xf32>
    %865 = math.tanh %859 : vector<8x128xf32>
    %866 = vector.extract_strided_slice %864 {offsets = [0, 0], sizes = [8, 32], strides = [1, 1]} : vector<8x128xf32> to vector<8x32xf32>
    %867 = vector.extract_strided_slice %864 {offsets = [0, 32], sizes = [8, 32], strides = [1, 1]} : vector<8x128xf32> to vector<8x32xf32>
    %868 = vector.extract_strided_slice %864 {offsets = [0, 64], sizes = [8, 32], strides = [1, 1]} : vector<8x128xf32> to vector<8x32xf32>
    %869 = vector.extract_strided_slice %865 {offsets = [0, 96], sizes = [8, 32], strides = [1, 1]} : vector<8x128xf32> to vector<8x32xf32>
    %870 = arith.mulf %867, %824 : vector<8x32xf32>
    %871 = arith.mulf %866, %869 : vector<8x32xf32>
    %872 = arith.addf %870, %871 : vector<8x32xf32>
    %873 = math.tanh %872 : vector<8x32xf32>
    %874 = arith.mulf %868, %873 : vector<8x32xf32>
    %875 = vector.shape_cast %856 : vector<8x1xi1> to vector<8x1xi1>
    %876 = vector.broadcast %875 : vector<8x1xi1> to vector<8x32xi1>
    %877 = arith.select %876, %874, %821 : vector<8x32xi1>, vector<8x32xf32>
    %878 = vector.shape_cast %856 : vector<8x1xi1> to vector<8x1xi1>
    %879 = vector.broadcast %878 : vector<8x1xi1> to vector<8x32xi1>
    %880 = arith.select %879, %872, %824 : vector<8x32xi1>, vector<8x32xf32>
    %881 = tpu.concatenate %874, %846 in 1 : vector<8x32xf32>, vector<8x32xf32> -> vector<8x64xf32>
    %cst_132 = arith.constant dense<0.000000e+00> : vector<8x128xf32>
    %882 = tpu.matmul %881, %9, %cst_132 {dimension_numbers = #tpu.dot_dimension_numbers<[1], [0], [0], [1], [0, 0, 1, 1], [], []>} : vector<8x64xf32>, vector<64x128xf32>, vector<8x128xf32> -> vector<8x128xf32>
    %883 = vector.broadcast %10 : vector<1x128xf32> to vector<8x128xf32>
    %884 = arith.addf %882, %883 : vector<8x128xf32>
    %885 = arith.negf %884 : vector<8x128xf32>
    %886 = math.exp %885 : vector<8x128xf32>
    %cst_133 = arith.constant 1.000000e+00 : f32
    %887 = vector.broadcast %cst_133 : f32 to vector<8x128xf32>
    %888 = arith.addf %887, %886 : vector<8x128xf32>
    %889 = arith.divf %887, %888 : vector<8x128xf32>
    %890 = math.tanh %884 : vector<8x128xf32>
    %891 = vector.extract_strided_slice %889 {offsets = [0, 0], sizes = [8, 32], strides = [1, 1]} : vector<8x128xf32> to vector<8x32xf32>
    %892 = vector.extract_strided_slice %889 {offsets = [0, 32], sizes = [8, 32], strides = [1, 1]} : vector<8x128xf32> to vector<8x32xf32>
    %893 = vector.extract_strided_slice %889 {offsets = [0, 64], sizes = [8, 32], strides = [1, 1]} : vector<8x128xf32> to vector<8x32xf32>
    %894 = vector.extract_strided_slice %890 {offsets = [0, 96], sizes = [8, 32], strides = [1, 1]} : vector<8x128xf32> to vector<8x32xf32>
    %895 = arith.mulf %892, %849 : vector<8x32xf32>
    %896 = arith.mulf %891, %894 : vector<8x32xf32>
    %897 = arith.addf %895, %896 : vector<8x32xf32>
    %898 = math.tanh %897 : vector<8x32xf32>
    %899 = arith.mulf %893, %898 : vector<8x32xf32>
    %900 = vector.shape_cast %856 : vector<8x1xi1> to vector<8x1xi1>
    %901 = vector.broadcast %900 : vector<8x1xi1> to vector<8x32xi1>
    %902 = arith.select %901, %899, %846 : vector<8x32xi1>, vector<8x32xf32>
    %903 = vector.shape_cast %856 : vector<8x1xi1> to vector<8x1xi1>
    %904 = vector.broadcast %903 : vector<8x1xi1> to vector<8x32xi1>
    %905 = arith.select %904, %897, %849 : vector<8x32xi1>, vector<8x32xf32>
    %cst_134 = arith.constant 0.000000e+00 : f32
    %906 = vector.shape_cast %856 : vector<8x1xi1> to vector<8x1xi1>
    %907 = vector.broadcast %906 : vector<8x1xi1> to vector<8x32xi1>
    %908 = vector.broadcast %cst_134 : f32 to vector<8x32xf32>
    %909 = arith.select %907, %899, %908 : vector<8x32xi1>, vector<8x32xf32>
    %c0_135 = arith.constant 0 : index
    %c480 = arith.constant 480 : index
    %910 = vector.load %arg8[%c0_135, %c480] : memref<8x640xf32, #tpu.memory_space<vmem>>, vector<8x32xf32>
    tpu.vector_store %arg8[%c0_135, %c480], %909 {strides = array<i32>} : memref<8x640xf32, #tpu.memory_space<vmem>>, vector<8x32xf32>,
    %c16_i32 = arith.constant 16 : i32
    %911 = vector.broadcast %c16_i32 : i32 to vector<8x1xi32>
    %912 = arith.cmpi sgt, %7, %911 : vector<8x1xi32>
    %c128_136 = arith.constant 128 : index
    %c0_137 = arith.constant 0 : index
    %913 = vector.load %arg11[%c128_136, %c0_137] : memref<160x128xf32, #tpu.memory_space<vmem>>, vector<8x128xf32>
    %cst_138 = arith.constant dense<0.000000e+00> : vector<8x128xf32>
    %914 = tpu.matmul %877, %8, %cst_138 {dimension_numbers = #tpu.dot_dimension_numbers<[1], [0], [0], [1], [0, 0, 1, 1], [], []>} : vector<8x32xf32>, vector<32x128xf32>, vector<8x128xf32> -> vector<8x128xf32>
    %915 = arith.addf %913, %914 : vector<8x128xf32>
    %916 = arith.negf %915 : vector<8x128xf32>
    %917 = math.exp %916 : vector<8x128xf32>
    %cst_139 = arith.constant 1.000000e+00 : f32
    %918 = vector.broadcast %cst_139 : f32 to vector<8x128xf32>
    %919 = arith.addf %918, %917 : vector<8x128xf32>
    %920 = arith.divf %918, %919 : vector<8x128xf32>
    %921 = math.tanh %915 : vector<8x128xf32>
    %922 = vector.extract_strided_slice %920 {offsets = [0, 0], sizes = [8, 32], strides = [1, 1]} : vector<8x128xf32> to vector<8x32xf32>
    %923 = vector.extract_strided_slice %920 {offsets = [0, 32], sizes = [8, 32], strides = [1, 1]} : vector<8x128xf32> to vector<8x32xf32>
    %924 = vector.extract_strided_slice %920 {offsets = [0, 64], sizes = [8, 32], strides = [1, 1]} : vector<8x128xf32> to vector<8x32xf32>
    %925 = vector.extract_strided_slice %921 {offsets = [0, 96], sizes = [8, 32], strides = [1, 1]} : vector<8x128xf32> to vector<8x32xf32>
    %926 = arith.mulf %923, %880 : vector<8x32xf32>
    %927 = arith.mulf %922, %925 : vector<8x32xf32>
    %928 = arith.addf %926, %927 : vector<8x32xf32>
    %929 = math.tanh %928 : vector<8x32xf32>
    %930 = arith.mulf %924, %929 : vector<8x32xf32>
    %931 = vector.shape_cast %912 : vector<8x1xi1> to vector<8x1xi1>
    %932 = vector.broadcast %931 : vector<8x1xi1> to vector<8x32xi1>
    %933 = arith.select %932, %930, %877 : vector<8x32xi1>, vector<8x32xf32>
    %934 = vector.shape_cast %912 : vector<8x1xi1> to vector<8x1xi1>
    %935 = vector.broadcast %934 : vector<8x1xi1> to vector<8x32xi1>
    %936 = arith.select %935, %928, %880 : vector<8x32xi1>, vector<8x32xf32>
    %937 = tpu.concatenate %930, %902 in 1 : vector<8x32xf32>, vector<8x32xf32> -> vector<8x64xf32>
    %cst_140 = arith.constant dense<0.000000e+00> : vector<8x128xf32>
    %938 = tpu.matmul %937, %9, %cst_140 {dimension_numbers = #tpu.dot_dimension_numbers<[1], [0], [0], [1], [0, 0, 1, 1], [], []>} : vector<8x64xf32>, vector<64x128xf32>, vector<8x128xf32> -> vector<8x128xf32>
    %939 = vector.broadcast %10 : vector<1x128xf32> to vector<8x128xf32>
    %940 = arith.addf %938, %939 : vector<8x128xf32>
    %941 = arith.negf %940 : vector<8x128xf32>
    %942 = math.exp %941 : vector<8x128xf32>
    %cst_141 = arith.constant 1.000000e+00 : f32
    %943 = vector.broadcast %cst_141 : f32 to vector<8x128xf32>
    %944 = arith.addf %943, %942 : vector<8x128xf32>
    %945 = arith.divf %943, %944 : vector<8x128xf32>
    %946 = math.tanh %940 : vector<8x128xf32>
    %947 = vector.extract_strided_slice %945 {offsets = [0, 0], sizes = [8, 32], strides = [1, 1]} : vector<8x128xf32> to vector<8x32xf32>
    %948 = vector.extract_strided_slice %945 {offsets = [0, 32], sizes = [8, 32], strides = [1, 1]} : vector<8x128xf32> to vector<8x32xf32>
    %949 = vector.extract_strided_slice %945 {offsets = [0, 64], sizes = [8, 32], strides = [1, 1]} : vector<8x128xf32> to vector<8x32xf32>
    %950 = vector.extract_strided_slice %946 {offsets = [0, 96], sizes = [8, 32], strides = [1, 1]} : vector<8x128xf32> to vector<8x32xf32>
    %951 = arith.mulf %948, %905 : vector<8x32xf32>
    %952 = arith.mulf %947, %950 : vector<8x32xf32>
    %953 = arith.addf %951, %952 : vector<8x32xf32>
    %954 = math.tanh %953 : vector<8x32xf32>
    %955 = arith.mulf %949, %954 : vector<8x32xf32>
    %956 = vector.shape_cast %912 : vector<8x1xi1> to vector<8x1xi1>
    %957 = vector.broadcast %956 : vector<8x1xi1> to vector<8x32xi1>
    %958 = arith.select %957, %955, %902 : vector<8x32xi1>, vector<8x32xf32>
    %959 = vector.shape_cast %912 : vector<8x1xi1> to vector<8x1xi1>
    %960 = vector.broadcast %959 : vector<8x1xi1> to vector<8x32xi1>
    %961 = arith.select %960, %953, %905 : vector<8x32xi1>, vector<8x32xf32>
    %cst_142 = arith.constant 0.000000e+00 : f32
    %962 = vector.shape_cast %912 : vector<8x1xi1> to vector<8x1xi1>
    %963 = vector.broadcast %962 : vector<8x1xi1> to vector<8x32xi1>
    %964 = vector.broadcast %cst_142 : f32 to vector<8x32xf32>
    %965 = arith.select %963, %955, %964 : vector<8x32xi1>, vector<8x32xf32>
    %c0_143 = arith.constant 0 : index
    %c512 = arith.constant 512 : index
    %966 = vector.load %arg8[%c0_143, %c512] : memref<8x640xf32, #tpu.memory_space<vmem>>, vector<8x32xf32>
    tpu.vector_store %arg8[%c0_143, %c512], %965 {strides = array<i32>} : memref<8x640xf32, #tpu.memory_space<vmem>>, vector<8x32xf32>,
    %c17_i32 = arith.constant 17 : i32
    %967 = vector.broadcast %c17_i32 : i32 to vector<8x1xi32>
    %968 = arith.cmpi sgt, %7, %967 : vector<8x1xi32>
    %c136 = arith.constant 136 : index
    %c0_144 = arith.constant 0 : index
    %969 = vector.load %arg11[%c136, %c0_144] : memref<160x128xf32, #tpu.memory_space<vmem>>, vector<8x128xf32>
    %cst_145 = arith.constant dense<0.000000e+00> : vector<8x128xf32>
    %970 = tpu.matmul %933, %8, %cst_145 {dimension_numbers = #tpu.dot_dimension_numbers<[1], [0], [0], [1], [0, 0, 1, 1], [], []>} : vector<8x32xf32>, vector<32x128xf32>, vector<8x128xf32> -> vector<8x128xf32>
    %971 = arith.addf %969, %970 : vector<8x128xf32>
    %972 = arith.negf %971 : vector<8x128xf32>
    %973 = math.exp %972 : vector<8x128xf32>
    %cst_146 = arith.constant 1.000000e+00 : f32
    %974 = vector.broadcast %cst_146 : f32 to vector<8x128xf32>
    %975 = arith.addf %974, %973 : vector<8x128xf32>
    %976 = arith.divf %974, %975 : vector<8x128xf32>
    %977 = math.tanh %971 : vector<8x128xf32>
    %978 = vector.extract_strided_slice %976 {offsets = [0, 0], sizes = [8, 32], strides = [1, 1]} : vector<8x128xf32> to vector<8x32xf32>
    %979 = vector.extract_strided_slice %976 {offsets = [0, 32], sizes = [8, 32], strides = [1, 1]} : vector<8x128xf32> to vector<8x32xf32>
    %980 = vector.extract_strided_slice %976 {offsets = [0, 64], sizes = [8, 32], strides = [1, 1]} : vector<8x128xf32> to vector<8x32xf32>
    %981 = vector.extract_strided_slice %977 {offsets = [0, 96], sizes = [8, 32], strides = [1, 1]} : vector<8x128xf32> to vector<8x32xf32>
    %982 = arith.mulf %979, %936 : vector<8x32xf32>
    %983 = arith.mulf %978, %981 : vector<8x32xf32>
    %984 = arith.addf %982, %983 : vector<8x32xf32>
    %985 = math.tanh %984 : vector<8x32xf32>
    %986 = arith.mulf %980, %985 : vector<8x32xf32>
    %987 = vector.shape_cast %968 : vector<8x1xi1> to vector<8x1xi1>
    %988 = vector.broadcast %987 : vector<8x1xi1> to vector<8x32xi1>
    %989 = arith.select %988, %986, %933 : vector<8x32xi1>, vector<8x32xf32>
    %990 = vector.shape_cast %968 : vector<8x1xi1> to vector<8x1xi1>
    %991 = vector.broadcast %990 : vector<8x1xi1> to vector<8x32xi1>
    %992 = arith.select %991, %984, %936 : vector<8x32xi1>, vector<8x32xf32>
    %993 = tpu.concatenate %986, %958 in 1 : vector<8x32xf32>, vector<8x32xf32> -> vector<8x64xf32>
    %cst_147 = arith.constant dense<0.000000e+00> : vector<8x128xf32>
    %994 = tpu.matmul %993, %9, %cst_147 {dimension_numbers = #tpu.dot_dimension_numbers<[1], [0], [0], [1], [0, 0, 1, 1], [], []>} : vector<8x64xf32>, vector<64x128xf32>, vector<8x128xf32> -> vector<8x128xf32>
    %995 = vector.broadcast %10 : vector<1x128xf32> to vector<8x128xf32>
    %996 = arith.addf %994, %995 : vector<8x128xf32>
    %997 = arith.negf %996 : vector<8x128xf32>
    %998 = math.exp %997 : vector<8x128xf32>
    %cst_148 = arith.constant 1.000000e+00 : f32
    %999 = vector.broadcast %cst_148 : f32 to vector<8x128xf32>
    %1000 = arith.addf %999, %998 : vector<8x128xf32>
    %1001 = arith.divf %999, %1000 : vector<8x128xf32>
    %1002 = math.tanh %996 : vector<8x128xf32>
    %1003 = vector.extract_strided_slice %1001 {offsets = [0, 0], sizes = [8, 32], strides = [1, 1]} : vector<8x128xf32> to vector<8x32xf32>
    %1004 = vector.extract_strided_slice %1001 {offsets = [0, 32], sizes = [8, 32], strides = [1, 1]} : vector<8x128xf32> to vector<8x32xf32>
    %1005 = vector.extract_strided_slice %1001 {offsets = [0, 64], sizes = [8, 32], strides = [1, 1]} : vector<8x128xf32> to vector<8x32xf32>
    %1006 = vector.extract_strided_slice %1002 {offsets = [0, 96], sizes = [8, 32], strides = [1, 1]} : vector<8x128xf32> to vector<8x32xf32>
    %1007 = arith.mulf %1004, %961 : vector<8x32xf32>
    %1008 = arith.mulf %1003, %1006 : vector<8x32xf32>
    %1009 = arith.addf %1007, %1008 : vector<8x32xf32>
    %1010 = math.tanh %1009 : vector<8x32xf32>
    %1011 = arith.mulf %1005, %1010 : vector<8x32xf32>
    %1012 = vector.shape_cast %968 : vector<8x1xi1> to vector<8x1xi1>
    %1013 = vector.broadcast %1012 : vector<8x1xi1> to vector<8x32xi1>
    %1014 = arith.select %1013, %1011, %958 : vector<8x32xi1>, vector<8x32xf32>
    %1015 = vector.shape_cast %968 : vector<8x1xi1> to vector<8x1xi1>
    %1016 = vector.broadcast %1015 : vector<8x1xi1> to vector<8x32xi1>
    %1017 = arith.select %1016, %1009, %961 : vector<8x32xi1>, vector<8x32xf32>
    %cst_149 = arith.constant 0.000000e+00 : f32
    %1018 = vector.shape_cast %968 : vector<8x1xi1> to vector<8x1xi1>
    %1019 = vector.broadcast %1018 : vector<8x1xi1> to vector<8x32xi1>
    %1020 = vector.broadcast %cst_149 : f32 to vector<8x32xf32>
    %1021 = arith.select %1019, %1011, %1020 : vector<8x32xi1>, vector<8x32xf32>
    %c0_150 = arith.constant 0 : index
    %c544 = arith.constant 544 : index
    %1022 = vector.load %arg8[%c0_150, %c544] : memref<8x640xf32, #tpu.memory_space<vmem>>, vector<8x32xf32>
    tpu.vector_store %arg8[%c0_150, %c544], %1021 {strides = array<i32>} : memref<8x640xf32, #tpu.memory_space<vmem>>, vector<8x32xf32>,
    %c18_i32 = arith.constant 18 : i32
    %1023 = vector.broadcast %c18_i32 : i32 to vector<8x1xi32>
    %1024 = arith.cmpi sgt, %7, %1023 : vector<8x1xi32>
    %c144 = arith.constant 144 : index
    %c0_151 = arith.constant 0 : index
    %1025 = vector.load %arg11[%c144, %c0_151] : memref<160x128xf32, #tpu.memory_space<vmem>>, vector<8x128xf32>
    %cst_152 = arith.constant dense<0.000000e+00> : vector<8x128xf32>
    %1026 = tpu.matmul %989, %8, %cst_152 {dimension_numbers = #tpu.dot_dimension_numbers<[1], [0], [0], [1], [0, 0, 1, 1], [], []>} : vector<8x32xf32>, vector<32x128xf32>, vector<8x128xf32> -> vector<8x128xf32>
    %1027 = arith.addf %1025, %1026 : vector<8x128xf32>
    %1028 = arith.negf %1027 : vector<8x128xf32>
    %1029 = math.exp %1028 : vector<8x128xf32>
    %cst_153 = arith.constant 1.000000e+00 : f32
    %1030 = vector.broadcast %cst_153 : f32 to vector<8x128xf32>
    %1031 = arith.addf %1030, %1029 : vector<8x128xf32>
    %1032 = arith.divf %1030, %1031 : vector<8x128xf32>
    %1033 = math.tanh %1027 : vector<8x128xf32>
    %1034 = vector.extract_strided_slice %1032 {offsets = [0, 0], sizes = [8, 32], strides = [1, 1]} : vector<8x128xf32> to vector<8x32xf32>
    %1035 = vector.extract_strided_slice %1032 {offsets = [0, 32], sizes = [8, 32], strides = [1, 1]} : vector<8x128xf32> to vector<8x32xf32>
    %1036 = vector.extract_strided_slice %1032 {offsets = [0, 64], sizes = [8, 32], strides = [1, 1]} : vector<8x128xf32> to vector<8x32xf32>
    %1037 = vector.extract_strided_slice %1033 {offsets = [0, 96], sizes = [8, 32], strides = [1, 1]} : vector<8x128xf32> to vector<8x32xf32>
    %1038 = arith.mulf %1035, %992 : vector<8x32xf32>
    %1039 = arith.mulf %1034, %1037 : vector<8x32xf32>
    %1040 = arith.addf %1038, %1039 : vector<8x32xf32>
    %1041 = math.tanh %1040 : vector<8x32xf32>
    %1042 = arith.mulf %1036, %1041 : vector<8x32xf32>
    %1043 = vector.shape_cast %1024 : vector<8x1xi1> to vector<8x1xi1>
    %1044 = vector.broadcast %1043 : vector<8x1xi1> to vector<8x32xi1>
    %1045 = arith.select %1044, %1042, %989 : vector<8x32xi1>, vector<8x32xf32>
    %1046 = vector.shape_cast %1024 : vector<8x1xi1> to vector<8x1xi1>
    %1047 = vector.broadcast %1046 : vector<8x1xi1> to vector<8x32xi1>
    %1048 = arith.select %1047, %1040, %992 : vector<8x32xi1>, vector<8x32xf32>
    %1049 = tpu.concatenate %1042, %1014 in 1 : vector<8x32xf32>, vector<8x32xf32> -> vector<8x64xf32>
    %cst_154 = arith.constant dense<0.000000e+00> : vector<8x128xf32>
    %1050 = tpu.matmul %1049, %9, %cst_154 {dimension_numbers = #tpu.dot_dimension_numbers<[1], [0], [0], [1], [0, 0, 1, 1], [], []>} : vector<8x64xf32>, vector<64x128xf32>, vector<8x128xf32> -> vector<8x128xf32>
    %1051 = vector.broadcast %10 : vector<1x128xf32> to vector<8x128xf32>
    %1052 = arith.addf %1050, %1051 : vector<8x128xf32>
    %1053 = arith.negf %1052 : vector<8x128xf32>
    %1054 = math.exp %1053 : vector<8x128xf32>
    %cst_155 = arith.constant 1.000000e+00 : f32
    %1055 = vector.broadcast %cst_155 : f32 to vector<8x128xf32>
    %1056 = arith.addf %1055, %1054 : vector<8x128xf32>
    %1057 = arith.divf %1055, %1056 : vector<8x128xf32>
    %1058 = math.tanh %1052 : vector<8x128xf32>
    %1059 = vector.extract_strided_slice %1057 {offsets = [0, 0], sizes = [8, 32], strides = [1, 1]} : vector<8x128xf32> to vector<8x32xf32>
    %1060 = vector.extract_strided_slice %1057 {offsets = [0, 32], sizes = [8, 32], strides = [1, 1]} : vector<8x128xf32> to vector<8x32xf32>
    %1061 = vector.extract_strided_slice %1057 {offsets = [0, 64], sizes = [8, 32], strides = [1, 1]} : vector<8x128xf32> to vector<8x32xf32>
    %1062 = vector.extract_strided_slice %1058 {offsets = [0, 96], sizes = [8, 32], strides = [1, 1]} : vector<8x128xf32> to vector<8x32xf32>
    %1063 = arith.mulf %1060, %1017 : vector<8x32xf32>
    %1064 = arith.mulf %1059, %1062 : vector<8x32xf32>
    %1065 = arith.addf %1063, %1064 : vector<8x32xf32>
    %1066 = math.tanh %1065 : vector<8x32xf32>
    %1067 = arith.mulf %1061, %1066 : vector<8x32xf32>
    %1068 = vector.shape_cast %1024 : vector<8x1xi1> to vector<8x1xi1>
    %1069 = vector.broadcast %1068 : vector<8x1xi1> to vector<8x32xi1>
    %1070 = arith.select %1069, %1067, %1014 : vector<8x32xi1>, vector<8x32xf32>
    %1071 = vector.shape_cast %1024 : vector<8x1xi1> to vector<8x1xi1>
    %1072 = vector.broadcast %1071 : vector<8x1xi1> to vector<8x32xi1>
    %1073 = arith.select %1072, %1065, %1017 : vector<8x32xi1>, vector<8x32xf32>
    %cst_156 = arith.constant 0.000000e+00 : f32
    %1074 = vector.shape_cast %1024 : vector<8x1xi1> to vector<8x1xi1>
    %1075 = vector.broadcast %1074 : vector<8x1xi1> to vector<8x32xi1>
    %1076 = vector.broadcast %cst_156 : f32 to vector<8x32xf32>
    %1077 = arith.select %1075, %1067, %1076 : vector<8x32xi1>, vector<8x32xf32>
    %c0_157 = arith.constant 0 : index
    %c576 = arith.constant 576 : index
    %1078 = vector.load %arg8[%c0_157, %c576] : memref<8x640xf32, #tpu.memory_space<vmem>>, vector<8x32xf32>
    tpu.vector_store %arg8[%c0_157, %c576], %1077 {strides = array<i32>} : memref<8x640xf32, #tpu.memory_space<vmem>>, vector<8x32xf32>,
    %c19_i32 = arith.constant 19 : i32
    %1079 = vector.broadcast %c19_i32 : i32 to vector<8x1xi32>
    %1080 = arith.cmpi sgt, %7, %1079 : vector<8x1xi32>
    %c152 = arith.constant 152 : index
    %c0_158 = arith.constant 0 : index
    %1081 = vector.load %arg11[%c152, %c0_158] : memref<160x128xf32, #tpu.memory_space<vmem>>, vector<8x128xf32>
    %cst_159 = arith.constant dense<0.000000e+00> : vector<8x128xf32>
    %1082 = tpu.matmul %1045, %8, %cst_159 {dimension_numbers = #tpu.dot_dimension_numbers<[1], [0], [0], [1], [0, 0, 1, 1], [], []>} : vector<8x32xf32>, vector<32x128xf32>, vector<8x128xf32> -> vector<8x128xf32>
    %1083 = arith.addf %1081, %1082 : vector<8x128xf32>
    %1084 = arith.negf %1083 : vector<8x128xf32>
    %1085 = math.exp %1084 : vector<8x128xf32>
    %cst_160 = arith.constant 1.000000e+00 : f32
    %1086 = vector.broadcast %cst_160 : f32 to vector<8x128xf32>
    %1087 = arith.addf %1086, %1085 : vector<8x128xf32>
    %1088 = arith.divf %1086, %1087 : vector<8x128xf32>
    %1089 = math.tanh %1083 : vector<8x128xf32>
    %1090 = vector.extract_strided_slice %1088 {offsets = [0, 0], sizes = [8, 32], strides = [1, 1]} : vector<8x128xf32> to vector<8x32xf32>
    %1091 = vector.extract_strided_slice %1088 {offsets = [0, 32], sizes = [8, 32], strides = [1, 1]} : vector<8x128xf32> to vector<8x32xf32>
    %1092 = vector.extract_strided_slice %1088 {offsets = [0, 64], sizes = [8, 32], strides = [1, 1]} : vector<8x128xf32> to vector<8x32xf32>
    %1093 = vector.extract_strided_slice %1089 {offsets = [0, 96], sizes = [8, 32], strides = [1, 1]} : vector<8x128xf32> to vector<8x32xf32>
    %1094 = arith.mulf %1091, %1048 : vector<8x32xf32>
    %1095 = arith.mulf %1090, %1093 : vector<8x32xf32>
    %1096 = arith.addf %1094, %1095 : vector<8x32xf32>
    %1097 = math.tanh %1096 : vector<8x32xf32>
    %1098 = arith.mulf %1092, %1097 : vector<8x32xf32>
    %1099 = vector.shape_cast %1080 : vector<8x1xi1> to vector<8x1xi1>
    %1100 = vector.broadcast %1099 : vector<8x1xi1> to vector<8x32xi1>
    %1101 = arith.select %1100, %1098, %1045 : vector<8x32xi1>, vector<8x32xf32>
    %1102 = vector.shape_cast %1080 : vector<8x1xi1> to vector<8x1xi1>
    %1103 = vector.broadcast %1102 : vector<8x1xi1> to vector<8x32xi1>
    %1104 = arith.select %1103, %1096, %1048 : vector<8x32xi1>, vector<8x32xf32>
    %1105 = tpu.concatenate %1098, %1070 in 1 : vector<8x32xf32>, vector<8x32xf32> -> vector<8x64xf32>
    %cst_161 = arith.constant dense<0.000000e+00> : vector<8x128xf32>
    %1106 = tpu.matmul %1105, %9, %cst_161 {dimension_numbers = #tpu.dot_dimension_numbers<[1], [0], [0], [1], [0, 0, 1, 1], [], []>} : vector<8x64xf32>, vector<64x128xf32>, vector<8x128xf32> -> vector<8x128xf32>
    %1107 = vector.broadcast %10 : vector<1x128xf32> to vector<8x128xf32>
    %1108 = arith.addf %1106, %1107 : vector<8x128xf32>
    %1109 = arith.negf %1108 : vector<8x128xf32>
    %1110 = math.exp %1109 : vector<8x128xf32>
    %cst_162 = arith.constant 1.000000e+00 : f32
    %1111 = vector.broadcast %cst_162 : f32 to vector<8x128xf32>
    %1112 = arith.addf %1111, %1110 : vector<8x128xf32>
    %1113 = arith.divf %1111, %1112 : vector<8x128xf32>
    %1114 = math.tanh %1108 : vector<8x128xf32>
    %1115 = vector.extract_strided_slice %1113 {offsets = [0, 0], sizes = [8, 32], strides = [1, 1]} : vector<8x128xf32> to vector<8x32xf32>
    %1116 = vector.extract_strided_slice %1113 {offsets = [0, 32], sizes = [8, 32], strides = [1, 1]} : vector<8x128xf32> to vector<8x32xf32>
    %1117 = vector.extract_strided_slice %1113 {offsets = [0, 64], sizes = [8, 32], strides = [1, 1]} : vector<8x128xf32> to vector<8x32xf32>
    %1118 = vector.extract_strided_slice %1114 {offsets = [0, 96], sizes = [8, 32], strides = [1, 1]} : vector<8x128xf32> to vector<8x32xf32>
    %1119 = arith.mulf %1116, %1073 : vector<8x32xf32>
    %1120 = arith.mulf %1115, %1118 : vector<8x32xf32>
    %1121 = arith.addf %1119, %1120 : vector<8x32xf32>
    %1122 = math.tanh %1121 : vector<8x32xf32>
    %1123 = arith.mulf %1117, %1122 : vector<8x32xf32>
    %1124 = vector.shape_cast %1080 : vector<8x1xi1> to vector<8x1xi1>
    %1125 = vector.broadcast %1124 : vector<8x1xi1> to vector<8x32xi1>
    %1126 = arith.select %1125, %1123, %1070 : vector<8x32xi1>, vector<8x32xf32>
    %1127 = vector.shape_cast %1080 : vector<8x1xi1> to vector<8x1xi1>
    %1128 = vector.broadcast %1127 : vector<8x1xi1> to vector<8x32xi1>
    %1129 = arith.select %1128, %1121, %1073 : vector<8x32xi1>, vector<8x32xf32>
    %cst_163 = arith.constant 0.000000e+00 : f32
    %1130 = vector.shape_cast %1080 : vector<8x1xi1> to vector<8x1xi1>
    %1131 = vector.broadcast %1130 : vector<8x1xi1> to vector<8x32xi1>
    %1132 = vector.broadcast %cst_163 : f32 to vector<8x32xf32>
    %1133 = arith.select %1131, %1123, %1132 : vector<8x32xi1>, vector<8x32xf32>
    %c0_164 = arith.constant 0 : index
    %c608 = arith.constant 608 : index
    %1134 = vector.load %arg8[%c0_164, %c608] : memref<8x640xf32, #tpu.memory_space<vmem>>, vector<8x32xf32>
    tpu.vector_store %arg8[%c0_164, %c608], %1133 {strides = array<i32>} : memref<8x640xf32, #tpu.memory_space<vmem>>, vector<8x32xf32>,
    %c0_165 = arith.constant 0 : index
    %c0_166 = arith.constant 0 : index
    %c0_167 = arith.constant 0 : index
    %1135 = vector.load %arg9[%c0_165, %c0_166, %c0_167] : memref<2x8x32xf32, #tpu.memory_space<vmem>>, vector<1x8x32xf32>
    %1136 = vector.shape_cast %1135 : vector<1x8x32xf32> to vector<8x32xf32>
    %1137 = vector.shape_cast %1101 : vector<8x32xf32> to vector<1x8x32xf32>
    tpu.vector_store %arg9[%c0_165, %c0_166, %c0_167], %1137 {strides = array<i32>} : memref<2x8x32xf32, #tpu.memory_space<vmem>>, vector<1x8x32xf32>,
    %c0_168 = arith.constant 0 : index
    %c0_169 = arith.constant 0 : index
    %c0_170 = arith.constant 0 : index
    %1138 = vector.load %arg10[%c0_168, %c0_169, %c0_170] : memref<2x8x32xf32, #tpu.memory_space<vmem>>, vector<1x8x32xf32>
    %1139 = vector.shape_cast %1138 : vector<1x8x32xf32> to vector<8x32xf32>
    %1140 = vector.shape_cast %1104 : vector<8x32xf32> to vector<1x8x32xf32>
    tpu.vector_store %arg10[%c0_168, %c0_169, %c0_170], %1140 {strides = array<i32>} : memref<2x8x32xf32, #tpu.memory_space<vmem>>, vector<1x8x32xf32>,
    %c1 = arith.constant 1 : index
    %c0_171 = arith.constant 0 : index
    %c0_172 = arith.constant 0 : index
    %1141 = vector.load %arg9[%c1, %c0_171, %c0_172] : memref<2x8x32xf32, #tpu.memory_space<vmem>>, vector<1x8x32xf32>
    %1142 = vector.shape_cast %1141 : vector<1x8x32xf32> to vector<8x32xf32>
    %1143 = vector.shape_cast %1126 : vector<8x32xf32> to vector<1x8x32xf32>
    tpu.vector_store %arg9[%c1, %c0_171, %c0_172], %1143 {strides = array<i32>} : memref<2x8x32xf32, #tpu.memory_space<vmem>>, vector<1x8x32xf32>,
    %c1_173 = arith.constant 1 : index
    %c0_174 = arith.constant 0 : index
    %c0_175 = arith.constant 0 : index
    %1144 = vector.load %arg10[%c1_173, %c0_174, %c0_175] : memref<2x8x32xf32, #tpu.memory_space<vmem>>, vector<1x8x32xf32>
    %1145 = vector.shape_cast %1144 : vector<1x8x32xf32> to vector<8x32xf32>
    %1146 = vector.shape_cast %1129 : vector<8x32xf32> to vector<1x8x32xf32>
    tpu.vector_store %arg10[%c1_173, %c0_174, %c0_175], %1146 {strides = array<i32>} : memref<2x8x32xf32, #tpu.memory_space<vmem>>, vector<1x8x32xf32>,
    return
  }
  func.func @transform_0(%arg0: i32) -> (i32, i32) {
    %c0_i32 = arith.constant 0 : i32
    %c0_i32_0 = arith.constant 0 : i32
    %c0_i32_1 = arith.constant 0 : i32
    return %c0_i32, %c0_i32_0 : i32, i32
  }
  func.func @transform_1(%arg0: i32) -> (i32, i32) {
    %c0_i32 = arith.constant 0 : i32
    %c0_i32_0 = arith.constant 0 : i32
    %c0_i32_1 = arith.constant 0 : i32
    return %c0_i32, %c0_i32_0 : i32, i32
  }
  func.func @transform_2(%arg0: i32) -> (i32, i32) {
    %c0_i32 = arith.constant 0 : i32
    %c0_i32_0 = arith.constant 0 : i32
    %c0_i32_1 = arith.constant 0 : i32
    return %c0_i32, %c0_i32_0 : i32, i32
  }
  func.func @transform_3(%arg0: i32) -> (i32, i32) {
    %c0_i32 = arith.constant 0 : i32
    %c0_i32_0 = arith.constant 0 : i32
    %c0_i32_1 = arith.constant 0 : i32
    return %c0_i32, %c0_i32_0 : i32, i32
  }
  func.func @transform_4(%arg0: i32) -> (i32, i32) {
    %c0_i32 = arith.constant 0 : i32
    %c0_i32_0 = arith.constant 0 : i32
    %c0_i32_1 = arith.constant 0 : i32
    return %c0_i32, %c0_i32_0 : i32, i32
  }
  func.func @transform_5(%arg0: i32) -> (i32, i32) {
    %c0_i32 = arith.constant 0 : i32
    %c0_i32_0 = arith.constant 0 : i32
    %c0_i32_1 = arith.constant 0 : i32
    return %c0_i32, %c0_i32_0 : i32, i32
  }
  func.func @transform_6(%arg0: i32) -> (i32, i32) {
    %c0_i32 = arith.constant 0 : i32
    %c0_i32_0 = arith.constant 0 : i32
    %c0_i32_1 = arith.constant 0 : i32
    return %c0_i32, %c0_i32_0 : i32, i32
  }
  func.func @transform_7(%arg0: i32) -> (i32, i32) {
    %c0_i32 = arith.constant 0 : i32
    %c0_i32_0 = arith.constant 0 : i32
    %c0_i32_1 = arith.constant 0 : i32
    return %c0_i32, %c0_i32_0 : i32, i32
  }
  func.func @transform_8(%arg0: i32) -> (i32, i32, i32) {
    %c0_i32 = arith.constant 0 : i32
    %c0_i32_0 = arith.constant 0 : i32
    %c0_i32_1 = arith.constant 0 : i32
    %c0_i32_2 = arith.constant 0 : i32
    return %c0_i32, %c0_i32_0, %c0_i32_1 : i32, i32, i32
  }
  func.func @transform_9(%arg0: i32) -> (i32, i32, i32) {
    %c0_i32 = arith.constant 0 : i32
    %c0_i32_0 = arith.constant 0 : i32
    %c0_i32_1 = arith.constant 0 : i32
    %c0_i32_2 = arith.constant 0 : i32
    return %c0_i32, %c0_i32_0, %c0_i32_1 : i32, i32, i32
  }
}

</mosaic_0001>

<bundles_post_ra>
// kernel: tpu_custom_call.1
= control target key start
LH: loop header
LB: loop body
LE: loop exit
PB: predicated region body
PF: predicated region fallthrough
CT: control target
= control target key end

     0   :  { %15 = vsyncpa [#allocation4], 0  ;;  %vm60_vm0 = vcmask 130048   ;;  %s8456_s0 = inlined_call_operand.vmem [shape: s32[8,1], index: 0, kind: input, shape index: {}]   ;;  %s8457_s1 = inlined_call_operand.vmem [shape: f32[160,16], index: 1, kind: input, shape index: {}]   ;;  %s8458_s2 = inlined_call_operand.vmem [shape: f32[16,128], index: 2, kind: input, shape index: {}]   ;;  %s8459_s3 = inlined_call_operand.vmem [shape: f32[1,128], index: 3, kind: input, shape index: {}]   ;;  %s8460_s4 = inlined_call_operand.vmem [shape: f32[32,128], index: 4, kind: input, shape index: {}]   ;;  %s8461_s5 = inlined_call_operand.vmem [shape: f32[64,128], index: 5, kind: input, shape index: {}]   ;;  %s8462_s6 = inlined_call_operand.vmem [shape: f32[1,128], index: 6, kind: input, shape index: {}]   ;;  %s8463_s7 = inlined_call_operand.hbm [shape: f32[8,640], index: 7, kind: output, shape index: {0}]   ;;  %s8464_s8 = inlined_call_operand.hbm [shape: f32[2,8,32], index: 8, kind: output, shape index: {1}]   ;;  %s8465_s9 = inlined_call_operand.hbm [shape: f32[2,8,32], index: 9, kind: output, shape index: {2}]  }
   0x1   :  { %v51_v0 = vld [vmem:[%s8458_s2] sm:$0xff]  ;;  %v52_v1 = vld [vmem:[%s8458_s2 + $0x8] sm:$0xff] }
   0x2   :  { %v47_v2 = vld [vmem:[%s8457_s1 + $0x80] sm:$0xff]  ;;  %v5867_v3 = vpack.c.bf16 %v52_v1, %v51_v0  ;;  %v308_v5 = vld [vmem:[%s8460_s4 + $0x8] sm:$0xff] }
   0x3   :  { %5261 = vmatprep.mubr.msk.f32.mxu1 %vm60_vm0, %v47_v2  ;;  %v307_v4 = vld [vmem:[%s8460_s4] sm:$0xff]  ;;  %v48_v7 = vld [vmem:[%s8457_s1 + $0x88] sm:$0xff] }
   0x4   :  { %v31_v6 = vld [vmem:[%s8457_s1] sm:$0xff]  ;;  %6231 = vmatprep.subr.bf16.mxu1 %v5867_v3  ;;  %5868 = vmatprep.subr.bf16.mxu0 %v5867_v3  ;;  %v6727_v8 = vpack.c.bf16 %v308_v5, %v307_v4  ;;  %v32_v9 = vld [vmem:[%s8457_s1 + $0x8] sm:$0xff] }
   0x5   :  { %6232 = vmatpush3.bf16.msra.mxu1 %v5867_v3  ;;  %5870 = vmatpush3.bf16.msra.mxu0 %v5867_v3 }
   0x6   :  { %16 = vsyncpa [#allocation6], 0  ;;  %v8468_v10 = vmov 0.0|0.0   ;;  %v49_v11 = vld [vmem:[%s8457_s1 + $0x90] sm:$0xff]  ;;  %5237 = vmatprep.mubr.msk.f32.mxu0 %vm60_vm0, %v31_v6  ;;  %v310_v13 = vld [vmem:[%s8460_s4 + $0x18] sm:$0xff]  ;;  %vm6644_vm1 = vmmov 0  }
   0x7   :  { %5871 = vmatprep.subr.bf16.mxu1 %v8468_v10  ;;  %v309_v12 = vld [vmem:[%s8460_s4 + $0x10] sm:$0xff]  ;;  %5895 = vmatprep.subr.bf16.mxu0 %v8468_v10  ;;  %v50_v14 = vld [vmem:[%s8457_s1 + $0x98] sm:$0xff]  ;;  %v8471_v16 = vmov 0.0   ;;  %v6771_v21 = vld [vmem:[%s8459_s3] ss:$0 sm:$0xff]  ;;  %s6646_s12 = smov 32  }
   0x8   :  { %5262 = vmatmul.mubr.msk.f32.vlgmr.msra.gmra.mrb[0].mxu1 %vm60_vm0, %v48_v7  ;;  %5238 = vmatmul.mubr.msk.f32.vlgmr.msra.gmra.mrb[0].mxu0 %vm60_vm0, %v32_v9  ;;  %v6751_v15 = vpack.c.bf16 %v310_v13, %v309_v12  ;;  %v8473_v35 = vmov 0   ;;  %v6788_v39 = vld [vmem:[%s8456_s0] sm:$0xff]  ;;  %v312_v43 = vld [vmem:[%s8461_s5 + $0x8] sm:$0xff]  ;;  %v313_v44 = vld [vmem:[%s8461_s5 + $0x10] sm:$0xff]  ;;  %vm322_vm4 = vcmask 261120   ;;  %vm439_vm5 = vcmask 523264  }
   0x9   :  { %5873 = vmatpush3.bf16.msra.mxu1 %v6727_v8  ;;  %5264 = vmatprep.mubr.msk.f32.mxu1 %vm60_vm0, %v49_v11  ;;  %vm320_vm2 = vcmp.gt.s32.totalorder %v6788_v39, 0  ;;  %v311_v42 = vld [vmem:[%s8461_s5] sm:$0xff]  ;;  %v314_v46 = vld [vmem:[%s8461_s5 + $0x18] sm:$0xff]  ;;  %v316_v49 = vld [vmem:[%s8461_s5 + $0x28] sm:$0xff]  ;;  %vm544_vm6 = vcmp.gt.s32.totalorder %v6788_v39, 1  ;;  %s6649_s17 = smov 96  }
   0xa   :  { %5874 = vmatprep.subr.bf16.mxu1 %v8468_v10  ;;  %6245 = vset.pattern.permute.xlu1 %v8473_v35  ;;  %v421_v41 = vsel %vm320_vm2, 1, %v8473_v35  ;;  %v6802_v45 = vpack.c.bf16 %v312_v43, %v311_v42  ;;  %v6808_v47 = vpack.c.bf16 %v314_v46, %v313_v44  ;;  %v315_v48 = vld [vmem:[%s8461_s5 + $0x20] sm:$0xff]  ;;  %v317_v51 = vld [vmem:[%s8461_s5 + $0x30] sm:$0xff]  ;;  %v318_v52 = vld [vmem:[%s8461_s5 + $0x38] sm:$0xff]  ;;  %s6648_s5 = smov 64   ;;  %vm767_vm8 = vcmp.gt.s32.totalorder %v6788_v39, 2 }
   0xb   :  { %6246 = vset.pattern.permute.xlu0 %v8473_v35  ;;  %v6820_v50 = vpack.c.bf16 %v316_v49, %v315_v48  ;;  %v6832_v53 = vpack.c.bf16 %v318_v52, %v317_v51  ;;  %v6869_v61 = vld [vmem:[%s8462_s6] ss:$0 sm:$0xff]  ;;  %v36_v42 = vld [vmem:[%s8457_s1 + $0x28] sm:$0xff]  ;;  %v37_v43 = vld [vmem:[%s8457_s1 + $0x30] sm:$0xff]  ;;  %vm987_vm10 = vcmp.gt.s32.totalorder %v6788_v39, 3  ;;  %vm1211_vm12 = vcmp.gt.s32.totalorder %v6788_v39, 4 }
   0xc   :  { %5265 = vmatmul.mubr.msk.f32.gmra.mrb[2].mxu1 %vm60_vm0, %v50_v14  ;;  %5897 = vmatpush3.bf16.msra.mxu0 %v6802_v45  ;;  %v38_v46 = vld [vmem:[%s8457_s1 + $0x38] sm:$0xff]  ;;  %v39_v48 = vld [vmem:[%s8457_s1 + $0x40] sm:$0xff]  ;;  %v40_v49 = vld [vmem:[%s8457_s1 + $0x48] sm:$0xff]  ;;  %vm1434_vm14 = vcmp.gt.s32.totalorder %v6788_v39, 5  ;;  %s6652_s27 = smov [#allocation7]  }
   0xd   :  { %5876 = vmatpush3.bf16.msra.mxu1 %v6751_v15  ;;  %5275 = vmatprep.mubr.msk.f32.mxu1 %vm6644_vm1, %v8471_v16  ;;  %v41_v51 = vld [vmem:[%s8457_s1 + $0x50] sm:$0xff]  ;;  %v42_v52 = vld [vmem:[%s8457_s1 + $0x58] sm:$0xff]  ;;  %s4812_s28 = sshll.u32 %s6652_s27, 4  ;;  %s8400_s28 = int_to_ptr.vmem [resolvable:$true] %s4812_s28 }
   0xe   :  { %5877 = vmatprep.subr.bf16.mxu1 %v8468_v10  ;;  %5898 = vmatprep.subr.bf16.mxu0 %v8468_v10 }
  0x10   :  { %5276 = vmatmul.mubr.f32.vlgmr.msra.gmra.mrb[4].mxu1 %v8471_v16  ;;  %5900 = vmatpush3.bf16.msra.mxu0 %v6808_v47 }
  0x11   :  { %5294 = vmatprep.mubr.msk.f32.mxu1 %vm6644_vm1, %v8471_v16  ;;  %5879 = vmatpush3.bf16.msra.mxu1 %v6802_v45 }
  0x12   :  { %5880 = vmatprep.subr.bf16.mxu1 %v8468_v10  ;;  %5901 = vmatprep.subr.bf16.mxu0 %v8468_v10 }
  0x14   :  { %5903 = vmatpush3.bf16.msra.mxu0 %v6820_v50 }
  0x15   :  { %5882 = vmatpush3.bf16.msra.mxu1 %v6808_v47  ;;  %5904 = vmatprep.subr.bf16.mxu0 %v8468_v10 }
  0x16   :  { %5883 = vmatprep.subr.bf16.mxu1 %v8468_v10 }
  0x18   :  { %5906 = vmatpush3.bf16.msra.mxu0 %v6832_v53 }
  0x19   :  { %5885 = vmatpush3.bf16.msra.mxu1 %v6820_v50  ;;  %5925 = vmatprep.subr.bf16.mxu0 %v8468_v10 }
  0x1a   :  { %5886 = vmatprep.subr.bf16.mxu1 %v8468_v10 }
  0x1d   :  { %5888 = vmatpush3.bf16.msra.mxu1 %v6832_v53 }
  0x1e   :  { %5889 = vmatprep.subr.bf16.mxu1 %v8468_v10 }
  0xdb   :  { %v6762_v17 = vpop.f32.mrb[0].mxu1  ;;  %v6764_v18 = vpop.f32.mrb[0].mxu0 }
  0xdc   :  { %v6766_v19 = vpop.f32.mrb[1].mxu1  ;;  %v187_v20 = vpop.f32.mrb[1].mxu0  ;;  %v193_v2 = vadd.f32 %v6764_v18, %v6771_v21 }
  0xdd   :  { %v188_v24 = vadd.f32 %v6771_v21, %v187_v20 }
  0xdf   :  { %v6773_v22 = vpop.f32.mrb[2].mxu1 }
  0xe0   :  { %v6775_v23 = vpop.f32.mrb[3].mxu1 }
  0xe3   :  { %v392_v25 = vpop.f32.mrb[4].mxu1 }
  0xe4   :  { %v396_v26 = vadd.f32 %v392_v25, %v188_v24  ;;  %v5277_v27 = vpop.f32.mrb[5].mxu1  ;;  %v646_v25 = vsel %vm544_vm6, 1, %v8473_v35 }
  0xe6   :  { %6247 = vtanh.f32 %v396_v26  ;;  %v4851_v29 = vmul.f32 -1.442695, %v396_v26 }
  0xe8   :  { %6249 = vpow2.f32 %v4851_v29 }
  0xf0   :  { %v6248_v28 = vpop.eup %6247 }
  0xf1   :  { %406 = vrot.lane.b32.xlu0 %v6248_v28, %s6646_s12 }
  0xf2   :  { %v6250_v30 = vpop.eup %6249 }
  0xf3   :  { %v400_v31 = vadd.f32 1.0, %v6250_v30 }
  0xf5   :  { %6251 = vrcp.f32 %v400_v31 }
  0xff   :  { %v6252_v32 = vpop.eup %6251 }
 0x100   :  { %v404_v36 = vmul.f32 0.0, %v6252_v32 }
 0x163   :  { %v407_v33 = vpop.permute.xlu0 %406 }
 0x164   :  { %v409_v34 = vmul.f32 %v6252_v32, %v407_v33 }
 0x166   :  { %411 = vrot.lane.b32.xlu0 %v409_v34, %s6646_s12 }
 0x1d8   :  { %v412_v37 = vpop.permute.xlu0 %411 }
 0x1d9   :  { %v6782_v38 = vadd.f32 %v412_v37, %v404_v36 }
 0x1db   :  { %6253 = vtanh.f32 %v6782_v38 }
 0x1e5   :  { %v6254_v40 = vpop.eup %6253 }
 0x1e6   :  { %417 = vrot.lane.b32.xlu1 %v6254_v40, %s6646_s12  ;;  %v33_v40 = vld [vmem:[%s8457_s1 + $0x10] sm:$0xff] }
 0x1e7   :  { %5240 = vmatprep.mubr.msk.f32.mxu0 %vm60_vm0, %v33_v40 }
 0x1ea   :  { %423 = vperm.xlu1 %6245, %v421_v41   ;;  %v34_v41 = vld [vmem:[%s8457_s1 + $0x18] sm:$0xff] }
 0x1eb   :  { %5241 = vmatmul.mubr.msk.f32.gmra.mrb[2].mxu0 %vm60_vm0, %v34_v41 }
 0x258   :  { %v418_v54 = vpop.permute.xlu1 %417 }
 0x259   :  { %v420_v55 = vmul.f32 %v6252_v32, %v418_v54  ;;  %v43_v54 = vld [vmem:[%s8457_s1 + $0x60] sm:$0xff] }
 0x25b   :  { %429 = vrot.lane.b32.xlu0 %v420_v55, %s6648_s5 }
 0x269   :  { %v6842_v56 = vpop.permute.xlu1 %423 }
 0x26a   :  { %vm425_vm3 = vcmp.eq.s32.totalorder %v6842_v56, 1 }
 0x26b   :  { %v6847_v57 = vsel %vm425_vm3, %v420_v55, 0.0  ;;  %v6887_v33 = vsel %vm425_vm3, %v6782_v38, 0.0  ;;  %v35_v38 = vld [vmem:[%s8457_s1 + $0x20] sm:$0xff]  ;;  %v44_v55 = vld [vmem:[%s8457_s1 + $0x68] sm:$0xff] }
 0x26c   :  { %547 = vrot.lane.b32.xlu1 %v6847_v57, %s6648_s5  ;;  %5243 = vmatprep.mubr.msk.f32.mxu0 %vm60_vm0, %v35_v38 }
 0x26d   :  { %5244 = vmatmul.mubr.msk.f32.gmra.mrb[4].mxu0 %vm60_vm0, %v36_v42 }
 0x26e   :  { %5246 = vmatprep.mubr.msk.f32.mxu0 %vm60_vm0, %v37_v43 }
 0x271   :  { %5247 = vmatmul.mubr.msk.f32.gmra.mrb[6].mxu0 %vm60_vm0, %v38_v46 }
 0x272   :  { %5249 = vmatprep.mubr.msk.f32.mxu0 %vm60_vm0, %v39_v48 }
 0x275   :  { %5250 = vmatmul.mubr.msk.f32.gmra.mrb[8].mxu0 %vm60_vm0, %v40_v49 }
 0x276   :  { %5252 = vmatprep.mubr.msk.f32.mxu0 %vm60_vm0, %v41_v51 }
 0x279   :  { %5253 = vmatmul.mubr.msk.f32.gmra.mrb[10].mxu0 %vm60_vm0, %v42_v52 }
 0x27a   :  { %5255 = vmatprep.mubr.msk.f32.mxu0 %vm60_vm0, %v43_v54 }
 0x27d   :  { %5256 = vmatmul.mubr.msk.f32.gmra.mrb[12].mxu0 %vm60_vm0, %v44_v55 }
 0x2cd   :  { %v430_v58 = vpop.permute.xlu0 %429 }
 0x2ce   :  { %v432_v59 = vsel %vm322_vm4, %v430_v58, 0.0  ;;  %v45_v58 = vld [vmem:[%s8457_s1 + $0x70] sm:$0xff] }
 0x2cf   :  { %5295 = vmatmul.mubr.msk.f32.vlgmr.msra.gmra.mrb[6].mxu1 %vm439_vm5, %v432_v59  ;;  %5258 = vmatprep.mubr.msk.f32.mxu0 %vm60_vm0, %v45_v58 }
 0x2d0   :  { %5891 = vmatpush3.bf16.msra.mxu1 %v6727_v8  ;;  %5305 = vmatprep.mubr.msk.f32.mxu1 %vm6644_vm1, %v8471_v16 }
 0x2d1   :  { %5892 = vmatprep.subr.bf16.mxu1 %v8468_v10 }
 0x2d4   :  { %5894 = vmatpush3.bf16.msra.mxu1 %v6751_v15 }
 0x2d5   :  { %5907 = vmatprep.subr.bf16.mxu1 %v8468_v10 }
 0x2de   :  { %v548_v60 = vpop.permute.xlu1 %547 }
 0x2df   :  { %5306 = vmatmul.mubr.msk.f32.vlgmr.msra.gmra.mrb[8].mxu1 %vm322_vm4, %v548_v60  ;;  %v46_v60 = vld [vmem:[%s8457_s1 + $0x78] sm:$0xff] }
 0x2e0   :  { %5909 = vmatpush3.bf16.msra.mxu1 %v6727_v8  ;;  %5335 = vmatprep.mubr.msk.f32.mxu1 %vm6644_vm1, %v8471_v16 }
 0x2e1   :  { %5910 = vmatprep.subr.bf16.mxu1 %v8468_v10  ;;  %5259 = vmatmul.mubr.msk.f32.gmra.mrb[14].mxu0 %vm60_vm0, %v46_v60 }
 0x2e2   :  { %5324 = vmatprep.mubr.msk.f32.mxu0 %vm6644_vm1, %v8471_v16 }
 0x2e4   :  { %5912 = vmatpush3.bf16.msra.mxu1 %v6751_v15 }
 0x2e5   :  { %5913 = vmatprep.subr.bf16.mxu1 %v8468_v10 }
 0x3a2   :  { %v509_v62 = vpop.f32.mrb[6].mxu1 }
 0x3a3   :  { %v510_v63 = vadd.f32 %v6869_v61, %v509_v62  ;;  %v5296_v0 = vpop.f32.mrb[7].mxu1 }
 0x3a5   :  { %6255 = vtanh.f32 %v510_v63  ;;  %v4854_v7 = vmul.f32 -1.442695, %v510_v63 }
 0x3af   :  { %v6256_v1 = vpop.eup %6255 }
 0x3b0   :  { %522 = vrot.lane.b32.xlu0 %v6256_v1, %s6646_s12 }
 0x3b2   :  { %v617_v3 = vpop.f32.mrb[8].mxu1 }
 0x3b3   :  { %v621_v4 = vadd.f32 %v617_v3, %v193_v2  ;;  %v5307_v5 = vpop.f32.mrb[9].mxu1 }
 0x3b5   :  { %6257 = vtanh.f32 %v621_v4  ;;  %v4856_v11 = vmul.f32 -1.442695, %v621_v4  ;;  %v6969_v4 = vpop.f32.mrb[2].mxu0 }
 0x3b6   :  { %6259 = vpow2.f32 %v4854_v7  ;;  %v197_v5 = vpop.f32.mrb[3].mxu0 }
 0x3b7   :  { %6261 = vpow2.f32 %v4856_v11 }
 0x3bf   :  { %v6258_v6 = vpop.eup %6257 }
 0x3c0   :  { %631 = vrot.lane.b32.xlu1 %v6258_v6, %s6646_s12  ;;  %v6260_v9 = vpop.eup %6259  ;;  %v6971_v6 = vpop.f32.mrb[4].mxu0 }
 0x3c1   :  { %v516_v12 = vadd.f32 1.0, %v6260_v9  ;;  %v6262_v13 = vpop.eup %6261  ;;  %v6973_v7 = vpop.f32.mrb[5].mxu0 }
 0x3c2   :  { %v625_v18 = vadd.f32 1.0, %v6262_v13  ;;  %v6975_v9 = vpop.f32.mrb[6].mxu0 }
 0x3c3   :  { %6263 = vrcp.f32 %v516_v12  ;;  %v6977_v11 = vpop.f32.mrb[7].mxu0 }
 0x3c4   :  { %6265 = vrcp.f32 %v625_v18 }
 0x3cd   :  { %v6264_v14 = vpop.eup %6263 }
 0x3ce   :  { %v6266_v26 = vpop.eup %6265  ;;  %v520_v29 = vmul.f32 0.0, %v6264_v14 }
 0x3cf   :  { %v629_v34 = vmul.f32 %v6266_v26, %v6887_v33 }
 0x422   :  { %v523_v20 = vpop.permute.xlu0 %522 }
 0x423   :  { %v525_v24 = vmul.f32 %v6264_v14, %v523_v20  ;;  %v6998_v20 = vpop.f32.mrb[8].mxu0 }
 0x425   :  { %527 = vrot.lane.b32.xlu0 %v525_v24, %s6646_s12  ;;  %v7000_v24 = vpop.f32.mrb[9].mxu0 }
 0x426   :  { %v7002_v18 = vpop.f32.mrb[10].mxu0 }
 0x429   :  { %648 = vperm.xlu0 %6246, %v646_v25   ;;  %v7004_v25 = vpop.f32.mrb[11].mxu0 }
 0x432   :  { %v632_v27 = vpop.permute.xlu1 %631 }
 0x433   :  { %v634_v28 = vmul.f32 %v6266_v26, %v632_v27 }
 0x435   :  { %636 = vrot.lane.b32.xlu1 %v634_v28, %s6646_s12 }
 0x497   :  { %v528_v30 = vpop.permute.xlu0 %527 }
 0x498   :  { %v6880_v31 = vadd.f32 %v528_v30, %v520_v29  ;;  %v198_v30 = vadd.f32 %v6771_v21, %v197_v5 }
 0x49a   :  { %6267 = vtanh.f32 %v6880_v31 }
 0x4a4   :  { %v6268_v32 = vpop.eup %6267 }
 0x4a5   :  { %533 = vrot.lane.b32.xlu1 %v6268_v32, %s6646_s12 }
 0x4a7   :  { %v637_v36 = vpop.permute.xlu1 %636 }
 0x4a8   :  { %v6890_v37 = vadd.f32 %v637_v36, %v629_v34  ;;  %v6958_v2 = vpop.permute.xlu0 %648 }
 0x4a9   :  { %vm650_vm7 = vcmp.eq.s32.totalorder %v6958_v2, 1 }
 0x4aa   :  { %6269 = vtanh.f32 %v6890_v37 }
 0x4b4   :  { %v6270_v44 = vpop.eup %6269 }
 0x4b5   :  { %642 = vrot.lane.b32.xlu1 %v6270_v44, %s6646_s12 }
 0x517   :  { %v534_v59 = vpop.permute.xlu1 %533 }
 0x518   :  { %v536_v62 = vmul.f32 %v6264_v14, %v534_v59 }
 0x51a   :  { %v6951_v63 = vsel %vm425_vm3, %v536_v62, 0.0 }
 0x51b   :  { %657 = vrot.lane.b32.xlu1 %v6951_v63, %s6649_s17 }
 0x527   :  { %v643_v0 = vpop.permute.xlu1 %642 }
 0x528   :  { %v645_v1 = vmul.f32 %v6266_v26, %v643_v0  ;;  %v7006_v26 = vpop.f32.mrb[12].mxu0  ;;  %v869_v0 = vsel %vm767_vm8, 1, %v8473_v35 }
 0x529   :  { %v7008_v27 = vpop.f32.mrb[13].mxu0 }
 0x52a   :  { %654 = vrot.lane.b32.xlu0 %v645_v1, %s6648_s5  ;;  %v6965_v3 = vsel %vm650_vm7, %v645_v1, %v6847_v57  ;;  %v7010_v28 = vpop.f32.mrb[14].mxu0  ;;  %v7025_v1 = vsel %vm425_vm3, %v6880_v31, 0.0 }
 0x52b   :  { %v7012_v29 = vpop.f32.mrb[15].mxu0 }
 0x52e   :  { %770 = vrot.lane.b32.xlu0 %v6965_v3, %s6648_s5 }
 0x58d   :  { %v658_v12 = vpop.permute.xlu1 %657 }
 0x59c   :  { %v655_v13 = vpop.permute.xlu0 %654 }
 0x59d   :  { %v660_v14 = vsel %vm322_vm4, %v655_v13, %v658_v12 }
 0x59e   :  { %5325 = vmatmul.mubr.msk.f32.vlgmr.msra.gmra.mrb[16].mxu0 %vm439_vm5, %v660_v14  ;;  %v7034_v14 = vsel %vm650_vm7, %v6890_v37, %v6887_v33 }
 0x59f   :  { %5927 = vmatpush3.bf16.msra.mxu0 %v6727_v8  ;;  %5365 = vmatprep.mubr.msk.f32.mxu0 %vm6644_vm1, %v8471_v16 }
 0x5a0   :  { %v771_v57 = vpop.permute.xlu0 %770  ;;  %5928 = vmatprep.subr.bf16.mxu0 %v8468_v10 }
 0x5a1   :  { %5336 = vmatmul.mubr.msk.f32.vlgmr.msra.gmra.mrb[10].mxu1 %vm322_vm4, %v771_v57 }
 0x5a2   :  { %5915 = vmatpush3.bf16.msra.mxu1 %v6802_v45  ;;  %5354 = vmatprep.mubr.msk.f32.mxu1 %vm6644_vm1, %v8471_v16 }
 0x5a3   :  { %5916 = vmatprep.subr.bf16.mxu1 %v8468_v10  ;;  %5930 = vmatpush3.bf16.msra.mxu0 %v6751_v15 }
 0x5a4   :  { %5931 = vmatprep.subr.bf16.mxu0 %v8468_v10 }
 0x5a6   :  { %5918 = vmatpush3.bf16.msra.mxu1 %v6808_v47 }
 0x5a7   :  { %5919 = vmatprep.subr.bf16.mxu1 %v8468_v10 }
 0x5aa   :  { %5921 = vmatpush3.bf16.msra.mxu1 %v6820_v50 }
 0x5ab   :  { %5922 = vmatprep.subr.bf16.mxu1 %v8468_v10 }
 0x5ae   :  { %5924 = vmatpush3.bf16.msra.mxu1 %v6832_v53 }
 0x5af   :  { %5943 = vmatprep.subr.bf16.mxu1 %v8468_v10 }
 0x671   :  { %v730_v32 = vpop.f32.mrb[16].mxu0 }
 0x672   :  { %v731_v34 = vadd.f32 %v6869_v61, %v730_v32  ;;  %v5326_v36 = vpop.f32.mrb[17].mxu0 }
 0x674   :  { %6271 = vtanh.f32 %v731_v34  ;;  %v840_v40 = vpop.f32.mrb[10].mxu1  ;;  %v4858_v44 = vmul.f32 -1.442695, %v731_v34 }
 0x675   :  { %v844_v41 = vadd.f32 %v840_v40, %v198_v30  ;;  %v5337_v38 = vpop.f32.mrb[11].mxu1 }
 0x677   :  { %6273 = vtanh.f32 %v844_v41  ;;  %v4860_v46 = vmul.f32 -1.442695, %v844_v41 }
 0x678   :  { %6275 = vpow2.f32 %v4858_v44 }
 0x679   :  { %6277 = vpow2.f32 %v4860_v46 }
 0x67e   :  { %v6272_v42 = vpop.eup %6271 }
 0x67f   :  { %743 = vrot.lane.b32.xlu1 %v6272_v42, %s6646_s12 }
 0x681   :  { %v6274_v43 = vpop.eup %6273 }
 0x682   :  { %854 = vrot.lane.b32.xlu0 %v6274_v43, %s6646_s12  ;;  %v6276_v48 = vpop.eup %6275 }
 0x683   :  { %v6278_v49 = vpop.eup %6277  ;;  %v737_v51 = vadd.f32 1.0, %v6276_v48 }
 0x684   :  { %v848_v52 = vadd.f32 1.0, %v6278_v49 }
 0x685   :  { %6279 = vrcp.f32 %v737_v51  ;;  %v203_v51 = vadd.f32 %v6969_v4, %v6771_v21 }
 0x686   :  { %6281 = vrcp.f32 %v848_v52 }
 0x68f   :  { %v6280_v54 = vpop.eup %6279 }
 0x690   :  { %v6282_v59 = vpop.eup %6281  ;;  %v741_v5 = vmul.f32 %v6280_v54, %v7025_v1 }
 0x691   :  { %v852_v57 = vmul.f32 %v6282_v59, %v7034_v14 }
 0x6f1   :  { %v744_v55 = vpop.permute.xlu1 %743 }
 0x6f2   :  { %v746_v58 = vmul.f32 %v6280_v54, %v744_v55 }
 0x6f4   :  { %748 = vrot.lane.b32.xlu1 %v746_v58, %s6646_s12  ;;  %v855_v60 = vpop.permute.xlu0 %854 }
 0x6f5   :  { %v857_v62 = vmul.f32 %v6282_v59, %v855_v60 }
 0x6f7   :  { %859 = vrot.lane.b32.xlu0 %v857_v62, %s6646_s12 }
 0x6f8   :  { %871 = vperm.xlu1 %6245, %v869_v0  }
 0x766   :  { %v749_v12 = vpop.permute.xlu1 %748 }
 0x767   :  { %v7028_v13 = vadd.f32 %v749_v12, %v741_v5 }
 0x769   :  { %6283 = vtanh.f32 %v7028_v13  ;;  %v860_v30 = vpop.permute.xlu0 %859 }
 0x76a   :  { %v7038_v32 = vadd.f32 %v860_v30, %v852_v57 }
 0x76c   :  { %6285 = vtanh.f32 %v7038_v32 }
 0x773   :  { %v6284_v56 = vpop.eup %6283 }
 0x774   :  { %754 = vrot.lane.b32.xlu0 %v6284_v56, %s6646_s12 }
 0x776   :  { %v6286_v31 = vpop.eup %6285 }
 0x777   :  { %865 = vrot.lane.b32.xlu1 %v6286_v31, %s6646_s12  ;;  %v7043_v34 = vpop.permute.xlu1 %871 }
 0x778   :  { %vm8467_vm9 = vcmp.eq.s32.totalorder %v7043_v34, 1 }
 0x7e6   :  { %v755_v36 = vpop.permute.xlu0 %754 }
 0x7e7   :  { %v7045_v33 = vmul.f32 %v6280_v54, %v755_v36 }
 0x7e9   :  { %v866_v37 = vpop.permute.xlu1 %865  ;;  %v7051_v40 = vsel %vm650_vm7, %v7045_v33, %v6951_v63 }
 0x7ea   :  { %v868_v41 = vmul.f32 %v6282_v59, %v866_v37  ;;  %881 = vrot.lane.b32.xlu1 %v7051_v40, %s6649_s17 }
 0x7ec   :  { %877 = vrot.lane.b32.xlu0 %v868_v41, %s6648_s5  ;;  %v7060_v38 = vsel %vm8467_vm9, %v868_v41, %v6965_v3  ;;  %v1089_v41 = vsel %vm987_vm10, 1, %v8473_v35 }
 0x7f0   :  { %990 = vrot.lane.b32.xlu0 %v7060_v38, %s6648_s5 }
 0x85c   :  { %v882_v42 = vpop.permute.xlu1 %881 }
 0x85e   :  { %v878_v43 = vpop.permute.xlu0 %877 }
 0x85f   :  { %v884_v44 = vsel %vm322_vm4, %v878_v43, %v882_v42  ;;  %v7096_v42 = vsel %vm650_vm7, %v7028_v13, %v7025_v1 }
 0x860   :  { %5355 = vmatmul.mubr.msk.f32.vlgmr.msra.gmra.mrb[12].mxu1 %vm439_vm5, %v884_v44 }
 0x861   :  { %5945 = vmatpush3.bf16.msra.mxu1 %v6727_v8  ;;  %5395 = vmatprep.mubr.msk.f32.mxu1 %vm6644_vm1, %v8471_v16 }
 0x862   :  { %v991_v46 = vpop.permute.xlu0 %990  ;;  %5946 = vmatprep.subr.bf16.mxu1 %v8468_v10 }
 0x863   :  { %5366 = vmatmul.mubr.msk.f32.vlgmr.msra.gmra.mrb[18].mxu0 %vm322_vm4, %v991_v46 }
 0x864   :  { %5933 = vmatpush3.bf16.msra.mxu0 %v6802_v45  ;;  %5384 = vmatprep.mubr.msk.f32.mxu0 %vm6644_vm1, %v8471_v16 }
 0x865   :  { %5934 = vmatprep.subr.bf16.mxu0 %v8468_v10  ;;  %5948 = vmatpush3.bf16.msra.mxu1 %v6751_v15 }
 0x866   :  { %5949 = vmatprep.subr.bf16.mxu1 %v8468_v10 }
 0x868   :  { %5936 = vmatpush3.bf16.msra.mxu0 %v6808_v47 }
 0x869   :  { %5937 = vmatprep.subr.bf16.mxu0 %v8468_v10 }
 0x86c   :  { %5939 = vmatpush3.bf16.msra.mxu0 %v6820_v50 }
 0x86d   :  { %5940 = vmatprep.subr.bf16.mxu0 %v8468_v10 }
 0x870   :  { %5942 = vmatpush3.bf16.msra.mxu0 %v6832_v53 }
 0x871   :  { %5961 = vmatprep.subr.bf16.mxu0 %v8468_v10 }
 0x933   :  { %v954_v3 = vpop.f32.mrb[12].mxu1 }
 0x934   :  { %v955_v48 = vadd.f32 %v6869_v61, %v954_v3  ;;  %v5356_v49 = vpop.f32.mrb[13].mxu1  ;;  %v7105_v3 = vsel %vm8467_vm9, %v7038_v32, %v7034_v14 }
 0x936   :  { %6287 = vtanh.f32 %v955_v48  ;;  %v1060_v52 = vpop.f32.mrb[18].mxu0  ;;  %v4862_v60 = vmul.f32 -1.442695, %v955_v48 }
 0x937   :  { %v1064_v54 = vadd.f32 %v1060_v52, %v203_v51  ;;  %v5367_v55 = vpop.f32.mrb[19].mxu0 }
 0x939   :  { %6289 = vtanh.f32 %v1064_v54  ;;  %v4864_v62 = vmul.f32 -1.442695, %v1064_v54 }
 0x93a   :  { %6291 = vpow2.f32 %v4862_v60 }
 0x93b   :  { %6293 = vpow2.f32 %v4864_v62 }
 0x940   :  { %v6288_v58 = vpop.eup %6287 }
 0x941   :  { %967 = vrot.lane.b32.xlu1 %v6288_v58, %s6646_s12 }
 0x943   :  { %v6290_v59 = vpop.eup %6289 }
 0x944   :  { %1074 = vrot.lane.b32.xlu0 %v6290_v59, %s6646_s12  ;;  %v6292_v0 = vpop.eup %6291 }
 0x945   :  { %v6294_v5 = vpop.eup %6293  ;;  %v961_v12 = vadd.f32 1.0, %v6292_v0 }
 0x946   :  { %v1068_v57 = vadd.f32 1.0, %v6294_v5 }
 0x947   :  { %6295 = vrcp.f32 %v961_v12 }
 0x948   :  { %6297 = vrcp.f32 %v1068_v57  ;;  %v208_v57 = vadd.f32 %v6771_v21, %v6973_v7 }
 0x951   :  { %v6296_v4 = vpop.eup %6295 }
 0x952   :  { %v6298_v31 = vpop.eup %6297  ;;  %v965_v43 = vmul.f32 %v6296_v4, %v7096_v42 }
 0x953   :  { %v1072_v48 = vmul.f32 %v6298_v31, %v7105_v3 }
 0x9b3   :  { %v968_v30 = vpop.permute.xlu1 %967 }
 0x9b4   :  { %v970_v56 = vmul.f32 %v6296_v4, %v968_v30 }
 0x9b6   :  { %v1075_v36 = vpop.permute.xlu0 %1074  ;;  %972 = vrot.lane.b32.xlu1 %v970_v56, %s6646_s12 }
 0x9b7   :  { %v1077_v37 = vmul.f32 %v6298_v31, %v1075_v36 }
 0x9b9   :  { %1079 = vrot.lane.b32.xlu0 %v1077_v37, %s6646_s12 }
 0x9ba   :  { %1091 = vperm.xlu1 %6245, %v1089_v41  }
 0xa28   :  { %v973_v44 = vpop.permute.xlu1 %972 }
 0xa29   :  { %v7099_v46 = vadd.f32 %v973_v44, %v965_v43 }
 0xa2b   :  { %6299 = vtanh.f32 %v7099_v46  ;;  %v1080_v49 = vpop.permute.xlu0 %1079 }
 0xa2c   :  { %v7109_v51 = vadd.f32 %v1080_v49, %v1072_v48 }
 0xa2e   :  { %6301 = vtanh.f32 %v7109_v51 }
 0xa35   :  { %v6300_v1 = vpop.eup %6299 }
 0xa36   :  { %978 = vrot.lane.b32.xlu0 %v6300_v1, %s6646_s12 }
 0xa38   :  { %v6302_v13 = vpop.eup %6301 }
 0xa39   :  { %1085 = vrot.lane.b32.xlu1 %v6302_v13, %s6646_s12  ;;  %v7114_v52 = vpop.permute.xlu1 %1091 }
 0xa3a   :  { %vm1093_vm11 = vcmp.eq.s32.totalorder %v7114_v52, 1 }
 0xaa8   :  { %v979_v54 = vpop.permute.xlu0 %978 }
 0xaa9   :  { %v7116_v14 = vmul.f32 %v6296_v4, %v979_v54 }
 0xaab   :  { %v1086_v32 = vpop.permute.xlu1 %1085  ;;  %v7122_v55 = vsel %vm8467_vm9, %v7116_v14, %v7051_v40 }
 0xaac   :  { %v1088_v58 = vmul.f32 %v6298_v31, %v1086_v32  ;;  %1101 = vrot.lane.b32.xlu1 %v7122_v55, %s6649_s17 }
 0xaae   :  { %1097 = vrot.lane.b32.xlu0 %v1088_v58, %s6648_s5  ;;  %v7131_v59 = vsel %vm1093_vm11, %v1088_v58, %v7060_v38 }
 0xab2   :  { %1214 = vrot.lane.b32.xlu0 %v7131_v59, %s6648_s5 }
 0xb1e   :  { %v1102_v60 = vpop.permute.xlu1 %1101 }
 0xb20   :  { %v1098_v62 = vpop.permute.xlu0 %1097 }
 0xb21   :  { %v1104_v40 = vsel %vm322_vm4, %v1098_v62, %v1102_v60  ;;  %v1313_v60 = vsel %vm1211_vm12, 1, %v8473_v35  ;;  %v7167_v62 = vsel %vm8467_vm9, %v7099_v46, %v7096_v42 }
 0xb22   :  { %5385 = vmatmul.mubr.msk.f32.vlgmr.msra.gmra.mrb[20].mxu0 %vm439_vm5, %v1104_v40 }
 0xb23   :  { %5963 = vmatpush3.bf16.msra.mxu0 %v6727_v8  ;;  %5425 = vmatprep.mubr.msk.f32.mxu0 %vm6644_vm1, %v8471_v16 }
 0xb24   :  { %v1215_v0 = vpop.permute.xlu0 %1214  ;;  %5964 = vmatprep.subr.bf16.mxu0 %v8468_v10 }
 0xb25   :  { %5396 = vmatmul.mubr.msk.f32.vlgmr.msra.gmra.mrb[14].mxu1 %vm322_vm4, %v1215_v0 }
 0xb26   :  { %5951 = vmatpush3.bf16.msra.mxu1 %v6802_v45  ;;  %5414 = vmatprep.mubr.msk.f32.mxu1 %vm6644_vm1, %v8471_v16 }
 0xb27   :  { %5952 = vmatprep.subr.bf16.mxu1 %v8468_v10  ;;  %5966 = vmatpush3.bf16.msra.mxu0 %v6751_v15 }
 0xb28   :  { %5967 = vmatprep.subr.bf16.mxu0 %v8468_v10 }
 0xb2a   :  { %5954 = vmatpush3.bf16.msra.mxu1 %v6808_v47 }
 0xb2b   :  { %5955 = vmatprep.subr.bf16.mxu1 %v8468_v10 }
 0xb2e   :  { %5957 = vmatpush3.bf16.msra.mxu1 %v6820_v50 }
 0xb2f   :  { %5958 = vmatprep.subr.bf16.mxu1 %v8468_v10 }
 0xb32   :  { %5960 = vmatpush3.bf16.msra.mxu1 %v6832_v53 }
 0xb33   :  { %5979 = vmatprep.subr.bf16.mxu1 %v8468_v10 }
 0xbf5   :  { %v1174_v38 = vpop.f32.mrb[20].mxu0 }
 0xbf6   :  { %v1175_v5 = vadd.f32 %v6869_v61, %v1174_v38  ;;  %v5386_v12 = vpop.f32.mrb[21].mxu0 }
 0xbf8   :  { %6303 = vtanh.f32 %v1175_v5  ;;  %v1284_v4 = vpop.f32.mrb[14].mxu1  ;;  %v4866_v37 = vmul.f32 -1.442695, %v1175_v5  ;;  %v7176_v5 = vsel %vm1093_vm11, %v7109_v51, %v7105_v3 }
 0xbf9   :  { %v1288_v30 = vadd.f32 %v1284_v4, %v208_v57  ;;  %v5397_v56 = vpop.f32.mrb[15].mxu1 }
 0xbfb   :  { %6305 = vtanh.f32 %v1288_v30  ;;  %v4868_v41 = vmul.f32 -1.442695, %v1288_v30 }
 0xbfc   :  { %6307 = vpow2.f32 %v4866_v37 }
 0xbfd   :  { %6309 = vpow2.f32 %v4868_v41 }
 0xc02   :  { %v6304_v31 = vpop.eup %6303 }
 0xc03   :  { %1187 = vrot.lane.b32.xlu1 %v6304_v31, %s6646_s12 }
 0xc05   :  { %v6306_v36 = vpop.eup %6305 }
 0xc06   :  { %1298 = vrot.lane.b32.xlu0 %v6306_v36, %s6646_s12  ;;  %v6308_v43 = vpop.eup %6307 }
 0xc07   :  { %v6310_v44 = vpop.eup %6309  ;;  %v1181_v48 = vadd.f32 1.0, %v6308_v43 }
 0xc08   :  { %v1292_v49 = vadd.f32 1.0, %v6310_v44 }
 0xc09   :  { %6311 = vrcp.f32 %v1181_v48 }
 0xc0a   :  { %6313 = vrcp.f32 %v1292_v49 }
 0xc13   :  { %v6312_v7 = vpop.eup %6311 }
 0xc14   :  { %v6314_v54 = vpop.eup %6313  ;;  %v1185_v40 = vmul.f32 %v6312_v7, %v7167_v62 }
 0xc15   :  { %v1296_v12 = vmul.f32 %v6314_v54, %v7176_v5 }
 0xc75   :  { %v1188_v1 = vpop.permute.xlu1 %1187 }
 0xc76   :  { %v1190_v13 = vmul.f32 %v6312_v7, %v1188_v1 }
 0xc78   :  { %1192 = vrot.lane.b32.xlu1 %v1190_v13, %s6646_s12  ;;  %v1299_v32 = vpop.permute.xlu0 %1298 }
 0xc79   :  { %v1301_v58 = vmul.f32 %v6314_v54, %v1299_v32 }
 0xc7b   :  { %1303 = vrot.lane.b32.xlu0 %v1301_v58, %s6646_s12 }
 0xc7c   :  { %1315 = vperm.xlu1 %6245, %v1313_v60  }
 0xcea   :  { %v1193_v0 = vpop.permute.xlu1 %1192 }
 0xceb   :  { %v7170_v38 = vadd.f32 %v1193_v0, %v1185_v40 }
 0xced   :  { %6315 = vtanh.f32 %v7170_v38  ;;  %v1304_v57 = vpop.permute.xlu0 %1303 }
 0xcee   :  { %v7180_v4 = vadd.f32 %v1304_v57, %v1296_v12 }
 0xcf0   :  { %6317 = vtanh.f32 %v7180_v4 }
 0xcf7   :  { %v6316_v42 = vpop.eup %6315 }
 0xcf8   :  { %1198 = vrot.lane.b32.xlu0 %v6316_v42, %s6646_s12 }
 0xcfa   :  { %v6318_v46 = vpop.eup %6317 }
 0xcfb   :  { %1309 = vrot.lane.b32.xlu1 %v6318_v46, %s6646_s12  ;;  %v7185_v30 = vpop.permute.xlu1 %1315 }
 0xcfc   :  { %vm1317_vm13 = vcmp.eq.s32.totalorder %v7185_v30, 1 }
 0xd6a   :  { %v1199_v56 = vpop.permute.xlu0 %1198 }
 0xd6b   :  { %v7187_v3 = vmul.f32 %v6312_v7, %v1199_v56  ;;  %v213_v7 = vadd.f32 %v6971_v6, %v6771_v21 }
 0xd6d   :  { %v1310_v51 = vpop.permute.xlu1 %1309  ;;  %v7193_v31 = vsel %vm1093_vm11, %v7187_v3, %v7122_v55 }
 0xd6e   :  { %v1312_v36 = vmul.f32 %v6314_v54, %v1310_v51  ;;  %1325 = vrot.lane.b32.xlu1 %v7193_v31, %s6649_s17 }
 0xd70   :  { %1321 = vrot.lane.b32.xlu0 %v1312_v36, %s6648_s5  ;;  %v7202_v37 = vsel %vm1317_vm13, %v1312_v36, %v7131_v59 }
 0xd74   :  { %1437 = vrot.lane.b32.xlu0 %v7202_v37, %s6648_s5 }
 0xde0   :  { %v1326_v41 = vpop.permute.xlu1 %1325 }
 0xde2   :  { %v1322_v43 = vpop.permute.xlu0 %1321 }
 0xde3   :  { %v1328_v55 = vsel %vm322_vm4, %v1322_v43, %v1326_v41  ;;  %v1536_v41 = vsel %vm1434_vm14, 1, %v8473_v35  ;;  %v7238_v43 = vsel %vm1093_vm11, %v7170_v38, %v7167_v62 }
 0xde4   :  { %5415 = vmatmul.mubr.msk.f32.vlgmr.msra.gmra.mrb[16].mxu1 %vm439_vm5, %v1328_v55 }
 0xde5   :  { %5981 = vmatpush3.bf16.msra.mxu1 %v6727_v8  ;;  %5455 = vmatprep.mubr.msk.f32.mxu1 %vm6644_vm1, %v8471_v16 }
 0xde6   :  { %v1438_v44 = vpop.permute.xlu0 %1437  ;;  %5982 = vmatprep.subr.bf16.mxu1 %v8468_v10 }
 0xde7   :  { %5426 = vmatmul.mubr.msk.f32.vlgmr.msra.gmra.mrb[22].mxu0 %vm322_vm4, %v1438_v44 }
 0xde8   :  { %5969 = vmatpush3.bf16.msra.mxu0 %v6802_v45  ;;  %5444 = vmatprep.mubr.msk.f32.mxu0 %vm6644_vm1, %v8471_v16 }
 0xde9   :  { %5970 = vmatprep.subr.bf16.mxu0 %v8468_v10  ;;  %5984 = vmatpush3.bf16.msra.mxu1 %v6751_v15 }
 0xdea   :  { %5985 = vmatprep.subr.bf16.mxu1 %v8468_v10 }
 0xdec   :  { %5972 = vmatpush3.bf16.msra.mxu0 %v6808_v47 }
 0xded   :  { %5973 = vmatprep.subr.bf16.mxu0 %v8468_v10 }
 0xdf0   :  { %5975 = vmatpush3.bf16.msra.mxu0 %v6820_v50 }
 0xdf1   :  { %5976 = vmatprep.subr.bf16.mxu0 %v8468_v10 }
 0xdf4   :  { %5978 = vmatpush3.bf16.msra.mxu0 %v6832_v53 }
 0xdf5   :  { %5997 = vmatprep.subr.bf16.mxu0 %v8468_v10 }
 0xeb7   :  { %v1398_v59 = vpop.f32.mrb[16].mxu1 }
 0xeb8   :  { %v1399_v48 = vadd.f32 %v6869_v61, %v1398_v59  ;;  %v5416_v49 = vpop.f32.mrb[17].mxu1  ;;  %v7247_v59 = vsel %vm1317_vm13, %v7180_v4, %v7176_v5 }
 0xeba   :  { %6319 = vtanh.f32 %v1399_v48  ;;  %v1507_v1 = vpop.f32.mrb[22].mxu0  ;;  %v4870_v60 = vmul.f32 -1.442695, %v1399_v48 }
 0xebb   :  { %v1511_v13 = vadd.f32 %v1507_v1, %v213_v7  ;;  %v5427_v54 = vpop.f32.mrb[23].mxu0 }
 0xebd   :  { %6321 = vtanh.f32 %v1511_v13  ;;  %v4872_v40 = vmul.f32 -1.442695, %v1511_v13 }
 0xebe   :  { %6323 = vpow2.f32 %v4870_v60 }
 0xebf   :  { %6325 = vpow2.f32 %v4872_v40 }
 0xec4   :  { %v6320_v32 = vpop.eup %6319 }
 0xec5   :  { %1411 = vrot.lane.b32.xlu1 %v6320_v32, %s6646_s12 }
 0xec7   :  { %v6322_v58 = vpop.eup %6321 }
 0xec8   :  { %1521 = vrot.lane.b32.xlu0 %v6322_v58, %s6646_s12  ;;  %v6324_v0 = vpop.eup %6323 }
 0xec9   :  { %v6326_v12 = vpop.eup %6325  ;;  %v1405_v57 = vadd.f32 1.0, %v6324_v0 }
 0xeca   :  { %v1515_v42 = vadd.f32 1.0, %v6326_v12 }
 0xecb   :  { %6327 = vrcp.f32 %v1405_v57 }
 0xecc   :  { %6329 = vrcp.f32 %v1515_v42  ;;  %v7300_v42 = vld [vmem:[%s8459_s3] ss:$0 sm:$0xff] }
 0xed5   :  { %v6328_v21 = vpop.eup %6327 }
 0xed6   :  { %v6330_v56 = vpop.eup %6329  ;;  %v1409_v55 = vmul.f32 %v6328_v21, %v7238_v43 }
 0xed7   :  { %v1519_v48 = vmul.f32 %v6330_v56, %v7247_v59 }
 0xf37   :  { %v1412_v6 = vpop.permute.xlu1 %1411 }
 0xf38   :  { %v1414_v46 = vmul.f32 %v6328_v21, %v1412_v6 }
 0xf3a   :  { %v1522_v51 = vpop.permute.xlu0 %1521  ;;  %1416 = vrot.lane.b32.xlu1 %v1414_v46, %s6646_s12 }
 0xf3b   :  { %v1524_v36 = vmul.f32 %v6330_v56, %v1522_v51 }
 0xf3d   :  { %1526 = vrot.lane.b32.xlu0 %v1524_v36, %s6646_s12 }
 0xf3e   :  { %1538 = vperm.xlu1 %6245, %v1536_v41  }
 0xfac   :  { %v1417_v44 = vpop.permute.xlu1 %1416 }
 0xfad   :  { %v7241_v39 = vadd.f32 %v1417_v44, %v1409_v55 }
 0xfaf   :  { %6331 = vtanh.f32 %v7241_v39  ;;  %v1527_v49 = vpop.permute.xlu0 %1526 }
 0xfb0   :  { %v7251_v7 = vadd.f32 %v1527_v49, %v1519_v48 }
 0xfb2   :  { %6333 = vtanh.f32 %v7251_v7 }
 0xfb9   :  { %v6332_v62 = vpop.eup %6331 }
 0xfba   :  { %1422 = vrot.lane.b32.xlu0 %v6332_v62, %s6646_s12 }
 0xfbc   :  { %v6334_v38 = vpop.eup %6333 }
 0xfbd   :  { %1532 = vrot.lane.b32.xlu1 %v6334_v38, %s6646_s12  ;;  %v7256_v1 = vpop.permute.xlu1 %1538 }
 0xfbe   :  { %vm1540_vm15 = vcmp.eq.s32.totalorder %v7256_v1, 1 }
0x102c   :  { %v1423_v13 = vpop.permute.xlu0 %1422 }
0x102d   :  { %v7258_v5 = vmul.f32 %v6328_v21, %v1423_v13  ;;  %v218_v21 = vadd.f32 %v7300_v42, %v6977_v11  ;;  %v7309_v13 = vld [vmem:[%s8456_s0] sm:$0xff] }
0x102e   :  { %vm1657_vm0 = vcmp.gt.s32.totalorder %v7309_v13, 6  ;;  %vm1876_vm3 = vcmp.gt.s32.totalorder %v7309_v13, 7  ;;  %vm2099_vm8 = vcmp.gt.s32.totalorder %v7309_v13, 8  ;;  %vm2322_vm12 = vcmp.gt.s32.totalorder %v7309_v13, 9 }
0x102f   :  { %v1533_v4 = vpop.permute.xlu1 %1532  ;;  %v7264_v54 = vsel %vm1317_vm13, %v7258_v5, %v7193_v31 }
0x1030   :  { %v1535_v32 = vmul.f32 %v6330_v56, %v1533_v4  ;;  %1548 = vrot.lane.b32.xlu1 %v7264_v54, %s6649_s17 }
0x1032   :  { %1544 = vrot.lane.b32.xlu0 %v1535_v32, %s6648_s5  ;;  %v7273_v58 = vsel %vm1540_vm15, %v1535_v32, %v7202_v37 }
0x1036   :  { %1660 = vrot.lane.b32.xlu0 %v7273_v58, %s6648_s5 }
0x10a2   :  { %v1549_v60 = vpop.permute.xlu1 %1548 }
0x10a4   :  { %v1545_v40 = vpop.permute.xlu0 %1544 }
0x10a5   :  { %v1551_v31 = vsel %vm322_vm4, %v1545_v40, %v1549_v60  ;;  %v1759_v40 = vsel %vm1657_vm0, 1, %v8473_v35  ;;  %vm2545_vm0 = vcmp.gt.s32.totalorder %v7309_v13, 10 }
0x10a6   :  { %5445 = vmatmul.mubr.msk.f32.vlgmr.msra.gmra.mrb[24].mxu0 %vm439_vm5, %v1551_v31  ;;  %v7319_v31 = vsel %vm1317_vm13, %v7241_v39, %v7238_v43 }
0x10a7   :  { %5999 = vmatpush3.bf16.msra.mxu0 %v6727_v8  ;;  %5485 = vmatprep.mubr.msk.f32.mxu0 %vm6644_vm1, %v8471_v16 }
0x10a8   :  { %v1661_v0 = vpop.permute.xlu0 %1660  ;;  %6000 = vmatprep.subr.bf16.mxu0 %v8468_v10 }
0x10a9   :  { %5456 = vmatmul.mubr.msk.f32.vlgmr.msra.gmra.mrb[18].mxu1 %vm322_vm4, %v1661_v0 }
0x10aa   :  { %5987 = vmatpush3.bf16.msra.mxu1 %v6802_v45  ;;  %5474 = vmatprep.mubr.msk.f32.mxu1 %vm6644_vm1, %v8471_v16 }
0x10ab   :  { %5988 = vmatprep.subr.bf16.mxu1 %v8468_v10  ;;  %6002 = vmatpush3.bf16.msra.mxu0 %v6751_v15 }
0x10ac   :  { %6003 = vmatprep.subr.bf16.mxu0 %v8468_v10 }
0x10ae   :  { %5990 = vmatpush3.bf16.msra.mxu1 %v6808_v47 }
0x10af   :  { %5991 = vmatprep.subr.bf16.mxu1 %v8468_v10 }
0x10b2   :  { %5993 = vmatpush3.bf16.msra.mxu1 %v6820_v50 }
0x10b3   :  { %5994 = vmatprep.subr.bf16.mxu1 %v8468_v10 }
0x10b6   :  { %5996 = vmatpush3.bf16.msra.mxu1 %v6832_v53 }
0x10b7   :  { %6015 = vmatprep.subr.bf16.mxu1 %v8468_v10 }
0x1179   :  { %v1621_v37 = vpop.f32.mrb[24].mxu0 }
0x117a   :  { %v1622_v12 = vadd.f32 %v6869_v61, %v1621_v37  ;;  %v5446_v57 = vpop.f32.mrb[25].mxu0 }
0x117b   :  { %v7328_v57 = vsel %vm1540_vm15, %v7251_v7, %v7247_v59 }
0x117c   :  { %6335 = vtanh.f32 %v1622_v12  ;;  %v1730_v6 = vpop.f32.mrb[18].mxu1  ;;  %v4874_v61 = vmul.f32 -1.442695, %v1622_v12 }
0x117d   :  { %v1734_v46 = vadd.f32 %v1730_v6, %v218_v21  ;;  %v5457_v56 = vpop.f32.mrb[19].mxu1 }
0x117f   :  { %6337 = vtanh.f32 %v1734_v46  ;;  %v4876_v41 = vmul.f32 -1.442695, %v1734_v46 }
0x1180   :  { %6339 = vpow2.f32 %v4874_v61 }
0x1181   :  { %6341 = vpow2.f32 %v4876_v41 }
0x1186   :  { %v6336_v51 = vpop.eup %6335 }
0x1187   :  { %1634 = vrot.lane.b32.xlu1 %v6336_v51, %s6646_s12 }
0x1189   :  { %v6338_v36 = vpop.eup %6337 }
0x118a   :  { %1744 = vrot.lane.b32.xlu0 %v6338_v36, %s6646_s12  ;;  %v6340_v55 = vpop.eup %6339 }
0x118b   :  { %v6342_v44 = vpop.eup %6341  ;;  %v1628_v48 = vadd.f32 1.0, %v6340_v55 }
0x118c   :  { %v1738_v49 = vadd.f32 1.0, %v6342_v44 }
0x118d   :  { %6343 = vrcp.f32 %v1628_v48 }
0x118e   :  { %6345 = vrcp.f32 %v1738_v49  ;;  %v7380_v49 = vld [vmem:[%s8462_s6] ss:$0 sm:$0xff] }
0x1197   :  { %v6344_v11 = vpop.eup %6343 }
0x1198   :  { %v6346_v4 = vpop.eup %6345  ;;  %v1632_v0 = vmul.f32 %v6344_v11, %v7319_v31 }
0x1199   :  { %v1742_v21 = vmul.f32 %v6346_v4, %v7328_v57 }
0x11f9   :  { %v1635_v62 = vpop.permute.xlu1 %1634 }
0x11fa   :  { %v1637_v38 = vmul.f32 %v6344_v11, %v1635_v62 }
0x11fc   :  { %1639 = vrot.lane.b32.xlu1 %v1637_v38, %s6646_s12  ;;  %v1745_v32 = vpop.permute.xlu0 %1744  ;;  %v223_v38 = vadd.f32 %v7300_v42, %v6975_v9 }
0x11fd   :  { %v1747_v60 = vmul.f32 %v6346_v4, %v1745_v32 }
0x11ff   :  { %1749 = vrot.lane.b32.xlu0 %v1747_v60, %s6646_s12 }
0x1200   :  { %1761 = vperm.xlu1 %6245, %v1759_v40  }
0x126e   :  { %v1640_v37 = vpop.permute.xlu1 %1639 }
0x126f   :  { %v7322_v12 = vadd.f32 %v1640_v37, %v1632_v0 }
0x1271   :  { %6347 = vtanh.f32 %v7322_v12  ;;  %v1750_v6 = vpop.permute.xlu0 %1749 }
0x1272   :  { %v7332_v46 = vadd.f32 %v1750_v6, %v1742_v21 }
0x1274   :  { %6349 = vtanh.f32 %v7332_v46 }
0x127b   :  { %v6348_v43 = vpop.eup %6347 }
0x127c   :  { %1645 = vrot.lane.b32.xlu0 %v6348_v43, %s6646_s12 }
0x127e   :  { %v6350_v39 = vpop.eup %6349 }
0x127f   :  { %1755 = vrot.lane.b32.xlu1 %v6350_v39, %s6646_s12  ;;  %v7337_v56 = vpop.permute.xlu1 %1761 }
0x1280   :  { %vm8470_vm2 = vcmp.eq.s32.totalorder %v7337_v56, 1 }
0x12ee   :  { %v1646_v51 = vpop.permute.xlu0 %1645 }
0x12ef   :  { %v7339_v59 = vmul.f32 %v6344_v11, %v1646_v51 }
0x12f1   :  { %v1756_v7 = vpop.permute.xlu1 %1755  ;;  %v7345_v36 = vsel %vm1540_vm15, %v7339_v59, %v7264_v54 }
0x12f2   :  { %v1758_v61 = vmul.f32 %v6346_v4, %v1756_v7  ;;  %1771 = vrot.lane.b32.xlu1 %v7345_v36, %s6649_s17 }
0x12f4   :  { %1767 = vrot.lane.b32.xlu0 %v1758_v61, %s6648_s5  ;;  %v7354_v41 = vsel %vm8470_vm2, %v1758_v61, %v7273_v58 }
0x12f8   :  { %1879 = vrot.lane.b32.xlu0 %v7354_v41, %s6648_s5 }
0x1364   :  { %v1772_v55 = vpop.permute.xlu1 %1771 }
0x1366   :  { %v1768_v44 = vpop.permute.xlu0 %1767 }
0x1367   :  { %v1774_v54 = vsel %vm322_vm4, %v1768_v44, %v1772_v55 }
0x1368   :  { %5475 = vmatmul.mubr.msk.f32.vlgmr.msra.gmra.mrb[20].mxu1 %vm439_vm5, %v1774_v54 }
0x1369   :  { %6017 = vmatpush3.bf16.msra.mxu1 %v6727_v8  ;;  %5515 = vmatprep.mubr.msk.f32.mxu1 %vm6644_vm1, %v8471_v16 }
0x136a   :  { %v1880_v48 = vpop.permute.xlu0 %1879  ;;  %6018 = vmatprep.subr.bf16.mxu1 %v8468_v10 }
0x136b   :  { %5486 = vmatmul.mubr.msk.f32.vlgmr.msra.gmra.mrb[26].mxu0 %vm322_vm4, %v1880_v48  ;;  %v1978_v48 = vsel %vm1876_vm3, 1, %v8473_v35 }
0x136c   :  { %6005 = vmatpush3.bf16.msra.mxu0 %v6802_v45  ;;  %5504 = vmatprep.mubr.msk.f32.mxu0 %vm6644_vm1, %v8471_v16 }
0x136d   :  { %6006 = vmatprep.subr.bf16.mxu0 %v8468_v10  ;;  %6020 = vmatpush3.bf16.msra.mxu1 %v6751_v15 }
0x136e   :  { %6021 = vmatprep.subr.bf16.mxu1 %v8468_v10 }
0x1370   :  { %6008 = vmatpush3.bf16.msra.mxu0 %v6808_v47 }
0x1371   :  { %6009 = vmatprep.subr.bf16.mxu0 %v8468_v10 }
0x1374   :  { %6011 = vmatpush3.bf16.msra.mxu0 %v6820_v50 }
0x1375   :  { %6012 = vmatprep.subr.bf16.mxu0 %v8468_v10 }
0x1378   :  { %6014 = vmatpush3.bf16.msra.mxu0 %v6832_v53 }
0x1379   :  { %6033 = vmatprep.subr.bf16.mxu0 %v8468_v10 }
0x143b   :  { %v1844_v58 = vpop.f32.mrb[20].mxu1 }
0x143c   :  { %v1845_v11 = vadd.f32 %v7380_v49, %v1844_v58  ;;  %v5476_v62 = vpop.f32.mrb[21].mxu1  ;;  %v7395_v58 = vsel %vm1540_vm15, %v7322_v12, %v7319_v31 }
0x143e   :  { %6351 = vtanh.f32 %v1845_v11  ;;  %v1949_v4 = vpop.f32.mrb[26].mxu0  ;;  %v4878_v37 = vmul.f32 -1.442695, %v1845_v11 }
0x143f   :  { %v1953_v32 = vadd.f32 %v1949_v4, %v223_v38  ;;  %v5487_v60 = vpop.f32.mrb[27].mxu0  ;;  %v7404_v4 = vsel %vm8470_vm2, %v7332_v46, %v7328_v57 }
0x1441   :  { %6353 = vtanh.f32 %v1953_v32  ;;  %v4880_v21 = vmul.f32 -1.442695, %v1953_v32 }
0x1442   :  { %6355 = vpow2.f32 %v4878_v37 }
0x1443   :  { %6357 = vpow2.f32 %v4880_v21 }
0x1448   :  { %v6352_v40 = vpop.eup %6351 }
0x1449   :  { %1857 = vrot.lane.b32.xlu1 %v6352_v40, %s6646_s12 }
0x144b   :  { %v6354_v0 = vpop.eup %6353 }
0x144c   :  { %1963 = vrot.lane.b32.xlu0 %v6354_v0, %s6646_s12  ;;  %v6356_v6 = vpop.eup %6355 }
0x144d   :  { %v6358_v43 = vpop.eup %6357  ;;  %v1851_v39 = vadd.f32 1.0, %v6356_v6 }
0x144e   :  { %v1957_v51 = vadd.f32 1.0, %v6358_v43 }
0x144f   :  { %6359 = vrcp.f32 %v1851_v39 }
0x1450   :  { %6361 = vrcp.f32 %v1957_v51 }
0x1459   :  { %v6360_v9 = vpop.eup %6359 }
0x145a   :  { %v6362_v55 = vpop.eup %6361  ;;  %v1855_v11 = vmul.f32 %v6360_v9, %v7395_v58 }
0x145b   :  { %v1961_v32 = vmul.f32 %v6362_v55, %v7404_v4 }
0x14bb   :  { %v1858_v7 = vpop.permute.xlu1 %1857 }
0x14bc   :  { %v1860_v61 = vmul.f32 %v6360_v9, %v1858_v7 }
0x14be   :  { %v1964_v44 = vpop.permute.xlu0 %1963  ;;  %1862 = vrot.lane.b32.xlu1 %v1860_v61, %s6646_s12 }
0x14bf   :  { %v1966_v54 = vmul.f32 %v6362_v55, %v1964_v44 }
0x14c1   :  { %1968 = vrot.lane.b32.xlu0 %v1966_v54, %s6646_s12 }
0x14c2   :  { %1980 = vperm.xlu1 %6245, %v1978_v48  }
0x1530   :  { %v1863_v62 = vpop.permute.xlu1 %1862 }
0x1531   :  { %v7398_v38 = vadd.f32 %v1863_v62, %v1855_v11 }
0x1533   :  { %6363 = vtanh.f32 %v7398_v38  ;;  %v1969_v60 = vpop.permute.xlu0 %1968 }
0x1534   :  { %v7408_v40 = vadd.f32 %v1969_v60, %v1961_v32 }
0x1536   :  { %6365 = vtanh.f32 %v7408_v40 }
0x153d   :  { %v6364_v31 = vpop.eup %6363 }
0x153e   :  { %1868 = vrot.lane.b32.xlu0 %v6364_v31, %s6646_s12 }
0x1540   :  { %v6366_v12 = vpop.eup %6365 }
0x1541   :  { %1974 = vrot.lane.b32.xlu1 %v6366_v12, %s6646_s12  ;;  %v7413_v0 = vpop.permute.xlu1 %1980 }
0x1542   :  { %vm1982_vm6 = vcmp.eq.s32.totalorder %v7413_v0, 1 }
0x15b0   :  { %v1869_v37 = vpop.permute.xlu0 %1868 }
0x15b1   :  { %v7415_v57 = vmul.f32 %v6360_v9, %v1869_v37 }
0x15b3   :  { %v1975_v46 = vpop.permute.xlu1 %1974  ;;  %v7421_v21 = vsel %vm8470_vm2, %v7415_v57, %v7345_v36 }
0x15b4   :  { %v1977_v6 = vmul.f32 %v6362_v55, %v1975_v46  ;;  %1990 = vrot.lane.b32.xlu1 %v7421_v21, %s6649_s17  ;;  %v228_v55 = vadd.f32 %v7300_v42, %v7000_v24 }
0x15b6   :  { %1986 = vrot.lane.b32.xlu0 %v1977_v6, %s6648_s5  ;;  %v7430_v43 = vsel %vm1982_vm6, %v1977_v6, %v7354_v41 }
0x15ba   :  { %2102 = vrot.lane.b32.xlu0 %v7430_v43, %s6648_s5 }
0x1626   :  { %v1991_v39 = vpop.permute.xlu1 %1990 }
0x1628   :  { %v1987_v51 = vpop.permute.xlu0 %1986 }
0x1629   :  { %v1993_v36 = vsel %vm322_vm4, %v1987_v51, %v1991_v39 }
0x162a   :  { %5505 = vmatmul.mubr.msk.f32.vlgmr.msra.gmra.mrb[28].mxu0 %vm439_vm5, %v1993_v36 }
0x162b   :  { %6035 = vmatpush3.bf16.msra.mxu0 %v6727_v8  ;;  %5545 = vmatprep.mubr.msk.f32.mxu0 %vm6644_vm1, %v8471_v16 }
0x162c   :  { %v2103_v9 = vpop.permute.xlu0 %2102  ;;  %6036 = vmatprep.subr.bf16.mxu0 %v8468_v10 }
0x162d   :  { %5516 = vmatmul.mubr.msk.f32.vlgmr.msra.gmra.mrb[22].mxu1 %vm322_vm4, %v2103_v9 }
0x162e   :  { %6023 = vmatpush3.bf16.msra.mxu1 %v6802_v45  ;;  %5534 = vmatprep.mubr.msk.f32.mxu1 %vm6644_vm1, %v8471_v16 }
0x162f   :  { %6024 = vmatprep.subr.bf16.mxu1 %v8468_v10  ;;  %6038 = vmatpush3.bf16.msra.mxu0 %v6751_v15 }
0x1630   :  { %6039 = vmatprep.subr.bf16.mxu0 %v8468_v10 }
0x1632   :  { %6026 = vmatpush3.bf16.msra.mxu1 %v6808_v47 }
0x1633   :  { %6027 = vmatprep.subr.bf16.mxu1 %v8468_v10 }
0x1636   :  { %6029 = vmatpush3.bf16.msra.mxu1 %v6820_v50 }
0x1637   :  { %6030 = vmatprep.subr.bf16.mxu1 %v8468_v10 }
0x163a   :  { %6032 = vmatpush3.bf16.msra.mxu1 %v6832_v53 }
0x163b   :  { %6051 = vmatprep.subr.bf16.mxu1 %v8468_v10 }
0x16fd   :  { %v2063_v41 = vpop.f32.mrb[28].mxu0 }
0x16fe   :  { %v2064_v7 = vadd.f32 %v7380_v49, %v2063_v41  ;;  %v5506_v61 = vpop.f32.mrb[29].mxu0  ;;  %v2201_v41 = vsel %vm2099_vm8, 1, %v8473_v35  ;;  %vm2764_vm8 = vcmp.gt.s32.totalorder %v7309_v13, 11 }
0x1700   :  { %6367 = vtanh.f32 %v2064_v7  ;;  %v2172_v44 = vpop.f32.mrb[22].mxu1  ;;  %v4882_v32 = vmul.f32 -1.442695, %v2064_v7  ;;  %v7466_v7 = vsel %vm8470_vm2, %v7398_v38, %v7395_v58 }
0x1701   :  { %v2176_v54 = vadd.f32 %v2172_v44, %v228_v55  ;;  %v5517_v48 = vpop.f32.mrb[23].mxu1 }
0x1703   :  { %6369 = vtanh.f32 %v2176_v54  ;;  %v4884_v60 = vmul.f32 -1.442695, %v2176_v54  ;;  %v7475_v54 = vsel %vm1982_vm6, %v7408_v40, %v7404_v4 }
0x1704   :  { %6371 = vpow2.f32 %v4882_v32 }
0x1705   :  { %6373 = vpow2.f32 %v4884_v60 }
0x170a   :  { %v6368_v11 = vpop.eup %6367 }
0x170b   :  { %2076 = vrot.lane.b32.xlu1 %v6368_v11, %s6646_s12 }
0x170d   :  { %v6370_v62 = vpop.eup %6369 }
0x170e   :  { %2186 = vrot.lane.b32.xlu0 %v6370_v62, %s6646_s12  ;;  %v6372_v31 = vpop.eup %6371 }
0x170f   :  { %v6374_v12 = vpop.eup %6373  ;;  %v2070_v37 = vadd.f32 1.0, %v6372_v31 }
0x1710   :  { %v2180_v46 = vadd.f32 1.0, %v6374_v12 }
0x1711   :  { %6375 = vrcp.f32 %v2070_v37 }
0x1712   :  { %6377 = vrcp.f32 %v2180_v46 }
0x171b   :  { %v6376_v24 = vpop.eup %6375 }
0x171c   :  { %v6378_v51 = vpop.eup %6377  ;;  %v2074_v61 = vmul.f32 %v6376_v24, %v7466_v7 }
0x171d   :  { %v2184_v48 = vmul.f32 %v6378_v51, %v7475_v54 }
0x177d   :  { %v2077_v6 = vpop.permute.xlu1 %2076 }
0x177e   :  { %v2079_v39 = vmul.f32 %v6376_v24, %v2077_v6 }
0x1780   :  { %2081 = vrot.lane.b32.xlu1 %v2079_v39, %s6646_s12  ;;  %v2187_v36 = vpop.permute.xlu0 %2186 }
0x1781   :  { %v2189_v9 = vmul.f32 %v6378_v51, %v2187_v36  ;;  %v233_v36 = vadd.f32 %v7300_v42, %v6998_v20 }
0x1783   :  { %2191 = vrot.lane.b32.xlu0 %v2189_v9, %s6646_s12 }
0x1784   :  { %2203 = vperm.xlu1 %6245, %v2201_v41  }
0x17f2   :  { %v2082_v55 = vpop.permute.xlu1 %2081 }
0x17f3   :  { %v7469_v44 = vadd.f32 %v2082_v55, %v2074_v61 }
0x17f5   :  { %6379 = vtanh.f32 %v7469_v44  ;;  %v2192_v11 = vpop.permute.xlu0 %2191 }
0x17f6   :  { %v7479_v62 = vadd.f32 %v2192_v11, %v2184_v48 }
0x17f8   :  { %6381 = vtanh.f32 %v7479_v62 }
0x17ff   :  { %v6380_v58 = vpop.eup %6379 }
0x1800   :  { %2087 = vrot.lane.b32.xlu0 %v6380_v58, %s6646_s12 }
0x1802   :  { %v6382_v38 = vpop.eup %6381 }
0x1803   :  { %2197 = vrot.lane.b32.xlu1 %v6382_v38, %s6646_s12  ;;  %v7484_v32 = vpop.permute.xlu1 %2203 }
0x1804   :  { %vm2205_vm10 = vcmp.eq.s32.totalorder %v7484_v32, 1 }
0x1872   :  { %v2088_v60 = vpop.permute.xlu0 %2087 }
0x1873   :  { %v7486_v4 = vmul.f32 %v6376_v24, %v2088_v60 }
0x1875   :  { %v2198_v40 = vpop.permute.xlu1 %2197  ;;  %v7492_v31 = vsel %vm1982_vm6, %v7486_v4, %v7421_v21 }
0x1876   :  { %v2200_v12 = vmul.f32 %v6378_v51, %v2198_v40  ;;  %2213 = vrot.lane.b32.xlu1 %v7492_v31, %s6649_s17 }
0x1878   :  { %2209 = vrot.lane.b32.xlu0 %v2200_v12, %s6648_s5  ;;  %v7501_v37 = vsel %vm2205_vm10, %v2200_v12, %v7430_v43 }
0x187c   :  { %2325 = vrot.lane.b32.xlu0 %v7501_v37, %s6648_s5 }
0x18e8   :  { %v2214_v46 = vpop.permute.xlu1 %2213 }
0x18ea   :  { %v2210_v24 = vpop.permute.xlu0 %2209 }
0x18eb   :  { %v2216_v21 = vsel %vm322_vm4, %v2210_v24, %v2214_v46 }
0x18ec   :  { %5535 = vmatmul.mubr.msk.f32.vlgmr.msra.gmra.mrb[24].mxu1 %vm439_vm5, %v2216_v21 }
0x18ed   :  { %6053 = vmatpush3.bf16.msra.mxu1 %v6727_v8  ;;  %5575 = vmatprep.mubr.msk.f32.mxu1 %vm6644_vm1, %v8471_v16 }
0x18ee   :  { %v2326_v6 = vpop.permute.xlu0 %2325  ;;  %6054 = vmatprep.subr.bf16.mxu1 %v8468_v10 }
0x18ef   :  { %5546 = vmatmul.mubr.msk.f32.vlgmr.msra.gmra.mrb[30].mxu0 %vm322_vm4, %v2326_v6 }
0x18f0   :  { %6041 = vmatpush3.bf16.msra.mxu0 %v6802_v45  ;;  %5564 = vmatprep.mubr.msk.f32.mxu0 %vm6644_vm1, %v8471_v16 }
0x18f1   :  { %6042 = vmatprep.subr.bf16.mxu0 %v8468_v10  ;;  %6056 = vmatpush3.bf16.msra.mxu1 %v6751_v15 }
0x18f2   :  { %6057 = vmatprep.subr.bf16.mxu1 %v8468_v10 }
0x18f4   :  { %6044 = vmatpush3.bf16.msra.mxu0 %v6808_v47 }
0x18f5   :  { %6045 = vmatprep.subr.bf16.mxu0 %v8468_v10 }
0x18f8   :  { %6047 = vmatpush3.bf16.msra.mxu0 %v6820_v50 }
0x18f9   :  { %6048 = vmatprep.subr.bf16.mxu0 %v8468_v10 }
0x18fc   :  { %6050 = vmatpush3.bf16.msra.mxu0 %v6832_v53 }
0x18fd   :  { %6069 = vmatprep.subr.bf16.mxu0 %v8468_v10 }
0x19bf   :  { %v2286_v43 = vpop.f32.mrb[24].mxu1 }
0x19c0   :  { %v2287_v39 = vadd.f32 %v7380_v49, %v2286_v43  ;;  %v5536_v51 = vpop.f32.mrb[25].mxu1 }
0x19c1   :  { %v7537_v51 = vsel %vm1982_vm6, %v7469_v44, %v7466_v7 }
0x19c2   :  { %6383 = vtanh.f32 %v2287_v39  ;;  %v2395_v9 = vpop.f32.mrb[30].mxu0  ;;  %v4886_v11 = vmul.f32 -1.442695, %v2287_v39  ;;  %v2424_v39 = vsel %vm2322_vm12, 1, %v8473_v35 }
0x19c3   :  { %v2399_v41 = vadd.f32 %v2395_v9, %v233_v36  ;;  %v5547_v61 = vpop.f32.mrb[31].mxu0 }
0x19c4   :  { %v7546_v61 = vsel %vm2205_vm10, %v7479_v62, %v7475_v54 }
0x19c5   :  { %6385 = vtanh.f32 %v2399_v41  ;;  %v4888_v58 = vmul.f32 -1.442695, %v2399_v41 }
0x19c6   :  { %6387 = vpow2.f32 %v4886_v11 }
0x19c7   :  { %6389 = vpow2.f32 %v4888_v58 }
0x19cc   :  { %v6384_v55 = vpop.eup %6383 }
0x19cd   :  { %2299 = vrot.lane.b32.xlu1 %v6384_v55, %s6646_s12 }
0x19cf   :  { %v6386_v48 = vpop.eup %6385 }
0x19d0   :  { %2409 = vrot.lane.b32.xlu0 %v6386_v48, %s6646_s12  ;;  %v6388_v38 = vpop.eup %6387 }
0x19d1   :  { %v6390_v60 = vpop.eup %6389  ;;  %v2293_v40 = vadd.f32 1.0, %v6388_v38 }
0x19d2   :  { %v2403_v12 = vadd.f32 1.0, %v6390_v60 }
0x19d3   :  { %6391 = vrcp.f32 %v2293_v40 }
0x19d4   :  { %6393 = vrcp.f32 %v2403_v12 }
0x19dd   :  { %v6392_v20 = vpop.eup %6391 }
0x19de   :  { %v6394_v21 = vpop.eup %6393  ;;  %v2297_v36 = vmul.f32 %v6392_v20, %v7537_v51 }
0x19df   :  { %v2407_v55 = vmul.f32 %v6394_v21, %v7546_v61 }
0x1a3f   :  { %v2300_v46 = vpop.permute.xlu1 %2299 }
0x1a40   :  { %v2302_v24 = vmul.f32 %v6392_v20, %v2300_v46 }
0x1a42   :  { %v2410_v6 = vpop.permute.xlu0 %2409  ;;  %2304 = vrot.lane.b32.xlu1 %v2302_v24, %s6646_s12 }
0x1a43   :  { %v2412_v43 = vmul.f32 %v6394_v21, %v2410_v6 }
0x1a45   :  { %2414 = vrot.lane.b32.xlu0 %v2412_v43, %s6646_s12  ;;  %v238_v43 = vadd.f32 %v7300_v42, %v7004_v25 }
0x1a46   :  { %2426 = vperm.xlu1 %6245, %v2424_v39  }
0x1ab4   :  { %v2305_v9 = vpop.permute.xlu1 %2304 }
0x1ab5   :  { %v7540_v41 = vadd.f32 %v2305_v9, %v2297_v36 }
0x1ab7   :  { %6395 = vtanh.f32 %v7540_v41  ;;  %v2415_v48 = vpop.permute.xlu0 %2414 }
0x1ab8   :  { %v7550_v11 = vadd.f32 %v2415_v48, %v2407_v55 }
0x1aba   :  { %6397 = vtanh.f32 %v7550_v11 }
0x1ac1   :  { %v6396_v7 = vpop.eup %6395 }
0x1ac2   :  { %2310 = vrot.lane.b32.xlu0 %v6396_v7, %s6646_s12 }
0x1ac4   :  { %v6398_v44 = vpop.eup %6397 }
0x1ac5   :  { %2420 = vrot.lane.b32.xlu1 %v6398_v44, %s6646_s12  ;;  %v7555_v58 = vpop.permute.xlu1 %2426 }
0x1ac6   :  { %vm2428_vm14 = vcmp.eq.s32.totalorder %v7555_v58, 1 }
0x1b34   :  { %v2311_v38 = vpop.permute.xlu0 %2310 }
0x1b35   :  { %v7557_v54 = vmul.f32 %v6392_v20, %v2311_v38 }
0x1b37   :  { %v2421_v62 = vpop.permute.xlu1 %2420  ;;  %v7563_v60 = vsel %vm2205_vm10, %v7557_v54, %v7492_v31 }
0x1b38   :  { %v2423_v40 = vmul.f32 %v6394_v21, %v2421_v62  ;;  %2436 = vrot.lane.b32.xlu1 %v7563_v60, %s6649_s17 }
0x1b3a   :  { %2432 = vrot.lane.b32.xlu0 %v2423_v40, %s6648_s5  ;;  %v7572_v12 = vsel %vm2428_vm14, %v2423_v40, %v7501_v37 }
0x1b3e   :  { %2548 = vrot.lane.b32.xlu0 %v7572_v12, %s6648_s5 }
0x1baa   :  { %v2437_v20 = vpop.permute.xlu1 %2436 }
0x1bac   :  { %v2433_v46 = vpop.permute.xlu0 %2432 }
0x1bad   :  { %v2439_v31 = vsel %vm322_vm4, %v2433_v46, %v2437_v20 }
0x1bae   :  { %5565 = vmatmul.mubr.msk.f32.vlgmr.msra.gmra.mrb[32].mxu0 %vm439_vm5, %v2439_v31 }
0x1baf   :  { %6071 = vmatpush3.bf16.msra.mxu0 %v6727_v8  ;;  %5605 = vmatprep.mubr.msk.f32.mxu0 %vm6644_vm1, %v8471_v16 }
0x1bb0   :  { %v2549_v24 = vpop.permute.xlu0 %2548  ;;  %6072 = vmatprep.subr.bf16.mxu0 %v8468_v10 }
0x1bb1   :  { %5576 = vmatmul.mubr.msk.f32.vlgmr.msra.gmra.mrb[26].mxu1 %vm322_vm4, %v2549_v24 }
0x1bb2   :  { %6059 = vmatpush3.bf16.msra.mxu1 %v6802_v45  ;;  %5594 = vmatprep.mubr.msk.f32.mxu1 %vm6644_vm1, %v8471_v16 }
0x1bb3   :  { %6060 = vmatprep.subr.bf16.mxu1 %v8468_v10  ;;  %6074 = vmatpush3.bf16.msra.mxu0 %v6751_v15 }
0x1bb4   :  { %6075 = vmatprep.subr.bf16.mxu0 %v8468_v10 }
0x1bb6   :  { %6062 = vmatpush3.bf16.msra.mxu1 %v6808_v47 }
0x1bb7   :  { %6063 = vmatprep.subr.bf16.mxu1 %v8468_v10 }
0x1bba   :  { %6065 = vmatpush3.bf16.msra.mxu1 %v6820_v50 }
0x1bbb   :  { %6066 = vmatprep.subr.bf16.mxu1 %v8468_v10 }
0x1bbe   :  { %6068 = vmatpush3.bf16.msra.mxu1 %v6832_v53 }
0x1bbf   :  { %6087 = vmatprep.subr.bf16.mxu1 %v8468_v10 }
0x1c81   :  { %v2509_v37 = vpop.f32.mrb[32].mxu0 }
0x1c82   :  { %v2510_v21 = vadd.f32 %v7380_v49, %v2509_v37  ;;  %v5566_v6 = vpop.f32.mrb[33].mxu0 }
0x1c84   :  { %6399 = vtanh.f32 %v2510_v21  ;;  %v2618_v39 = vpop.f32.mrb[26].mxu1  ;;  %v4890_v7 = vmul.f32 -1.442695, %v2510_v21  ;;  %v2647_v21 = vsel %vm2545_vm0, 1, %v8473_v35  ;;  %vm2987_vm0 = vcmp.gt.s32.totalorder %v7309_v13, 12 }
0x1c85   :  { %v2622_v36 = vadd.f32 %v2618_v39, %v238_v43  ;;  %v5577_v9 = vpop.f32.mrb[27].mxu1  ;;  %v7608_v43 = vsel %vm2205_vm10, %v7540_v41, %v7537_v51 }
0x1c87   :  { %6401 = vtanh.f32 %v2622_v36  ;;  %v4892_v44 = vmul.f32 -1.442695, %v2622_v36 }
0x1c88   :  { %6403 = vpow2.f32 %v4890_v7 }
0x1c89   :  { %6405 = vpow2.f32 %v4892_v44 }
0x1c8e   :  { %v6400_v55 = vpop.eup %6399 }
0x1c8f   :  { %2522 = vrot.lane.b32.xlu1 %v6400_v55, %s6646_s12  ;;  %v7617_v55 = vsel %vm2428_vm14, %v7550_v11, %v7546_v61 }
0x1c91   :  { %v6402_v48 = vpop.eup %6401 }
0x1c92   :  { %2632 = vrot.lane.b32.xlu0 %v6402_v48, %s6646_s12  ;;  %v6404_v38 = vpop.eup %6403 }
0x1c93   :  { %v6406_v62 = vpop.eup %6405  ;;  %v2516_v40 = vadd.f32 1.0, %v6404_v38 }
0x1c94   :  { %v2626_v20 = vadd.f32 1.0, %v6406_v62 }
0x1c95   :  { %6407 = vrcp.f32 %v2516_v40 }
0x1c96   :  { %6409 = vrcp.f32 %v2626_v20 }
0x1c9f   :  { %v6408_v25 = vpop.eup %6407 }
0x1ca0   :  { %v6410_v24 = vpop.eup %6409  ;;  %v2520_v39 = vmul.f32 %v6408_v25, %v7608_v43 }
0x1ca1   :  { %v2630_v48 = vmul.f32 %v6410_v24, %v7617_v55 }
0x1d01   :  { %v2523_v46 = vpop.permute.xlu1 %2522 }
0x1d02   :  { %v2525_v31 = vmul.f32 %v6408_v25, %v2523_v46 }
0x1d04   :  { %2527 = vrot.lane.b32.xlu1 %v2525_v31, %s6646_s12  ;;  %v2633_v37 = vpop.permute.xlu0 %2632 }
0x1d05   :  { %v2635_v6 = vmul.f32 %v6410_v24, %v2633_v37 }
0x1d07   :  { %2637 = vrot.lane.b32.xlu0 %v2635_v6, %s6646_s12 }
0x1d08   :  { %2649 = vperm.xlu1 %6245, %v2647_v21   ;;  %v243_v21 = vadd.f32 %v7300_v42, %v7002_v18 }
0x1d76   :  { %v2528_v36 = vpop.permute.xlu1 %2527 }
0x1d77   :  { %v7611_v9 = vadd.f32 %v2528_v36, %v2520_v39 }
0x1d79   :  { %6411 = vtanh.f32 %v7611_v9  ;;  %v2638_v7 = vpop.permute.xlu0 %2637 }
0x1d7a   :  { %v7621_v44 = vadd.f32 %v2638_v7, %v2630_v48 }
0x1d7c   :  { %6413 = vtanh.f32 %v7621_v44 }
0x1d83   :  { %v6412_v51 = vpop.eup %6411 }
0x1d84   :  { %2533 = vrot.lane.b32.xlu0 %v6412_v51, %s6646_s12 }
0x1d86   :  { %v6414_v41 = vpop.eup %6413 }
0x1d87   :  { %2643 = vrot.lane.b32.xlu1 %v6414_v41, %s6646_s12  ;;  %v7626_v38 = vpop.permute.xlu1 %2649 }
0x1d88   :  { %8478 = vst [vmem:[#allocation10_spill] sm:$0xff] %v7626_v38  ;;  %vm8466_vm3 = vcmp.eq.s32.totalorder %v7626_v38, 1 }
0x1df6   :  { %v2534_v62 = vpop.permute.xlu0 %2533 }
0x1df7   :  { %v7628_v61 = vmul.f32 %v6408_v25, %v2534_v62 }
0x1df9   :  { %v2644_v11 = vpop.permute.xlu1 %2643  ;;  %v7634_v40 = vsel %vm2428_vm14, %v7628_v61, %v7563_v60  ;;  %v2539_v30 = vsel %vm2428_vm14, %v7628_v61, 0.0 }
0x1dfa   :  { %v2646_v20 = vmul.f32 %v6410_v24, %v2644_v11  ;;  %2659 = vrot.lane.b32.xlu1 %v7634_v40, %s6649_s17 }
0x1dfc   :  { %2655 = vrot.lane.b32.xlu0 %v2646_v20, %s6648_s5  ;;  %v7643_v25 = vsel %vm8466_vm3, %v2646_v20, %v7572_v12 }
0x1e00   :  { %2767 = vrot.lane.b32.xlu0 %v7643_v25, %s6648_s5 }
0x1e6c   :  { %v2660_v46 = vpop.permute.xlu1 %2659 }
0x1e6e   :  { %v2656_v31 = vpop.permute.xlu0 %2655 }
0x1e6f   :  { %v2662_v60 = vsel %vm322_vm4, %v2656_v31, %v2660_v46 }
0x1e70   :  { %5595 = vmatmul.mubr.msk.f32.vlgmr.msra.gmra.mrb[28].mxu1 %vm439_vm5, %v2662_v60 }
0x1e71   :  { %6089 = vmatpush3.bf16.msra.mxu1 %v6727_v8  ;;  %5635 = vmatprep.mubr.msk.f32.mxu1 %vm6644_vm1, %v8471_v16 }
0x1e72   :  { %v2768_v24 = vpop.permute.xlu0 %2767  ;;  %6090 = vmatprep.subr.bf16.mxu1 %v8468_v10 }
0x1e73   :  { %5606 = vmatmul.mubr.msk.f32.vlgmr.msra.gmra.mrb[34].mxu0 %vm322_vm4, %v2768_v24 }
0x1e74   :  { %6077 = vmatpush3.bf16.msra.mxu0 %v6802_v45  ;;  %5624 = vmatprep.mubr.msk.f32.mxu0 %vm6644_vm1, %v8471_v16 }
0x1e75   :  { %6078 = vmatprep.subr.bf16.mxu0 %v8468_v10  ;;  %6092 = vmatpush3.bf16.msra.mxu1 %v6751_v15 }
0x1e76   :  { %6093 = vmatprep.subr.bf16.mxu1 %v8468_v10 }
0x1e78   :  { %6080 = vmatpush3.bf16.msra.mxu0 %v6808_v47 }
0x1e79   :  { %6081 = vmatprep.subr.bf16.mxu0 %v8468_v10 }
0x1e7c   :  { %6083 = vmatpush3.bf16.msra.mxu0 %v6820_v50 }
0x1e7d   :  { %6084 = vmatprep.subr.bf16.mxu0 %v8468_v10 }
0x1e80   :  { %6086 = vmatpush3.bf16.msra.mxu0 %v6832_v53 }
0x1e81   :  { %6105 = vmatprep.subr.bf16.mxu0 %v8468_v10 }
0x1f43   :  { %v2732_v12 = vpop.f32.mrb[28].mxu1 }
0x1f44   :  { %v2733_v37 = vadd.f32 %v7380_v49, %v2732_v12  ;;  %v5596_v6 = vpop.f32.mrb[29].mxu1 }
0x1f46   :  { %6415 = vtanh.f32 %v2733_v37  ;;  %v2837_v39 = vpop.f32.mrb[34].mxu0  ;;  %v4894_v41 = vmul.f32 -1.442695, %v2733_v37  ;;  %v2866_v37 = vsel %vm2764_vm8, 1, %v8473_v35 }
0x1f47   :  { %v2841_v36 = vadd.f32 %v2837_v39, %v243_v21  ;;  %v5607_v48 = vpop.f32.mrb[35].mxu0  ;;  %v7679_v39 = vsel %vm2428_vm14, %v7611_v9, %v7608_v43  ;;  %vm8485_vm14 = vcmp.eq.s32.totalorder %v7043_v34, 1 }
0x1f49   :  { %6417 = vtanh.f32 %v2841_v36  ;;  %v4896_v62 = vmul.f32 -1.442695, %v2841_v36 }
0x1f4a   :  { %6419 = vpow2.f32 %v4894_v41 }
0x1f4b   :  { %6421 = vpow2.f32 %v4896_v62 }
0x1f50   :  { %v6416_v7 = vpop.eup %6415 }
0x1f51   :  { %2745 = vrot.lane.b32.xlu1 %v6416_v7, %s6646_s12 }
0x1f53   :  { %v6418_v51 = vpop.eup %6417 }
0x1f54   :  { %2851 = vrot.lane.b32.xlu0 %v6418_v51, %s6646_s12  ;;  %v6420_v11 = vpop.eup %6419  ;;  %v7688_v51 = vsel %vm8466_vm3, %v7621_v44, %v7617_v55 }
0x1f55   :  { %v6422_v20 = vpop.eup %6421  ;;  %v2739_v46 = vadd.f32 1.0, %v6420_v11 }
0x1f56   :  { %v2845_v31 = vadd.f32 1.0, %v6422_v20 }
0x1f57   :  { %6423 = vrcp.f32 %v2739_v46 }
0x1f58   :  { %6425 = vrcp.f32 %v2845_v31 }
0x1f61   :  { %v6424_v18 = vpop.eup %6423 }
0x1f62   :  { %v6426_v12 = vpop.eup %6425  ;;  %v2743_v36 = vmul.f32 %v6424_v18, %v7679_v39 }
0x1f63   :  { %v2849_v41 = vmul.f32 %v6426_v12, %v7688_v51 }
0x1fc3   :  { %v2746_v60 = vpop.permute.xlu1 %2745 }
0x1fc4   :  { %v2748_v24 = vmul.f32 %v6424_v18, %v2746_v60 }
0x1fc6   :  { %v2852_v6 = vpop.permute.xlu0 %2851  ;;  %2750 = vrot.lane.b32.xlu1 %v2748_v24, %s6646_s12 }
0x1fc7   :  { %v2854_v21 = vmul.f32 %v6426_v12, %v2852_v6 }
0x1fc9   :  { %2856 = vrot.lane.b32.xlu0 %v2854_v21, %s6646_s12 }
0x1fca   :  { %2868 = vperm.xlu1 %6245, %v2866_v37  }
0x2038   :  { %v2751_v48 = vpop.permute.xlu1 %2750 }
0x2039   :  { %v7682_v7 = vadd.f32 %v2751_v48, %v2743_v36  ;;  %v248_v36 = vadd.f32 %v7300_v42, %v7008_v27 }
0x203b   :  { %6427 = vtanh.f32 %v7682_v7  ;;  %v2857_v62 = vpop.permute.xlu0 %2856 }
0x203c   :  { %v7692_v11 = vadd.f32 %v2857_v62, %v2849_v41 }
0x203e   :  { %6429 = vtanh.f32 %v7692_v11 }
0x2045   :  { %v6428_v43 = vpop.eup %6427 }
0x2046   :  { %2756 = vrot.lane.b32.xlu0 %v6428_v43, %s6646_s12 }
0x2048   :  { %v6430_v9 = vpop.eup %6429 }
0x2049   :  { %2862 = vrot.lane.b32.xlu1 %v6430_v9, %s6646_s12  ;;  %v7697_v20 = vpop.permute.xlu1 %2868 }
0x204a   :  { %vm2870_vm12 = vcmp.eq.s32.totalorder %v7697_v20, 1 }
0x20b8   :  { %v2757_v46 = vpop.permute.xlu0 %2756 }
0x20b9   :  { %v7699_v55 = vmul.f32 %v6424_v18, %v2757_v46 }
0x20bb   :  { %v2863_v44 = vpop.permute.xlu1 %2862  ;;  %v7705_v31 = vsel %vm8466_vm3, %v7699_v55, %v7634_v40 }
0x20bc   :  { %v2865_v60 = vmul.f32 %v6426_v12, %v2863_v44  ;;  %2878 = vrot.lane.b32.xlu1 %v7705_v31, %s6649_s17 }
0x20be   :  { %2874 = vrot.lane.b32.xlu0 %v2865_v60, %s6648_s5  ;;  %v7714_v18 = vsel %vm2870_vm12, %v2865_v60, %v7643_v25 }
0x20c2   :  { %2990 = vrot.lane.b32.xlu0 %v7714_v18, %s6648_s5 }
0x212e   :  { %v2879_v24 = vpop.permute.xlu1 %2878 }
0x2130   :  { %v2875_v6 = vpop.permute.xlu0 %2874 }
0x2131   :  { %v2881_v40 = vsel %vm322_vm4, %v2875_v6, %v2879_v24 }
0x2132   :  { %5625 = vmatmul.mubr.msk.f32.vlgmr.msra.gmra.mrb[36].mxu0 %vm439_vm5, %v2881_v40 }
0x2133   :  { %6107 = vmatpush3.bf16.msra.mxu0 %v6727_v8  ;;  %5665 = vmatprep.mubr.msk.f32.mxu0 %vm6644_vm1, %v8471_v16 }
0x2134   :  { %v2991_v12 = vpop.permute.xlu0 %2990  ;;  %6108 = vmatprep.subr.bf16.mxu0 %v8468_v10 }
0x2135   :  { %5636 = vmatmul.mubr.msk.f32.vlgmr.msra.gmra.mrb[30].mxu1 %vm322_vm4, %v2991_v12 }
0x2136   :  { %6095 = vmatpush3.bf16.msra.mxu1 %v6802_v45  ;;  %5654 = vmatprep.mubr.msk.f32.mxu1 %vm6644_vm1, %v8471_v16 }
0x2137   :  { %6096 = vmatprep.subr.bf16.mxu1 %v8468_v10  ;;  %6110 = vmatpush3.bf16.msra.mxu0 %v6751_v15 }
0x2138   :  { %6111 = vmatprep.subr.bf16.mxu0 %v8468_v10 }
0x213a   :  { %6098 = vmatpush3.bf16.msra.mxu1 %v6808_v47 }
0x213b   :  { %6099 = vmatprep.subr.bf16.mxu1 %v8468_v10 }
0x213e   :  { %6101 = vmatpush3.bf16.msra.mxu1 %v6820_v50 }
0x213f   :  { %6102 = vmatprep.subr.bf16.mxu1 %v8468_v10 }
0x2142   :  { %6104 = vmatpush3.bf16.msra.mxu1 %v6832_v53 }
0x2143   :  { %6123 = vmatprep.subr.bf16.mxu1 %v8468_v10 }
0x2205   :  { %v2951_v25 = vpop.f32.mrb[36].mxu0 }
0x2206   :  { %v2952_v21 = vadd.f32 %v7380_v49, %v2951_v25  ;;  %v5626_v37 = vpop.f32.mrb[37].mxu0 }
0x2208   :  { %6431 = vtanh.f32 %v2952_v21  ;;  %v3060_v48 = vpop.f32.mrb[30].mxu1  ;;  %v4898_v46 = vmul.f32 -1.442695, %v2952_v21  ;;  %v3089_v21 = vsel %vm2987_vm0, 1, %v8473_v35 }
0x2209   :  { %v3064_v41 = vadd.f32 %v3060_v48, %v248_v36  ;;  %v5637_v62 = vpop.f32.mrb[31].mxu1  ;;  %v7750_v48 = vsel %vm8466_vm3, %v7682_v7, %v7679_v39 }
0x220b   :  { %6433 = vtanh.f32 %v3064_v41  ;;  %v4900_v44 = vmul.f32 -1.442695, %v3064_v41 }
0x220c   :  { %6435 = vpow2.f32 %v4898_v46 }
0x220d   :  { %6437 = vpow2.f32 %v4900_v44 }
0x2212   :  { %v6432_v43 = vpop.eup %6431 }
0x2213   :  { %2964 = vrot.lane.b32.xlu1 %v6432_v43, %s6646_s12  ;;  %v7759_v43 = vsel %vm2870_vm12, %v7692_v11, %v7688_v51 }
0x2215   :  { %v6434_v9 = vpop.eup %6433 }
0x2216   :  { %3074 = vrot.lane.b32.xlu0 %v6434_v9, %s6646_s12  ;;  %v6436_v60 = vpop.eup %6435 }
0x2217   :  { %v6438_v24 = vpop.eup %6437  ;;  %v2958_v6 = vadd.f32 1.0, %v6436_v60 }
0x2218   :  { %v3068_v40 = vadd.f32 1.0, %v6438_v24 }
0x2219   :  { %6439 = vrcp.f32 %v2958_v6 }
0x221a   :  { %6441 = vrcp.f32 %v3068_v40 }
0x2223   :  { %v6440_v27 = vpop.eup %6439 }
0x2224   :  { %v6442_v25 = vpop.eup %6441  ;;  %v2962_v41 = vmul.f32 %v6440_v27, %v7750_v48 }
0x2225   :  { %v3072_v9 = vmul.f32 %v6442_v25, %v7759_v43 }
0x2285   :  { %v2965_v42 = vpop.permute.xlu1 %2964 }
0x2286   :  { %v2967_v12 = vmul.f32 %v6440_v27, %v2965_v42 }
0x2288   :  { %2969 = vrot.lane.b32.xlu1 %v2967_v12, %s6646_s12  ;;  %v3075_v37 = vpop.permute.xlu0 %3074 }
0x2289   :  { %v3077_v36 = vmul.f32 %v6442_v25, %v3075_v37 }
0x228b   :  { %3079 = vrot.lane.b32.xlu0 %v3077_v36, %s6646_s12 }
0x228c   :  { %3091 = vperm.xlu1 %6245, %v3089_v21   ;;  %v7812_v21 = vld [vmem:[%s8459_s3] ss:$0 sm:$0xff] }
0x22fa   :  { %v2970_v62 = vpop.permute.xlu1 %2969 }
0x22fb   :  { %v7753_v13 = vadd.f32 %v2970_v62, %v2962_v41  ;;  %v253_v41 = vadd.f32 %v7812_v21, %v7006_v26 }
0x22fd   :  { %6443 = vtanh.f32 %v7753_v13  ;;  %v3080_v46 = vpop.permute.xlu0 %3079 }
0x22fe   :  { %v7763_v44 = vadd.f32 %v3080_v46, %v3072_v9 }
0x2300   :  { %6445 = vtanh.f32 %v7763_v44 }
0x2307   :  { %v6444_v39 = vpop.eup %6443 }
0x2308   :  { %2975 = vrot.lane.b32.xlu0 %v6444_v39, %s6646_s12 }
0x230a   :  { %v6446_v7 = vpop.eup %6445 }
0x230b   :  { %3085 = vrot.lane.b32.xlu1 %v6446_v7, %s6646_s12  ;;  %v7768_v60 = vpop.permute.xlu1 %3091 }
0x230c   :  { %vm3093_vm8 = vcmp.eq.s32.totalorder %v7768_v60, 1  ;;  %v2093_v60 = vsel %vm1982_vm6, %v7486_v4, 0.0 }
0x237a   :  { %v2976_v24 = vpop.permute.xlu0 %2975 }
0x237b   :  { %v7770_v51 = vmul.f32 %v6440_v27, %v2976_v24 }
0x237d   :  { %v3086_v11 = vpop.permute.xlu1 %3085  ;;  %v7776_v6 = vsel %vm2870_vm12, %v7770_v51, %v7705_v31 }
0x237e   :  { %v3088_v40 = vmul.f32 %v6442_v25, %v3086_v11  ;;  %3101 = vrot.lane.b32.xlu1 %v7776_v6, %s6649_s17 }
0x2380   :  { %3097 = vrot.lane.b32.xlu0 %v3088_v40, %s6648_s5  ;;  %v7785_v27 = vsel %vm3093_vm8, %v3088_v40, %v7714_v18 }
0x2384   :  { %3213 = vrot.lane.b32.xlu0 %v7785_v27, %s6648_s5 }
0x23f0   :  { %v3102_v42 = vpop.permute.xlu1 %3101 }
0x23f2   :  { %v3098_v12 = vpop.permute.xlu0 %3097 }
0x23f3   :  { %v3104_v31 = vsel %vm322_vm4, %v3098_v12, %v3102_v42 }
0x23f4   :  { %5655 = vmatmul.mubr.msk.f32.vlgmr.msra.gmra.mrb[32].mxu1 %vm439_vm5, %v3104_v31 }
0x23f5   :  { %6125 = vmatpush3.bf16.msra.mxu1 %v6727_v8  ;;  %5695 = vmatprep.mubr.msk.f32.mxu1 %vm6644_vm1, %v8471_v16 }
0x23f6   :  { %v3214_v25 = vpop.permute.xlu0 %3213  ;;  %6126 = vmatprep.subr.bf16.mxu1 %v8468_v10 }
0x23f7   :  { %5666 = vmatmul.mubr.msk.f32.vlgmr.msra.gmra.mrb[38].mxu0 %vm322_vm4, %v3214_v25 }
0x23f8   :  { %6113 = vmatpush3.bf16.msra.mxu0 %v6802_v45  ;;  %5684 = vmatprep.mubr.msk.f32.mxu0 %vm6644_vm1, %v8471_v16 }
0x23f9   :  { %6114 = vmatprep.subr.bf16.mxu0 %v8468_v10  ;;  %6128 = vmatpush3.bf16.msra.mxu1 %v6751_v15 }
0x23fa   :  { %6129 = vmatprep.subr.bf16.mxu1 %v8468_v10 }
0x23fc   :  { %6116 = vmatpush3.bf16.msra.mxu0 %v6808_v47 }
0x23fd   :  { %6117 = vmatprep.subr.bf16.mxu0 %v8468_v10 }
0x2400   :  { %6119 = vmatpush3.bf16.msra.mxu0 %v6820_v50 }
0x2401   :  { %6120 = vmatprep.subr.bf16.mxu0 %v8468_v10 }
0x2404   :  { %6122 = vmatpush3.bf16.msra.mxu0 %v6832_v53 }
0x2405   :  { %6141 = vmatprep.subr.bf16.mxu0 %v8468_v10 }
0x24c7   :  { %v3174_v18 = vpop.f32.mrb[32].mxu1 }
0x24c8   :  { %v3175_v37 = vadd.f32 %v7380_v49, %v3174_v18  ;;  %v5656_v36 = vpop.f32.mrb[33].mxu1  ;;  %v7821_v18 = vld [vmem:[%s8456_s0] sm:$0xff] }
0x24c9   :  { %vm3210_vm0 = vcmp.gt.s32.totalorder %v7821_v18, 13  ;;  %vm3433_vm3 = vcmp.gt.s32.totalorder %v7821_v18, 14  ;;  %vm3652_vm9 = vcmp.gt.s32.totalorder %v7821_v18, 15  ;;  %vm3875_vm2 = vcmp.gt.s32.totalorder %v7821_v18, 16 }
0x24ca   :  { %6447 = vtanh.f32 %v3175_v37  ;;  %v3283_v62 = vpop.f32.mrb[38].mxu0  ;;  %v4902_v49 = vmul.f32 -1.442695, %v3175_v37 }
0x24cb   :  { %v3287_v9 = vadd.f32 %v3283_v62, %v253_v41  ;;  %v5667_v46 = vpop.f32.mrb[39].mxu0  ;;  %v3312_v62 = vsel %vm3210_vm0, 1, %v8473_v35 }
0x24cd   :  { %6449 = vtanh.f32 %v3287_v9  ;;  %v4904_v24 = vmul.f32 -1.442695, %v3287_v9  ;;  %v7831_v9 = vsel %vm2870_vm12, %v7753_v13, %v7750_v48 }
0x24ce   :  { %6451 = vpow2.f32 %v4902_v49  ;;  %v7840_v49 = vsel %vm3093_vm8, %v7763_v44, %v7759_v43 }
0x24cf   :  { %6453 = vpow2.f32 %v4904_v24 }
0x24d4   :  { %v6448_v39 = vpop.eup %6447 }
0x24d5   :  { %3187 = vrot.lane.b32.xlu1 %v6448_v39, %s6646_s12 }
0x24d7   :  { %v6450_v7 = vpop.eup %6449 }
0x24d8   :  { %3297 = vrot.lane.b32.xlu0 %v6450_v7, %s6646_s12  ;;  %v6452_v11 = vpop.eup %6451 }
0x24d9   :  { %v6454_v40 = vpop.eup %6453  ;;  %v3181_v42 = vadd.f32 1.0, %v6452_v11 }
0x24da   :  { %v3291_v12 = vadd.f32 1.0, %v6454_v40 }
0x24db   :  { %6455 = vrcp.f32 %v3181_v42 }
0x24dc   :  { %6457 = vrcp.f32 %v3291_v12 }
0x24e5   :  { %v6456_v26 = vpop.eup %6455 }
0x24e6   :  { %v6458_v37 = vpop.eup %6457  ;;  %v3185_v46 = vmul.f32 %v6456_v26, %v7831_v9 }
0x24e7   :  { %v3295_v24 = vmul.f32 %v6458_v37, %v7840_v49 }
0x2547   :  { %v3188_v31 = vpop.permute.xlu1 %3187 }
0x2548   :  { %v3190_v25 = vmul.f32 %v6456_v26, %v3188_v31 }
0x254a   :  { %v3298_v36 = vpop.permute.xlu0 %3297  ;;  %3192 = vrot.lane.b32.xlu1 %v3190_v25, %s6646_s12 }
0x254b   :  { %v3300_v41 = vmul.f32 %v6458_v37, %v3298_v36 }
0x254d   :  { %3302 = vrot.lane.b32.xlu0 %v3300_v41, %s6646_s12 }
0x254e   :  { %3314 = vperm.xlu1 %6245, %v3312_v62   ;;  %v7892_v62 = vld [vmem:[%s8462_s6] ss:$0 sm:$0xff]  ;;  %s6650_s6 = smov [#allocation5]  }
0x25bc   :  { %v3193_v39 = vpop.permute.xlu1 %3192 }
0x25bd   :  { %v7834_v7 = vadd.f32 %v3193_v39, %v3185_v46 }
0x25bf   :  { %6459 = vtanh.f32 %v7834_v7  ;;  %v3303_v11 = vpop.permute.xlu0 %3302 }
0x25c0   :  { %v7844_v40 = vadd.f32 %v3303_v11, %v3295_v24  ;;  %v258_v24 = vadd.f32 %v7812_v21, %v7012_v29 }
0x25c2   :  { %6461 = vtanh.f32 %v7844_v40 }
0x25c9   :  { %v6460_v48 = vpop.eup %6459 }
0x25ca   :  { %3198 = vrot.lane.b32.xlu0 %v6460_v48, %s6646_s12 }
0x25cc   :  { %v6462_v13 = vpop.eup %6461 }
0x25cd   :  { %3308 = vrot.lane.b32.xlu1 %v6462_v13, %s6646_s12  ;;  %v7849_v42 = vpop.permute.xlu1 %3314 }
0x25ce   :  { %vm3316_vm0 = vcmp.eq.s32.totalorder %v7849_v42, 1 }
0x263c   :  { %v3199_v12 = vpop.permute.xlu0 %3198 }
0x263d   :  { %v7851_v43 = vmul.f32 %v6456_v26, %v3199_v12 }
0x263f   :  { %v3309_v44 = vpop.permute.xlu1 %3308  ;;  %v7857_v31 = vsel %vm3093_vm8, %v7851_v43, %v7776_v6 }
0x2640   :  { %v3311_v25 = vmul.f32 %v6458_v37, %v3309_v44  ;;  %3324 = vrot.lane.b32.xlu1 %v7857_v31, %s6649_s17 }
0x2642   :  { %3320 = vrot.lane.b32.xlu0 %v3311_v25, %s6648_s5  ;;  %v7866_v26 = vsel %vm3316_vm0, %v3311_v25, %v7785_v27 }
0x2646   :  { %3436 = vrot.lane.b32.xlu0 %v7866_v26, %s6648_s5 }
0x26b2   :  { %v3325_v36 = vpop.permute.xlu1 %3324 }
0x26b4   :  { %v3321_v41 = vpop.permute.xlu0 %3320 }
0x26b5   :  { %v3327_v6 = vsel %vm322_vm4, %v3321_v41, %v3325_v36 }
0x26b6   :  { %5685 = vmatmul.mubr.msk.f32.vlgmr.msra.gmra.mrb[40].mxu0 %vm439_vm5, %v3327_v6 }
0x26b7   :  { %6143 = vmatpush3.bf16.msra.mxu0 %v6727_v8  ;;  %5725 = vmatprep.mubr.msk.f32.mxu0 %vm6644_vm1, %v8471_v16 }
0x26b8   :  { %v3437_v37 = vpop.permute.xlu0 %3436  ;;  %6144 = vmatprep.subr.bf16.mxu0 %v8468_v10 }
0x26b9   :  { %5696 = vmatmul.mubr.msk.f32.vlgmr.msra.gmra.mrb[34].mxu1 %vm322_vm4, %v3437_v37 }
0x26ba   :  { %6131 = vmatpush3.bf16.msra.mxu1 %v6802_v45  ;;  %5714 = vmatprep.mubr.msk.f32.mxu1 %vm6644_vm1, %v8471_v16 }
0x26bb   :  { %6132 = vmatprep.subr.bf16.mxu1 %v8468_v10  ;;  %6146 = vmatpush3.bf16.msra.mxu0 %v6751_v15 }
0x26bc   :  { %6147 = vmatprep.subr.bf16.mxu0 %v8468_v10 }
0x26be   :  { %6134 = vmatpush3.bf16.msra.mxu1 %v6808_v47 }
0x26bf   :  { %6135 = vmatprep.subr.bf16.mxu1 %v8468_v10 }
0x26c2   :  { %6137 = vmatpush3.bf16.msra.mxu1 %v6820_v50 }
0x26c3   :  { %6138 = vmatprep.subr.bf16.mxu1 %v8468_v10 }
0x26c6   :  { %6140 = vmatpush3.bf16.msra.mxu1 %v6832_v53 }
0x26c7   :  { %6159 = vmatprep.subr.bf16.mxu1 %v8468_v10 }
0x2789   :  { %v3397_v27 = vpop.f32.mrb[40].mxu0 }
0x278a   :  { %v3398_v46 = vadd.f32 %v7892_v62, %v3397_v27  ;;  %v5686_v39 = vpop.f32.mrb[41].mxu0 }
0x278c   :  { %6463 = vtanh.f32 %v3398_v46  ;;  %v3506_v11 = vpop.f32.mrb[34].mxu1  ;;  %v4906_v25 = vmul.f32 -1.442695, %v3398_v46  ;;  %v3535_v46 = vsel %vm3433_vm3, 1, %v8473_v35 }
0x278d   :  { %v3510_v48 = vadd.f32 %v3506_v11, %v258_v24  ;;  %v5697_v13 = vpop.f32.mrb[35].mxu1 }
0x278f   :  { %6465 = vtanh.f32 %v3510_v48  ;;  %v4908_v36 = vmul.f32 -1.442695, %v3510_v48  ;;  %v7907_v48 = vsel %vm3093_vm8, %v7834_v7, %v7831_v9 }
0x2790   :  { %6467 = vpow2.f32 %v4906_v25 }
0x2791   :  { %6469 = vpow2.f32 %v4908_v36 }
0x2796   :  { %v6464_v12 = vpop.eup %6463 }
0x2797   :  { %3410 = vrot.lane.b32.xlu1 %v6464_v12, %s6646_s12 }
0x2799   :  { %v6466_v44 = vpop.eup %6465 }
0x279a   :  { %3520 = vrot.lane.b32.xlu0 %v6466_v44, %s6646_s12  ;;  %v6468_v41 = vpop.eup %6467 }
0x279b   :  { %v6470_v6 = vpop.eup %6469  ;;  %v3404_v37 = vadd.f32 1.0, %v6468_v41  ;;  %v7916_v41 = vsel %vm3316_vm0, %v7844_v40, %v7840_v49 }
0x279c   :  { %v3514_v27 = vadd.f32 1.0, %v6470_v6 }
0x279d   :  { %6471 = vrcp.f32 %v3404_v37 }
0x279e   :  { %6473 = vrcp.f32 %v3514_v27 }
0x27a7   :  { %v6472_v29 = vpop.eup %6471 }
0x27a8   :  { %v6474_v11 = vpop.eup %6473  ;;  %v3408_v44 = vmul.f32 %v6472_v29, %v7907_v48 }
0x27a9   :  { %v3518_v6 = vmul.f32 %v6474_v11, %v7916_v41 }
0x2809   :  { %v3411_v39 = vpop.permute.xlu1 %3410 }
0x280a   :  { %v3413_v24 = vmul.f32 %v6472_v29, %v3411_v39 }
0x280c   :  { %3415 = vrot.lane.b32.xlu1 %v3413_v24, %s6646_s12  ;;  %v3521_v13 = vpop.permute.xlu0 %3520 }
0x280d   :  { %v3523_v12 = vmul.f32 %v6474_v11, %v3521_v13 }
0x280f   :  { %3525 = vrot.lane.b32.xlu0 %v3523_v12, %s6646_s12 }
0x2810   :  { %3537 = vperm.xlu1 %6245, %v3535_v46  }
0x287e   :  { %v3416_v25 = vpop.permute.xlu1 %3415 }
0x287f   :  { %v7910_v36 = vadd.f32 %v3416_v25, %v3408_v44 }
0x2881   :  { %6475 = vtanh.f32 %v7910_v36  ;;  %v3526_v37 = vpop.permute.xlu0 %3525 }
0x2882   :  { %v7920_v27 = vadd.f32 %v3526_v37, %v3518_v6  ;;  %v263_v37 = vadd.f32 %v7812_v21, %v7010_v28 }
0x2884   :  { %6477 = vtanh.f32 %v7920_v27 }
0x288b   :  { %v6476_v9 = vpop.eup %6475 }
0x288c   :  { %3421 = vrot.lane.b32.xlu0 %v6476_v9, %s6646_s12 }
0x288e   :  { %v6478_v7 = vpop.eup %6477 }
0x288f   :  { %3531 = vrot.lane.b32.xlu1 %v6478_v7, %s6646_s12  ;;  %v7925_v39 = vpop.permute.xlu1 %3537 }
0x2890   :  { %vm8475_vm3 = vcmp.eq.s32.totalorder %v7925_v39, 1  ;;  %vm8484_vm6 = vcmp.eq.s32.totalorder %v7925_v39, 1  ;;  %v8486_v39 = vld [vmem:[#allocation10_spill] sm:$0xff] }
0x28fe   :  { %v3422_v24 = vpop.permute.xlu0 %3421 }
0x28ff   :  { %v7927_v49 = vmul.f32 %v6472_v29, %v3422_v24 }
0x2901   :  { %v3532_v40 = vpop.permute.xlu1 %3531  ;;  %v7933_v13 = vsel %vm3316_vm0, %v7927_v49, %v7857_v31 }
0x2902   :  { %v3534_v12 = vmul.f32 %v6474_v11, %v3532_v40  ;;  %3547 = vrot.lane.b32.xlu1 %v7933_v13, %s6649_s17 }
0x2904   :  { %3543 = vrot.lane.b32.xlu0 %v3534_v12, %s6648_s5  ;;  %v7942_v29 = vsel %vm8475_vm3, %v3534_v12, %v7866_v26 }
0x2908   :  { %3655 = vrot.lane.b32.xlu0 %v7942_v29, %s6648_s5 }
0x2974   :  { %v3548_v46 = vpop.permute.xlu1 %3547 }
0x2976   :  { %v3544_v44 = vpop.permute.xlu0 %3543 }
0x2977   :  { %v3550_v31 = vsel %vm322_vm4, %v3544_v44, %v3548_v46 }
0x2978   :  { %5715 = vmatmul.mubr.msk.f32.vlgmr.msra.gmra.mrb[36].mxu1 %vm439_vm5, %v3550_v31 }
0x2979   :  { %6161 = vmatpush3.bf16.msra.mxu1 %v6727_v8  ;;  %5755 = vmatprep.mubr.msk.f32.mxu1 %vm6644_vm1, %v8471_v16 }
0x297a   :  { %v3656_v11 = vpop.permute.xlu0 %3655  ;;  %6162 = vmatprep.subr.bf16.mxu1 %v8468_v10 }
0x297b   :  { %5726 = vmatmul.mubr.msk.f32.vlgmr.msra.gmra.mrb[42].mxu0 %vm322_vm4, %v3656_v11 }
0x297c   :  { %6149 = vmatpush3.bf16.msra.mxu0 %v6802_v45  ;;  %5744 = vmatprep.mubr.msk.f32.mxu0 %vm6644_vm1, %v8471_v16 }
0x297d   :  { %6150 = vmatprep.subr.bf16.mxu0 %v8468_v10  ;;  %6164 = vmatpush3.bf16.msra.mxu1 %v6751_v15 }
0x297e   :  { %6165 = vmatprep.subr.bf16.mxu1 %v8468_v10 }
0x2980   :  { %6152 = vmatpush3.bf16.msra.mxu0 %v6808_v47 }
0x2981   :  { %6153 = vmatprep.subr.bf16.mxu0 %v8468_v10 }
0x2984   :  { %6155 = vmatpush3.bf16.msra.mxu0 %v6820_v50 }
0x2985   :  { %6156 = vmatprep.subr.bf16.mxu0 %v8468_v10 }
0x2988   :  { %6158 = vmatpush3.bf16.msra.mxu0 %v6832_v53 }
0x2989   :  { %6177 = vmatprep.subr.bf16.mxu0 %v8468_v10 }
0x2a4b   :  { %v3620_v26 = vpop.f32.mrb[36].mxu1 }
0x2a4c   :  { %v3621_v25 = vadd.f32 %v7892_v62, %v3620_v26  ;;  %v5716_v6 = vpop.f32.mrb[37].mxu1 }
0x2a4e   :  { %6479 = vtanh.f32 %v3621_v25  ;;  %v3725_v9 = vpop.f32.mrb[42].mxu0  ;;  %v4910_v46 = vmul.f32 -1.442695, %v3621_v25  ;;  %v3754_v25 = vsel %vm3652_vm9, 1, %v8473_v35 }
0x2a4f   :  { %v3729_v7 = vadd.f32 %v3725_v9, %v263_v37  ;;  %v5727_v24 = vpop.f32.mrb[43].mxu0 }
0x2a51   :  { %6481 = vtanh.f32 %v3729_v7  ;;  %v4912_v44 = vmul.f32 -1.442695, %v3729_v7  ;;  %v7978_v7 = vsel %vm3316_vm0, %v7910_v36, %v7907_v48 }
0x2a52   :  { %6483 = vpow2.f32 %v4910_v46 }
0x2a53   :  { %6485 = vpow2.f32 %v4912_v44 }
0x2a58   :  { %v6480_v40 = vpop.eup %6479 }
0x2a59   :  { %3633 = vrot.lane.b32.xlu1 %v6480_v40, %s6646_s12 }
0x2a5b   :  { %v6482_v12 = vpop.eup %6481 }
0x2a5c   :  { %3739 = vrot.lane.b32.xlu0 %v6482_v12, %s6646_s12  ;;  %v6484_v31 = vpop.eup %6483 }
0x2a5d   :  { %v6486_v11 = vpop.eup %6485  ;;  %v3627_v26 = vadd.f32 1.0, %v6484_v31 }
0x2a5e   :  { %v3733_v6 = vadd.f32 1.0, %v6486_v11  ;;  %v7987_v11 = vsel %vm8475_vm3, %v7920_v27, %v7916_v41 }
0x2a5f   :  { %6487 = vrcp.f32 %v3627_v26 }
0x2a60   :  { %6489 = vrcp.f32 %v3733_v6 }
0x2a69   :  { %v6488_v28 = vpop.eup %6487 }
0x2a6a   :  { %v6490_v24 = vpop.eup %6489  ;;  %v3631_v46 = vmul.f32 %v6488_v28, %v7978_v7 }
0x2a6b   :  { %v3737_v26 = vmul.f32 %v6490_v24, %v7987_v11 }
0x2acb   :  { %v3634_v37 = vpop.permute.xlu1 %3633 }
0x2acc   :  { %v3636_v9 = vmul.f32 %v6488_v28, %v3634_v37 }
0x2ace   :  { %v3740_v40 = vpop.permute.xlu0 %3739  ;;  %3638 = vrot.lane.b32.xlu1 %v3636_v9, %s6646_s12 }
0x2acf   :  { %v3742_v12 = vmul.f32 %v6490_v24, %v3740_v40 }
0x2ad1   :  { %3744 = vrot.lane.b32.xlu0 %v3742_v12, %s6646_s12 }
0x2ad2   :  { %3756 = vperm.xlu1 %6245, %v3754_v25  }
0x2b40   :  { %v3639_v44 = vpop.permute.xlu1 %3638 }
0x2b41   :  { %v7981_v31 = vadd.f32 %v3639_v44, %v3631_v46 }
0x2b43   :  { %6491 = vtanh.f32 %v7981_v31  ;;  %v3745_v6 = vpop.permute.xlu0 %3744 }
0x2b44   :  { %v7991_v37 = vadd.f32 %v3745_v6, %v3737_v26 }
0x2b46   :  { %6493 = vtanh.f32 %v7991_v37 }
0x2b4d   :  { %v6492_v48 = vpop.eup %6491 }
0x2b4e   :  { %3644 = vrot.lane.b32.xlu0 %v6492_v48, %s6646_s12  ;;  %v268_v48 = vadd.f32 %v7812_v21, %v6766_v19 }
0x2b50   :  { %v6494_v36 = vpop.eup %6493 }
0x2b51   :  { %3750 = vrot.lane.b32.xlu1 %v6494_v36, %s6646_s12  ;;  %v7996_v9 = vpop.permute.xlu1 %3756 }
0x2b52   :  { %vm8477_vm9 = vcmp.eq.s32.totalorder %v7996_v9, 1 }
0x2bc0   :  { %v3645_v40 = vpop.permute.xlu0 %3644 }
0x2bc1   :  { %v7998_v41 = vmul.f32 %v6488_v28, %v3645_v40 }
0x2bc3   :  { %v3751_v27 = vpop.permute.xlu1 %3750  ;;  %v8004_v12 = vsel %vm8475_vm3, %v7998_v41, %v7933_v13 }
0x2bc4   :  { %v3753_v25 = vmul.f32 %v6490_v24, %v3751_v27  ;;  %3766 = vrot.lane.b32.xlu1 %v8004_v12, %s6649_s17 }
0x2bc6   :  { %3762 = vrot.lane.b32.xlu0 %v3753_v25, %s6648_s5  ;;  %v8013_v28 = vsel %vm8477_vm9, %v3753_v25, %v7942_v29 }
0x2bca   :  { %3878 = vrot.lane.b32.xlu0 %v8013_v28, %s6648_s5 }
0x2c36   :  { %v3767_v46 = vpop.permute.xlu1 %3766 }
0x2c38   :  { %v3763_v44 = vpop.permute.xlu0 %3762 }
0x2c39   :  { %v3769_v13 = vsel %vm322_vm4, %v3763_v44, %v3767_v46 }
0x2c3a   :  { %5745 = vmatmul.mubr.msk.f32.vlgmr.msra.gmra.mrb[44].mxu0 %vm439_vm5, %v3769_v13 }
0x2c3b   :  { %6179 = vmatpush3.bf16.msra.mxu0 %v6727_v8  ;;  %5785 = vmatprep.mubr.msk.f32.mxu0 %vm6644_vm1, %v8471_v16 }
0x2c3c   :  { %v3879_v24 = vpop.permute.xlu0 %3878  ;;  %6180 = vmatprep.subr.bf16.mxu0 %v8468_v10 }
0x2c3d   :  { %5756 = vmatmul.mubr.msk.f32.vlgmr.msra.gmra.mrb[38].mxu1 %vm322_vm4, %v3879_v24 }
0x2c3e   :  { %6167 = vmatpush3.bf16.msra.mxu1 %v6802_v45  ;;  %5774 = vmatprep.mubr.msk.f32.mxu1 %vm6644_vm1, %v8471_v16 }
0x2c3f   :  { %6168 = vmatprep.subr.bf16.mxu1 %v8468_v10  ;;  %6182 = vmatpush3.bf16.msra.mxu0 %v6751_v15 }
0x2c40   :  { %6183 = vmatprep.subr.bf16.mxu0 %v8468_v10 }
0x2c42   :  { %6170 = vmatpush3.bf16.msra.mxu1 %v6808_v47 }
0x2c43   :  { %6171 = vmatprep.subr.bf16.mxu1 %v8468_v10 }
0x2c46   :  { %6173 = vmatpush3.bf16.msra.mxu1 %v6820_v50 }
0x2c47   :  { %6174 = vmatprep.subr.bf16.mxu1 %v8468_v10 }
0x2c4a   :  { %6176 = vmatpush3.bf16.msra.mxu1 %v6832_v53 }
0x2c4b   :  { %6195 = vmatprep.subr.bf16.mxu1 %v8468_v10 }
0x2d0d   :  { %v3839_v29 = vpop.f32.mrb[44].mxu0 }
0x2d0e   :  { %v3840_v26 = vadd.f32 %v7892_v62, %v3839_v29  ;;  %v5746_v6 = vpop.f32.mrb[45].mxu0 }
0x2d10   :  { %6495 = vtanh.f32 %v3840_v26  ;;  %v3948_v36 = vpop.f32.mrb[38].mxu1  ;;  %v4914_v44 = vmul.f32 -1.442695, %v3840_v26  ;;  %v3977_v26 = vsel %vm3875_vm2, 1, %v8473_v35 }
0x2d11   :  { %v3952_v40 = vadd.f32 %v3948_v36, %v268_v48  ;;  %v5757_v27 = vpop.f32.mrb[39].mxu1 }
0x2d13   :  { %6497 = vtanh.f32 %v3952_v40  ;;  %v4916_v13 = vmul.f32 -1.442695, %v3952_v40 }
0x2d14   :  { %6499 = vpow2.f32 %v4914_v44 }
0x2d15   :  { %6501 = vpow2.f32 %v4916_v13 }
0x2d1a   :  { %v6496_v25 = vpop.eup %6495 }
0x2d1b   :  { %3852 = vrot.lane.b32.xlu1 %v6496_v25, %s6646_s12 }
0x2d1d   :  { %v6498_v46 = vpop.eup %6497 }
0x2d1e   :  { %3962 = vrot.lane.b32.xlu0 %v6498_v46, %s6646_s12  ;;  %v6500_v24 = vpop.eup %6499 }
0x2d1f   :  { %v6502_v29 = vpop.eup %6501  ;;  %v3846_v6 = vadd.f32 1.0, %v6500_v24  ;;  %v8058_v24 = vsel %vm8477_vm9, %v7991_v37, %v7987_v11 }
0x2d20   :  { %v3956_v10 = vadd.f32 1.0, %v6502_v29 }
0x2d21   :  { %6503 = vrcp.f32 %v3846_v6 }
0x2d22   :  { %6505 = vrcp.f32 %v3956_v10  ;;  %v8049_v10 = vsel %vm8475_vm3, %v7981_v31, %v7978_v7  ;;  %vm4098_vm3 = vcmp.gt.s32.totalorder %v7821_v18, 17 }
0x2d2b   :  { %v6504_v19 = vpop.eup %6503 }
0x2d2c   :  { %v6506_v27 = vpop.eup %6505  ;;  %v3850_v40 = vmul.f32 %v6504_v19, %v8049_v10 }
0x2d2d   :  { %v3960_v29 = vmul.f32 %v6506_v27, %v8058_v24 }
0x2d8d   :  { %v3853_v48 = vpop.permute.xlu1 %3852 }
0x2d8e   :  { %v3855_v36 = vmul.f32 %v6504_v19, %v3853_v48 }
0x2d90   :  { %3857 = vrot.lane.b32.xlu1 %v3855_v36, %s6646_s12  ;;  %v3963_v25 = vpop.permute.xlu0 %3962 }
0x2d91   :  { %v3965_v46 = vmul.f32 %v6506_v27, %v3963_v25 }
0x2d93   :  { %3967 = vrot.lane.b32.xlu0 %v3965_v46, %s6646_s12 }
0x2d94   :  { %3979 = vperm.xlu1 %6245, %v3977_v26  }
0x2e02   :  { %v3858_v44 = vpop.permute.xlu1 %3857 }
0x2e03   :  { %v8052_v13 = vadd.f32 %v3858_v44, %v3850_v40 }
0x2e05   :  { %6507 = vtanh.f32 %v8052_v13  ;;  %v3968_v6 = vpop.permute.xlu0 %3967 }
0x2e06   :  { %v8062_v48 = vadd.f32 %v3968_v6, %v3960_v29  ;;  %v8479_v29 = vmov 0.0|0.0  }
0x2e08   :  { %6509 = vtanh.f32 %v8062_v48 }
0x2e0f   :  { %v6508_v7 = vpop.eup %6507 }
0x2e10   :  { %3863 = vrot.lane.b32.xlu0 %v6508_v7, %s6646_s12 }
0x2e12   :  { %v6510_v31 = vpop.eup %6509 }
0x2e13   :  { %3973 = vrot.lane.b32.xlu1 %v6510_v31, %s6646_s12  ;;  %v8067_v36 = vpop.permute.xlu1 %3979  ;;  %v273_v31 = vadd.f32 %v7812_v21, %v6762_v17 }
0x2e14   :  { %vm3981_vm2 = vcmp.eq.s32.totalorder %v8067_v36, 1 }
0x2e82   :  { %v3864_v25 = vpop.permute.xlu0 %3863 }
0x2e83   :  { %v8069_v11 = vmul.f32 %v6504_v19, %v3864_v25 }
0x2e85   :  { %v3974_v37 = vpop.permute.xlu1 %3973  ;;  %v8075_v46 = vsel %vm8477_vm9, %v8069_v11, %v8004_v12 }
0x2e86   :  { %v3976_v26 = vmul.f32 %v6506_v27, %v3974_v37  ;;  %3989 = vrot.lane.b32.xlu1 %v8075_v46, %s6649_s17 }
0x2e88   :  { %3985 = vrot.lane.b32.xlu0 %v3976_v26, %s6648_s5  ;;  %v8084_v19 = vsel %vm3981_vm2, %v3976_v26, %v8013_v28 }
0x2e8c   :  { %4101 = vrot.lane.b32.xlu0 %v8084_v19, %s6648_s5 }
0x2ef8   :  { %v3990_v40 = vpop.permute.xlu1 %3989 }
0x2efa   :  { %v3986_v44 = vpop.permute.xlu0 %3985 }
0x2efb   :  { %v3992_v12 = vsel %vm322_vm4, %v3986_v44, %v3990_v40 }
0x2efc   :  { %5775 = vmatmul.mubr.msk.f32.vlgmr.msra.gmra.mrb[40].mxu1 %vm439_vm5, %v3992_v12 }
0x2efd   :  { %6197 = vmatpush3.bf16.msra.mxu1 %v6727_v8  ;;  %5815 = vmatprep.mubr.msk.f32.mxu1 %vm6644_vm1, %v8471_v16 }
0x2efe   :  { %v4102_v27 = vpop.permute.xlu0 %4101  ;;  %6198 = vmatprep.subr.bf16.mxu1 %v8479_v29 }
0x2eff   :  { %5786 = vmatmul.mubr.msk.f32.vlgmr.msra.gmra.mrb[46].mxu0 %vm322_vm4, %v4102_v27 }
0x2f00   :  { %6185 = vmatpush3.bf16.msra.mxu0 %v6802_v45  ;;  %5804 = vmatprep.mubr.msk.f32.mxu0 %vm6644_vm1, %v8471_v16 }
0x2f01   :  { %6186 = vmatprep.subr.bf16.mxu0 %v8479_v29  ;;  %6200 = vmatpush3.bf16.msra.mxu1 %v6751_v15 }
0x2f02   :  { %6201 = vmatprep.subr.bf16.mxu1 %v8479_v29 }
0x2f04   :  { %6188 = vmatpush3.bf16.msra.mxu0 %v6808_v47 }
0x2f05   :  { %6189 = vmatprep.subr.bf16.mxu0 %v8479_v29 }
0x2f08   :  { %6191 = vmatpush3.bf16.msra.mxu0 %v6820_v50 }
0x2f09   :  { %6192 = vmatprep.subr.bf16.mxu0 %v8479_v29 }
0x2f0c   :  { %6194 = vmatpush3.bf16.msra.mxu0 %v6832_v53 }
0x2f0d   :  { %6213 = vmatprep.subr.bf16.mxu0 %v8479_v29 }
0x2fcf   :  { %v4062_v28 = vpop.f32.mrb[40].mxu1 }
0x2fd0   :  { %v4063_v6 = vadd.f32 %v7892_v62, %v4062_v28  ;;  %v5776_v7 = vpop.f32.mrb[41].mxu1 }
0x2fd2   :  { %6511 = vtanh.f32 %v4063_v6  ;;  %v4171_v25 = vpop.f32.mrb[46].mxu0  ;;  %v4918_v12 = vmul.f32 -1.442695, %v4063_v6  ;;  %v8480_v6 = vmov 0  }
0x2fd3   :  { %v4175_v37 = vadd.f32 %v4171_v25, %v273_v31  ;;  %v5787_v26 = vpop.f32.mrb[47].mxu0 }
0x2fd5   :  { %6513 = vtanh.f32 %v4175_v37  ;;  %v4920_v27 = vmul.f32 -1.442695, %v4175_v37  ;;  %v4200_v37 = vsel %vm4098_vm3, 1, %v8480_v6 }
0x2fd6   :  { %6515 = vpow2.f32 %v4918_v12 }
0x2fd7   :  { %6517 = vpow2.f32 %v4920_v27 }
0x2fdc   :  { %v6512_v40 = vpop.eup %6511 }
0x2fdd   :  { %4075 = vrot.lane.b32.xlu1 %v6512_v40, %s6646_s12 }
0x2fdf   :  { %v6514_v44 = vpop.eup %6513 }
0x2fe0   :  { %4185 = vrot.lane.b32.xlu0 %v6514_v44, %s6646_s12  ;;  %v6516_v28 = vpop.eup %6515 }
0x2fe1   :  { %v6518_v7 = vpop.eup %6517  ;;  %v4069_v16 = vadd.f32 1.0, %v6516_v28  ;;  %v8129_v28 = vsel %vm3981_vm2, %v8062_v48, %v8058_v24 }
0x2fe2   :  { %v4179_v35 = vadd.f32 1.0, %v6518_v7 }
0x2fe3   :  { %6519 = vrcp.f32 %v4069_v16  ;;  %v8120_v16 = vsel %vm8477_vm9, %v8052_v13, %v8049_v10  ;;  %vm4321_vm9 = vcmp.gt.s32.totalorder %v7821_v18, 18 }
0x2fe4   :  { %6521 = vrcp.f32 %v4179_v35 }
0x2fed   :  { %v6520_v17 = vpop.eup %6519 }
0x2fee   :  { %v6522_v26 = vpop.eup %6521  ;;  %v4073_v35 = vmul.f32 %v6520_v17, %v8120_v16 }
0x2fef   :  { %v4183_v7 = vmul.f32 %v6522_v26, %v8129_v28 }
0x304f   :  { %v4076_v31 = vpop.permute.xlu1 %4075 }
0x3050   :  { %v4078_v25 = vmul.f32 %v6520_v17, %v4076_v31 }
0x3052   :  { %v4186_v40 = vpop.permute.xlu0 %4185  ;;  %4080 = vrot.lane.b32.xlu1 %v4078_v25, %s6646_s12 }
0x3053   :  { %v4188_v44 = vmul.f32 %v6522_v26, %v4186_v40 }
0x3055   :  { %4190 = vrot.lane.b32.xlu0 %v4188_v44, %s6646_s12 }
0x3056   :  { %4202 = vperm.xlu1 %6245, %v4200_v37  }
0x30c4   :  { %v4081_v12 = vpop.permute.xlu1 %4080 }
0x30c5   :  { %v8123_v27 = vadd.f32 %v4081_v12, %v4073_v35 }
0x30c7   :  { %6523 = vtanh.f32 %v8123_v27  ;;  %v4191_v31 = vpop.permute.xlu0 %4190 }
0x30c8   :  { %v8133_v25 = vadd.f32 %v4191_v31, %v4183_v7 }
0x30ca   :  { %6525 = vtanh.f32 %v8133_v25 }
0x30d1   :  { %v6524_v10 = vpop.eup %6523 }
0x30d2   :  { %4086 = vrot.lane.b32.xlu0 %v6524_v10, %s6646_s12 }
0x30d4   :  { %v6526_v13 = vpop.eup %6525 }
0x30d5   :  { %4196 = vrot.lane.b32.xlu1 %v6526_v13, %s6646_s12  ;;  %v8138_v40 = vpop.permute.xlu1 %4202  ;;  %v278_v13 = vadd.f32 %v7812_v21, %v6775_v23 }
0x30d6   :  { %vm4204_vm3 = vcmp.eq.s32.totalorder %v8138_v40, 1 }
0x3144   :  { %v4087_v44 = vpop.permute.xlu0 %4086 }
0x3145   :  { %v8140_v24 = vmul.f32 %v6520_v17, %v4087_v44 }
0x3147   :  { %v4197_v48 = vpop.permute.xlu1 %4196  ;;  %v8146_v37 = vsel %vm3981_vm2, %v8140_v24, %v8075_v46 }
0x3148   :  { %v4199_v35 = vmul.f32 %v6522_v26, %v4197_v48  ;;  %4212 = vrot.lane.b32.xlu1 %v8146_v37, %s6649_s17  ;;  %v8481_v26 = vmov 0.0  }
0x314a   :  { %4208 = vrot.lane.b32.xlu0 %v4199_v35, %s6648_s5  ;;  %v8155_v17 = vsel %vm4204_vm3, %v4199_v35, %v8084_v19 }
0x314e   :  { %4324 = vrot.lane.b32.xlu0 %v8155_v17, %s6648_s5 }
0x31ba   :  { %v4213_v12 = vpop.permute.xlu1 %4212 }
0x31bc   :  { %v4209_v7 = vpop.permute.xlu0 %4208 }
0x31bd   :  { %v4215_v46 = vsel %vm322_vm4, %v4209_v7, %v4213_v12 }
0x31be   :  { %5805 = vmatmul.mubr.msk.f32.vlgmr.msra.gmra.mrb[48].mxu0 %vm439_vm5, %v4215_v46 }
0x31bf   :  { %6215 = vmatpush3.bf16.msra.mxu0 %v6727_v8  ;;  %5845 = vmatprep.mubr.msk.f32.mxu0 %vm6644_vm1, %v8481_v26 }
0x31c0   :  { %v4325_v31 = vpop.permute.xlu0 %4324  ;;  %6216 = vmatprep.subr.bf16.mxu0 %v8479_v29 }
0x31c1   :  { %5816 = vmatmul.mubr.msk.f32.vlgmr.msra.gmra.mrb[42].mxu1 %vm322_vm4, %v4325_v31 }
0x31c2   :  { %6203 = vmatpush3.bf16.msra.mxu1 %v6802_v45  ;;  %5834 = vmatprep.mubr.msk.f32.mxu1 %vm6644_vm1, %v8481_v26 }
0x31c3   :  { %6204 = vmatprep.subr.bf16.mxu1 %v8479_v29  ;;  %6218 = vmatpush3.bf16.msra.mxu0 %v6751_v15 }
0x31c4   :  { %6219 = vmatprep.subr.bf16.mxu0 %v8479_v29 }
0x31c6   :  { %6206 = vmatpush3.bf16.msra.mxu1 %v6808_v47 }
0x31c7   :  { %6207 = vmatprep.subr.bf16.mxu1 %v8479_v29 }
0x31ca   :  { %6209 = vmatpush3.bf16.msra.mxu1 %v6820_v50 }
0x31cb   :  { %6210 = vmatprep.subr.bf16.mxu1 %v8479_v29 }
0x31ce   :  { %6212 = vmatpush3.bf16.msra.mxu1 %v6832_v53 }
0x3291   :  { %v4285_v8 = vpop.f32.mrb[48].mxu0 }
0x3292   :  { %v4286_v19 = vadd.f32 %v7892_v62, %v4285_v8  ;;  %v5806_v10 = vpop.f32.mrb[49].mxu0 }
0x3294   :  { %6527 = vtanh.f32 %v4286_v19  ;;  %v4394_v15 = vpop.f32.mrb[42].mxu1  ;;  %v4922_v7 = vmul.f32 -1.442695, %v4286_v19  ;;  %v4423_v19 = vsel %vm4321_vm9, 1, %v8480_v6 }
0x3295   :  { %v4398_v44 = vadd.f32 %v4394_v15, %v278_v13  ;;  %v5817_v48 = vpop.f32.mrb[43].mxu1 }
0x3297   :  { %6529 = vtanh.f32 %v4398_v44  ;;  %v4924_v46 = vmul.f32 -1.442695, %v4398_v44 }
0x3298   :  { %6531 = vpow2.f32 %v4922_v7 }
0x3299   :  { %6533 = vpow2.f32 %v4924_v46 }
0x329e   :  { %v6528_v35 = vpop.eup %6527 }
0x329f   :  { %4298 = vrot.lane.b32.xlu1 %v6528_v35, %s6646_s12 }
0x32a1   :  { %v6530_v12 = vpop.eup %6529 }
0x32a2   :  { %4408 = vrot.lane.b32.xlu0 %v6530_v12, %s6646_s12  ;;  %v6532_v31 = vpop.eup %6531 }
0x32a3   :  { %v6534_v8 = vpop.eup %6533  ;;  %v4292_v10 = vadd.f32 1.0, %v6532_v31  ;;  %v8199_v31 = vsel %vm4204_vm3, %v8133_v25, %v8129_v28 }
0x32a4   :  { %v4402_v38 = vadd.f32 1.0, %v6534_v8 }
0x32a5   :  { %6535 = vrcp.f32 %v4292_v10 }
0x32a6   :  { %6537 = vrcp.f32 %v4402_v38  ;;  %v8190_v38 = vsel %vm3981_vm2, %v8123_v27, %v8120_v16 }
0x32af   :  { %v6536_v23 = vpop.eup %6535 }
0x32b0   :  { %v6538_v48 = vpop.eup %6537  ;;  %v4296_v44 = vmul.f32 %v6536_v23, %v8190_v38 }
0x32b1   :  { %v4406_v8 = vmul.f32 %v6538_v48, %v8199_v31 }
0x3311   :  { %v4299_v13 = vpop.permute.xlu1 %4298 }
0x3312   :  { %v4301_v15 = vmul.f32 %v6536_v23, %v4299_v13 }
0x3314   :  { %4303 = vrot.lane.b32.xlu1 %v4301_v15, %s6646_s12  ;;  %v4409_v35 = vpop.permute.xlu0 %4408 }
0x3315   :  { %v4411_v12 = vmul.f32 %v6538_v48, %v4409_v35 }
0x3317   :  { %4413 = vrot.lane.b32.xlu0 %v4411_v12, %s6646_s12 }
0x3318   :  { %4425 = vperm.xlu1 %6245, %v4423_v19  }
0x3386   :  { %v4304_v7 = vpop.permute.xlu1 %4303 }
0x3387   :  { %v8193_v46 = vadd.f32 %v4304_v7, %v4296_v44 }
0x3389   :  { %6539 = vtanh.f32 %v8193_v46  ;;  %v4414_v10 = vpop.permute.xlu0 %4413 }
0x338a   :  { %v8203_v13 = vadd.f32 %v4414_v10, %v4406_v8 }
0x338c   :  { %6541 = vtanh.f32 %v8203_v13 }
0x3393   :  { %v6540_v16 = vpop.eup %6539 }
0x3394   :  { %4309 = vrot.lane.b32.xlu0 %v6540_v16, %s6646_s12 }
0x3396   :  { %v6542_v27 = vpop.eup %6541 }
0x3397   :  { %4419 = vrot.lane.b32.xlu1 %v6542_v27, %s6646_s12  ;;  %v8208_v15 = vpop.permute.xlu1 %4425 }
0x3398   :  { %vm4427_vm9 = vcmp.eq.s32.totalorder %v8208_v15, 1 }
0x3406   :  { %v4310_v35 = vpop.permute.xlu0 %4309 }
0x3407   :  { %v8210_v28 = vmul.f32 %v6536_v23, %v4310_v35 }
0x3409   :  { %v4420_v25 = vpop.permute.xlu1 %4419  ;;  %v8216_v12 = vsel %vm4204_vm3, %v8210_v28, %v8146_v37 }
0x340a   :  { %v4422_v19 = vmul.f32 %v6538_v48, %v4420_v25  ;;  %4435 = vrot.lane.b32.xlu1 %v8216_v12, %s6649_s17 }
0x340c   :  { %4431 = vrot.lane.b32.xlu0 %v4422_v19, %s6648_s5  ;;  %v8225_v23 = vsel %vm4427_vm9, %v4422_v19, %v8155_v17 }
0x3410   :  { %4543 = vrot.lane.b32.xlu0 %v8225_v23, %s6648_s5 }
0x347c   :  { %v4436_v44 = vpop.permute.xlu1 %4435 }
0x347e   :  { %v4432_v7 = vpop.permute.xlu0 %4431 }
0x347f   :  { %v4438_v37 = vsel %vm322_vm4, %v4432_v7, %v4436_v44 }
0x3480   :  { %5835 = vmatmul.mubr.msk.f32.vlgmr.msra.gmra.mrb[44].mxu1 %vm439_vm5, %v4438_v37 }
0x3482   :  { %v4544_v48 = vpop.permute.xlu0 %4543 }
0x3483   :  { %5846 = vmatmul.mubr.msk.f32.vlgmr.msra.gmra.mrb[50].mxu0 %vm322_vm4, %v4544_v48 }
0x3484   :  { %6221 = vmatpush3.bf16.msra.mxu0 %v6802_v45  ;;  %5864 = vmatprep.mubr.msk.f32.mxu0 %vm6644_vm1, %v8481_v26  ;;  %v283_v45 = vadd.f32 %v7812_v21, %v6773_v22  ;;  %vm4540_vm1 = vcmp.gt.s32.totalorder %v7821_v18, 19  ;;  %v1651_v18 = vsel %vm1540_vm15, %v7339_v59, 0.0  ;;  %vm8483_vm15 = vcmp.eq.s32.totalorder %v7337_v56, 1 }
0x3485   :  { %6222 = vmatprep.subr.bf16.mxu0 %v8479_v29  ;;  %v1874_v4 = vsel %vm8483_vm15, %v7415_v57, 0.0  ;;  %v3650_v56 = vsel %vm8484_vm6, %v7998_v41, 0.0 }
0x3488   :  { %6224 = vmatpush3.bf16.msra.mxu0 %v6808_v47 }
0x3489   :  { %6225 = vmatprep.subr.bf16.mxu0 %v8479_v29 }
0x348c   :  { %6227 = vmatpush3.bf16.msra.mxu0 %v6820_v50 }
0x348d   :  { %6228 = vmatprep.subr.bf16.mxu0 %v8479_v29 }
0x3490   :  { %6230 = vmatpush3.bf16.msra.mxu0 %v6832_v53 }
0x3553   :  { %v4508_v17 = vpop.f32.mrb[44].mxu1 }
0x3554   :  { %v4509_v8 = vadd.f32 %v7892_v62, %v4508_v17  ;;  %v5836_v10 = vpop.f32.mrb[45].mxu1 }
0x3556   :  { %6543 = vtanh.f32 %v4509_v8  ;;  %v4613_v26 = vpop.f32.mrb[50].mxu0  ;;  %v4926_v29 = vmul.f32 -1.442695, %v4509_v8  ;;  %v8252_v8 = vsel %vm4204_vm3, %v8193_v46, %v8190_v38 }
0x3557   :  { %v4617_v16 = vadd.f32 %v4613_v26, %v283_v45  ;;  %v5847_v27 = vpop.f32.mrb[51].mxu0 }
0x3559   :  { %6545 = vtanh.f32 %v4617_v16  ;;  %v4928_v53 = vmul.f32 -1.442695, %v4617_v16  ;;  %v8261_v16 = vsel %vm4427_vm9, %v8203_v13, %v8199_v31 }
0x355a   :  { %6547 = vpow2.f32 %v4926_v29 }
0x355b   :  { %6549 = vpow2.f32 %v4928_v53 }
0x3560   :  { %v6544_v47 = vpop.eup %6543 }
0x3561   :  { %4521 = vrot.lane.b32.xlu1 %v6544_v47, %s6646_s12 }
0x3563   :  { %v6546_v50 = vpop.eup %6545 }
0x3564   :  { %4627 = vrot.lane.b32.xlu0 %v6546_v50, %s6646_s12  ;;  %v6548_v35 = vpop.eup %6547 }
0x3565   :  { %v6550_v25 = vpop.eup %6549  ;;  %v4515_v19 = vadd.f32 1.0, %v6548_v35 }
0x3566   :  { %v4621_v44 = vadd.f32 1.0, %v6550_v25 }
0x3567   :  { %6551 = vrcp.f32 %v4515_v19 }
0x3568   :  { %6553 = vrcp.f32 %v4621_v44 }
0x3571   :  { %v6552_v22 = vpop.eup %6551 }
0x3572   :  { %v6554_v37 = vpop.eup %6553  ;;  %v4519_v10 = vmul.f32 %v6552_v22, %v8252_v8 }
0x3573   :  { %v4625_v27 = vmul.f32 %v6554_v37, %v8261_v16 }
0x35d3   :  { %v4522_v21 = vpop.permute.xlu1 %4521 }
0x35d4   :  { %v4524_v7 = vmul.f32 %v6552_v22, %v4522_v21 }
0x35d6   :  { %v4628_v48 = vpop.permute.xlu0 %4627  ;;  %4526 = vrot.lane.b32.xlu1 %v4524_v7, %s6646_s12 }
0x35d7   :  { %v4630_v17 = vmul.f32 %v6554_v37, %v4628_v48  ;;  %v2316_v48 = vsel %vm2205_vm10, %v7557_v54, 0.0  ;;  %vm1209_vm10 = vcmask 1048320  }
0x35d9   :  { %4632 = vrot.lane.b32.xlu0 %v4630_v17, %s6646_s12 }
0x3648   :  { %v4527_v45 = vpop.permute.xlu1 %4526 }
0x3649   :  { %v8255_v26 = vadd.f32 %v4527_v45, %v4519_v10  ;;  %v2981_v45 = vsel %vm2870_vm12, %v7770_v51, 0.0  ;;  %v1428_v51 = vsel %vm1317_vm13, %v7258_v5, 0.0  ;;  %v4315_v5 = vsel %vm4204_vm3, %v8210_v28, 0.0 }
0x364a   :  { %vm985_vm13 = vcmask 785920   ;;  %vm8487_vm12 = vcmp.eq.s32.totalorder %v8486_v39, 1 }
0x364b   :  { %6555 = vtanh.f32 %v8255_v26  ;;  %v4633_v47 = vpop.permute.xlu0 %4632  ;;  %v4537_v52 = vsel %vm4427_vm9, %v8255_v26, %v8252_v8  ;;  %v3204_v8 = vsel %vm3093_vm8, %v7851_v43, 0.0  ;;  %v760_v26 = vsel %vm650_vm7, %v7045_v33, 0.0 }
0x364c   :  { %v8265_v50 = vadd.f32 %v4633_v47, %v4625_v27  ;;  %vm8482_vm7 = vcmp.eq.s32.totalorder %v7996_v9, 1  ;;  %v2762_v41 = vsel %vm8487_vm12, %v7699_v55, 0.0 }
0x364d   :  { %v3869_v2 = vsel %vm8482_vm7, %v8069_v11, 0.0 }
0x364e   :  { %6557 = vtanh.f32 %v8265_v50 }
0x3655   :  { %v6556_v38 = vpop.eup %6555 }
0x3656   :  { %4532 = vrot.lane.b32.xlu1 %v6556_v38, %s6646_s12 }
0x3658   :  { %v6558_v46 = vpop.eup %6557 }
0x3659   :  { %4638 = vrot.lane.b32.xlu0 %v6558_v46, %s6646_s12 }
0x36c8   :  { %v4533_v29 = vpop.permute.xlu1 %4532 }
0x36c9   :  { %v8270_v53 = vmul.f32 %v6552_v22, %v4533_v29 }
0x36cb   :  { %v4639_v31 = vpop.permute.xlu0 %4638  ;;  %v8276_v13 = vsel %vm4427_vm9, %v8270_v53, %v8216_v12 }
0x36cc   :  { %v4641_v35 = vmul.f32 %v6554_v37, %v4639_v31  ;;  %4654 = vrot.lane.b32.xlu0 %v8276_v13, %s6649_s17  ;;  %v4642_v37 = vsel %vm4540_vm1, 1, %v8480_v6 }
0x36ce   :  { %4650 = vrot.lane.b32.xlu1 %v4641_v35, %s6648_s5 }
0x373e   :  { %v4655_v25 = vpop.permute.xlu0 %4654 }
0x3740   :  { %v4651_v19 = vpop.permute.xlu1 %4650 }
0x3741   :  { %v4657_v44 = vsel %vm322_vm4, %v4651_v19, %v4655_v25 }
0x3742   :  { %5865 = vmatmul.mubr.msk.f32.vlgmr.msra.gmra.mrb[52].mxu0 %vm439_vm5, %v4657_v44 }
0x3815   :  { %v4727_v22 = vpop.f32.mrb[52].mxu0 }
0x3816   :  { %v4728_v21 = vadd.f32 %v7892_v62, %v4727_v22  ;;  %v5866_v7 = vpop.f32.mrb[53].mxu0  ;;  %v4092_v62 = vsel %vm3981_vm2, %v8140_v24, 0.0 }
0x3818   :  { %6559 = vtanh.f32 %v4728_v21  ;;  %v4930_v32 = vmul.f32 -1.442695, %v4728_v21 }
0x381a   :  { %6561 = vpow2.f32 %v4930_v32 }
0x3822   :  { %v6560_v12 = vpop.eup %6559 }
0x3823   :  { %4740 = vrot.lane.b32.xlu1 %v6560_v12, %s6646_s12 }
0x3824   :  { %v6562_v54 = vpop.eup %6561 }
0x3825   :  { %v4734_v6 = vadd.f32 1.0, %v6562_v54 }
0x3827   :  { %4644 = vperm.xlu1 %6245, %v4642_v37   ;;  %6563 = vrcp.f32 %v4734_v6 }
0x382b   :  { %540 = vrot.lane.b32.xlu1 %v6951_v63, %s6648_s5  ;;  %v3427_v63 = vsel %vm3316_vm0, %v7927_v49, 0.0  ;;  %v1204_v49 = vsel %vm1093_vm11, %v7187_v3, 0.0  ;;  %vm765_vm11 = vcmask 523520  }
0x382f   :  { %2318 = vrot.lane.b32.xlu1 %v2316_v48, %s6648_s5 }
0x3831   :  { %v6564_v36 = vpop.eup %6563 }
0x3832   :  { %v4738_v3 = vmul.f32 %v6564_v36, %v4537_v52 }
0x3833   :  { %4094 = vrot.lane.b32.xlu1 %v4092_v62, %s6648_s5 }
0x3837   :  { %1653 = vrot.lane.b32.xlu1 %v1651_v18, %s6649_s17 }
0x383b   :  { %3429 = vrot.lane.b32.xlu1 %v3427_v63, %s6649_s17 }
0x3895   :  { %v4741_v24 = vpop.permute.xlu1 %4740 }
0x3896   :  { %v4743_v17 = vmul.f32 %v6564_v36, %v4741_v24 }
0x3898   :  { %4745 = vrot.lane.b32.xlu0 %v4743_v17, %s6646_s12 }
0x38a6   :  { %v4645_v1 = vpop.permute.xlu1 %4644 }
0x38a7   :  { %vm4646_vm5 = vcmp.eq.s32.totalorder %v4645_v1, 1 }
0x38a8   :  { %v4647_v59 = vsel %vm4646_vm5, %v4641_v35, %v8225_v23  ;;  %v4648_v11 = vsel %vm4646_vm5, %v8265_v50, %v8261_v16  ;;  %v984_v16 = vsel %vm8485_vm14, %v7116_v14, 0.0  ;;  %v4538_v14 = vsel %vm4427_vm9, %v8270_v53, 0.0 }
0x38a9   :  { %4764 = vrot.lane.b32.xlu1 %v4647_v59, %s6648_s5 }
0x38aa   :  { %v541_v42 = vpop.permute.xlu1 %540 }
0x38ab   :  { %543 = vst.msk [vmem:[#allocation3] sm:$0xff] %vm322_vm4, %v541_v42 }
0x38ad   :  { %1206 = vrot.lane.b32.xlu1 %v1204_v49, %s6646_s12 }
0x38ae   :  { %v2319_v10 = vpop.permute.xlu1 %2318 }
0x38af   :  { %2321 = vst.msk [vmem:[#allocation3 + $0x10] sm:$0xff] %vm322_vm4, %v2319_v10 }
0x38b1   :  { %2983 = vrot.lane.b32.xlu1 %v2981_v45, %s6646_s12 }
0x38b2   :  { %v4095_v23 = vpop.permute.xlu1 %4094 }
0x38b3   :  { %4097 = vst.msk [vmem:[#allocation3 + $0x20] sm:$0xff] %vm322_vm4, %v4095_v23 }
0x38b6   :  { %v1654_v38 = vpop.permute.xlu1 %1653 }
0x38ba   :  { %v3430_v29 = vpop.permute.xlu1 %3429 }
0x390a   :  { %v4746_v27 = vpop.permute.xlu0 %4745 }
0x390b   :  { %v4748_v47 = vadd.f32 %v4746_v27, %v4738_v3 }
0x390d   :  { %6565 = vtanh.f32 %v4748_v47  ;;  %v4756_v9 = vsel %vm4646_vm5, %v4748_v47, %v4537_v52 }
0x3917   :  { %v6566_v46 = vpop.eup %6565 }
0x3918   :  { %4751 = vrot.lane.b32.xlu0 %v6566_v46, %s6646_s12 }
0x391b   :  { %v4765_v20 = vpop.permute.xlu1 %4764 }
0x391c   :  { %4767 = vst.msk [vmem:[#allocation5] sm:$0xff] %vm322_vm4, %v4765_v20  ;;  %1430 = vrot.lane.b32.xlu0 %v1428_v51, %s6648_s5 }
0x391f   :  { %v1207_v57 = vpop.permute.xlu1 %1206 }
0x3920   :  { %3206 = vrot.lane.b32.xlu0 %v3204_v8, %s6648_s5 }
0x3923   :  { %v2984_v31 = vpop.permute.xlu1 %2983 }
0x3924   :  { %762 = vrot.lane.b32.xlu0 %v760_v26, %s6649_s17 }
0x3928   :  { %2541 = vrot.lane.b32.xlu0 %v2539_v30, %s6649_s17 }
0x392c   :  { %4317 = vrot.lane.b32.xlu0 %v4315_v5, %s6649_s17 }
0x3930   :  { %2095 = vrot.lane.b32.xlu0 %v2093_v60, %s6646_s12 }
0x3934   :  { %3871 = vrot.lane.b32.xlu0 %v3869_v2, %s6646_s12 }
0x398a   :  { %v4752_v33 = vpop.permute.xlu0 %4751 }
0x398b   :  { %v4754_v58 = vmul.f32 %v6564_v36, %v4752_v33 }
0x398d   :  { %v4757_v61 = vsel %vm4646_vm5, %v4754_v58, 0.0  ;;  %v4755_v43 = vsel %vm4646_vm5, %v4754_v58, %v8276_v13 }
0x398e   :  { %4759 = vrot.lane.b32.xlu1 %v4757_v61, %s6646_s12  ;;  %4774 = vrot.lane.b32.xlu0 %v4755_v43, %s6648_s5  ;;  %v1431_v0 = vpop.permute.xlu0 %1430  ;;  %s4800_s12 = sshll.u32 %s6650_s6, 4  ;;  %s6651_s5 = smov [#allocation3]   ;;  %s4801_s12 = int_to_ptr.vmem [resolvable:$true] %s4800_s12 }
0x398f   :  { %1433 = vst.msk [vmem:[#allocation3 + $0x8] sm:$0xff] %vm322_vm4, %v1431_v0  ;;  %s4791_s26 = sshll.u32 %s6651_s5, 4  ;;  %s6573_s29 = scalar_lea.vmem %s4801_s12, 256  ;;  %s8396_s26 = int_to_ptr.vmem [resolvable:$true] %s4791_s26 }
0x3990   :  { %1656 = vst.msk [vmem:[#allocation3 + $0x8] sm:$0xff] %vm765_vm11, %v1654_v38  ;;  %p6574_p0 = scmp.ne.s32.totalorder %s4801_s12, %s6573_s29  ;;  %p6578_p1 = scmp.lt.s32.totalorder %s4801_s12, %s4801_s12 }
0x3991   :  { %1875 = vst.msk [vmem:[#allocation3 + $0x8] sm:$0xff] %vm985_vm13, %v1874_v4  ;;  %p6579_p2 = scmp.lt.s32.totalorder %s6573_s29, %s6573_s29 }
0x3992   :  { %4780 = vrot.lane.b32.xlu1 %v4756_v9, %s6649_s17  ;;  %4769 = vrot.lane.b32.xlu0 %v4648_v11, %s6649_s17  ;;  %v3207_v40 = vpop.permute.xlu0 %3206 }
0x3993   :  { %3209 = vst.msk [vmem:[#allocation3 + $0x18] sm:$0xff] %vm322_vm4, %v3207_v40  ;;  %p6580_p3 = por %p6579_p2, %p6578_p1 }
0x3994   :  { %3432 = vst.msk [vmem:[#allocation3 + $0x18] sm:$0xff] %vm765_vm11, %v3430_v29 }
0x3995   :  { %3651 = vst.msk [vmem:[#allocation3 + $0x18] sm:$0xff] %vm985_vm13, %v3650_v56  ;;  %p6581_p4 = pnand %p6580_p3, %p6574_p0 }
0x3996   :  { %v763_v28 = vpop.permute.xlu0 %762 }
0x3997   :  { %766 = vst.msk [vmem:[#allocation3] sm:$0xff] %vm765_vm11, %v763_v28 }
0x3998   :  { %986 = vst.msk [vmem:[#allocation3] sm:$0xff] %vm985_vm13, %v984_v16 }
0x3999   :  { %1210 = vst.msk [vmem:[#allocation3] sm:$0xff] %vm1209_vm10, %v1207_v57 }
0x399a   :  { %v2542_v50 = vpop.permute.xlu0 %2541 }
0x399b   :  { %2544 = vst.msk [vmem:[#allocation3 + $0x10] sm:$0xff] %vm765_vm11, %v2542_v50 }
0x399c   :  { %2763 = vst.msk [vmem:[#allocation3 + $0x10] sm:$0xff] %vm985_vm13, %v2762_v41 }
0x399d   :  { %2986 = vst.msk [vmem:[#allocation3 + $0x10] sm:$0xff] %vm1209_vm10, %v2984_v31 }
0x399e   :  { %v4318_v34 = vpop.permute.xlu0 %4317 }
0x399f   :  { %4320 = vst.msk [vmem:[#allocation3 + $0x20] sm:$0xff] %vm765_vm11, %v4318_v34 }
0x39a0   :  { %4539 = vst.msk [vmem:[#allocation3 + $0x20] sm:$0xff] %vm985_vm13, %v4538_v14 }
0x39a2   :  { %v2096_v13 = vpop.permute.xlu0 %2095 }
0x39a3   :  { %2098 = vst.msk [vmem:[#allocation3 + $0x8] sm:$0xff] %vm1209_vm10, %v2096_v13 }
0x39a6   :  { %v3872_v55 = vpop.permute.xlu0 %3871 }
0x39a7   :  { %3874 = vst.msk [vmem:[#allocation3 + $0x18] sm:$0xff] %vm1209_vm10, %v3872_v55 }
0x3a00   :  { %v4760_v35 = vpop.permute.xlu1 %4759  ;;  %v4775_v15 = vpop.permute.xlu0 %4774 }
0x3a01   :  { %4762 = vst.msk [vmem:[#allocation3 + $0x20] sm:$0xff] %vm1209_vm10, %v4760_v35 }
0x3a02   :  { %4778 = vst.msk [vmem:[#allocation5 + $0x8] sm:$0xff] %vm322_vm4, %v4775_v15 }
0x3a03   :  { %6584 = shalt.err (!%p6581_p4)
}
0x3a04   :  { %s6585_s4 = scalar_lea.hbm %s8464_s8, 256 }
0x3a05   :  { %p6586_p5 = scmp.ne.s32.totalorder %s8464_s8, %s6585_s4  ;;  %p6589_p6 = scmp.lt.u32.totalorder %s6585_s4, %s8464_s8 }
0x3a07   :  { %p6591_p7 = pnand %p6589_p6, %p6586_p5 }
0x3a09   :  { %6594 = shalt.err (!%p6591_p7)
}
0x3a0a   :  { %s6653_s16 = smov 128   ;;  %s6654_s17 = smov 8  }
0x3a0b   :  { %4806 = dma.vmem_to_hbm [thread:$0]  %s4801_s12, 256, %s8464_s8, [#allocation6], %s6653_s16, %s6653_s16, %s6654_s17  }
0x3a0c   :  { %s6595_s19 = scalar_lea.vmem %s8396_s26, 640  ;;  %p6600_p9 = scmp.lt.s32.totalorder %s8396_s26, %s8396_s26 }
0x3a0d   :  { %p6596_p8 = scmp.ne.s32.totalorder %s8396_s26, %s6595_s19  ;;  %p6601_p10 = scmp.lt.s32.totalorder %s6595_s19, %s6595_s19 }
0x3a0f   :  { %p6602_p11 = por %p6601_p10, %p6600_p9 }
0x3a11   :  { %p6603_p12 = pnand %p6602_p11, %p6596_p8 }
0x3a13   :  { %6606 = shalt.err (!%p6603_p12)
}
0x3a14   :  { %s6607_s21 = scalar_lea.hbm %s8463_s7, 640 }
0x3a15   :  { %p6608_p13 = scmp.ne.s32.totalorder %s8463_s7, %s6607_s21  ;;  %p6611_p0 = scmp.lt.u32.totalorder %s6607_s21, %s8463_s7 }
0x3a17   :  { %p6613_p1 = pnand %p6611_p0, %p6608_p13 }
0x3a19   :  { %6616 = shalt.err (!%p6613_p1)
}
0x3a1a   :  { %4794 = dma.vmem_to_hbm [thread:$0]  %s8396_s26, 640, %s8463_s7, [#allocation4]   ;;  %v4781_v53 = vpop.permute.xlu1 %4780  ;;  %v4770_v25 = vpop.permute.xlu0 %4769 }
0x3a1b   :  { %4784 = vst.msk [vmem:[#allocation7 + $0x8] sm:$0xff] %vm322_vm4, %v4781_v53  ;;  %4772 = vst.msk [vmem:[#allocation7] sm:$0xff] %vm322_vm4, %v4770_v25  ;;  %s6617_s25 = scalar_lea.vmem %s8400_s28, 256  ;;  %p6622_p3 = scmp.lt.s32.totalorder %s8400_s28, %s8400_s28 }
0x3a1c   :  { %p6618_p2 = scmp.ne.s32.totalorder %s8400_s28, %s6617_s25  ;;  %p6623_p4 = scmp.lt.s32.totalorder %s6617_s25, %s6617_s25 }
0x3a1e   :  { %p6624_p5 = por %p6623_p4, %p6622_p3 }
0x3a20   :  { %p6625_p6 = pnand %p6624_p5, %p6618_p2 }
0x3a22   :  { %6628 = shalt.err (!%p6625_p6)
}
0x3a23   :  { %s6629_s5 = scalar_lea.hbm %s8465_s9, 256 }
0x3a24   :  { %p6630_p7 = scmp.ne.s32.totalorder %s8465_s9, %s6629_s5  ;;  %p6633_p8 = scmp.lt.u32.totalorder %s6629_s5, %s8465_s9 }
0x3a26   :  { %p6635_p9 = pnand %p6633_p8, %p6630_p7 }
0x3a28   :  { %6638 = shalt.err (!%p6635_p9)
}
0x3a29   :  { %4818 = dma.vmem_to_hbm [thread:$0]  %s8400_s28, 256, %s8465_s9, [#allocation6], %s6653_s16, %s6653_s16, %s6654_s17  }
0x3a2a   :  { %6639 = dma.done.wait [#allocation4], 640  }
0x3a2b   :  { %6640 = vsyncadd [#allocation4], 4294966656 }
0x3a2c   :  { %6641 = dma.done.wait [#allocation6], 512  }
0x3a2d   :  { %6642 = vsyncadd [#allocation6], 4294966784 }
0x3a2e   :  { %4828 = vsyncpa [#allocation4], 1 }
0x3a2f   :  { %4829 = vsyncpa [#allocation6], 1 }

</bundles_post_ra>
